<compile_context>
chip_gen: v6e
topology: v6e:2x2x1
jax: 0.10.0
libtpu: 0.0.40
codegen_flags: <defaults>
</compile_context>

<pallas_src>
import functools

import jax
import jax.numpy as jnp
from jax.experimental import pallas as pl
from jax.experimental.pallas import tpu as pltpu


# ------------------------------ Pallas kernel ------------------------------ #

def _resblock_kernel(x_ref, w1_ref, b1_ref, w2_ref, b2_ref, mask_ref, o_ref,
                     p_ref, h_ref, *, tap_offsets, tap_needs_mask, group,
                     n_ch, ms, margin):
    """Fused residual block for one fold of samples.

    x_ref   : (C, Mext)      f32  flattened samples with a zero halo
    w*_ref  : (Cout, Krows)  f32  transposed conv weights (zero padded rows)
    b*_ref  : (Cout, 1)      f32
    mask_ref: (Krows, Ms)    f32  precomputed tap-validity masks (P row layout)
    o_ref   : (Cout, Ms)     f32  lane-dense output block
    p_ref   : (Krows, Ms)    f32  VMEM scratch: K-major patch matrix
    h_ref   : (Cout, Mext)   f32  VMEM scratch: intermediate activation + halo
    """
    C = n_ch
    Ms = ms
    n_taps = len(tap_offsets)
    rows_per_group = group * C
    n_groups = -(-n_taps // group)

    # Zero only the h halo; the interior [margin, margin+Ms) is fully
    # overwritten every step and every P row is rewritten every step, so
    # nothing else needs initialisation.  Done per step (not pl.when(pid==0))
    # because the parallel batch axis may be sharded across TensorCores, each
    # with its own scratch.  Cost: two (C, margin) stores -- negligible.
    if margin > 0:
        h_ref[:, :margin] = jnp.zeros((C, margin), jnp.float32)
        h_ref[:, margin + Ms:] = jnp.zeros((C, margin), jnp.float32)

    def build_patches(src_ref):
        # P[(tap, ci), m] = src[ci, m + flat_off(tap)] * valid(tap, m).
        # `group` taps are concatenated per write so each store covers full
        # 8-sublane tiles (C=4 -> 2 taps per 8-row store) instead of half-tile
        # masked stores.  Slice starts are static Python ints; the lane
        # misalignment of +/-off shifts lands on XLU-style shifted loads.
        for g in range(n_groups):
            lo = g * group
            hi = min(lo + group, n_taps)
            parts = [
                src_ref[:, margin + tap_offsets[t]:
                           margin + tap_offsets[t] + Ms]
                for t in range(lo, hi)
            ]
            pad_rows = rows_per_group - (hi - lo) * C
            if pad_rows:
                parts.append(jnp.zeros((pad_rows, Ms), jnp.float32))
            blk = parts[0] if len(parts) == 1 else jnp.concatenate(parts, axis=0)
            if any(tap_needs_mask[t] for t in range(lo, hi)):
                blk = blk * mask_ref[g * rows_per_group:(g + 1) * rows_per_group, :]
            p_ref[g * rows_per_group:(g + 1) * rows_per_group, :] = blk

    # conv1 + bias + ReLU; h stays resident in VMEM (never touches HBM).
    build_patches(x_ref)
    h1 = jnp.dot(w1_ref[...], p_ref[...], preferred_element_type=jnp.float32)
    h_ref[:, margin:margin + Ms] = jnp.maximum(h1 + b1_ref[...], 0.0)

    # conv2 + bias + residual add.
    build_patches(h_ref)
    y = jnp.dot(w2_ref[...], p_ref[...], preferred_element_type=jnp.float32)
    o_ref[...] = (y + b2_ref[...] + x_ref[:, margin:margin + Ms]).astype(o_ref.dtype)


# ------------------------------ JAX wrapper --------------------------------- #

def _pick_fold(n, m, target_lanes=512, cap_lanes=8192):
    """Largest divisor of n whose fold*m reaches ~target lanes (capped)."""
    best = 1
    for f in range(1, n + 1):
        if n % f:
            continue
        if f * m > cap_lanes:
            break
        best = f
        if f * m >= target_lanes:
            break
    return best


def resblock_3d_forward(x_ncdhw, w1, b1, w2, b2, k, stride, pad):
    """Matches Resblock_3D.forward: x + conv2(relu(conv1(x)))."""
    assert stride == 1, "residual block requires stride 1"
    assert 2 * pad == k - 1, "residual requires 'same' conv (pad == (k-1)//2)"
    N, C, D, H, W = x_ncdhw.shape
    Cout = w1.shape[0]
    assert Cout == C and w1.shape[1] == C and w2.shape[1] == Cout

    M = D * H * W
    n_taps = k ** 3
    K = n_taps * C

    # Fold several samples into one grid step so the per-step lane width is
    # >= ~512 (per-step overhead dominates tiny volumes otherwise).
    fold = _pick_fold(N, M)
    G = N // fold
    Ms = fold * M

    maxoff = pad * (H * W + W + 1)
    margin = ((maxoff + 127) // 128) * 128 if maxoff else 0   # lane-aligned halo
    Mext = Ms + 2 * margin
    # Every in-kernel halo read must stay inside the allocated extent.
    assert margin >= maxoff
    assert margin + Ms + maxoff <= Mext

    # Sublane-aligned tap grouping: f32 sublane tile is 8 rows.
    if C % 8 == 0 or 8 % C != 0:
        group = 1
    else:
        group = 8 // C                      # C=4 -> 2 taps per 8-row store
    n_groups = -(-n_taps // group)
    Krows = n_groups * group * C            # K rounded up to the store-group size

    # ---- data layout: (N, C, D, H, W) -> (G, C, fold*M) + zero halo ----
    x_flat = x_ncdhw.reshape(N, C, M).astype(jnp.float32)
    x_g = x_flat.reshape(G, fold, C, M).transpose(0, 2, 1, 3).reshape(G, C, Ms)
    x_ext = jnp.pad(x_g, ((0, 0), (0, 0), (margin, margin)))

    # ---- conv weights as [Cout, Krows], K ordered (kd, kh, kw, ci) ----
    def to_mat(w):
        wt = jnp.transpose(w, (0, 2, 3, 4, 1)).reshape(Cout, K).astype(jnp.float32)
        return jnp.pad(wt, ((0, 0), (0, Krows - K)))

    w1t, w2t = to_mat(w1), to_mat(w2)
    b1c = b1.reshape(Cout, 1).astype(jnp.float32)
    b2c = b2.reshape(Cout, 1).astype(jnp.float32)

    # ---- static tap table (flat offset + per-dim offsets), (kd, kh, kw) order
    taps = tuple(
        ((kd - pad) * H * W + (kh - pad) * W + (kw - pad),
         kd - pad, kh - pad, kw - pad)
        for kd in range(k) for kh in range(k) for kw in range(k))
    tap_offsets = tuple(t[0] for t in taps)
    tap_needs_mask = tuple((a != 0) or (b != 0) or (c != 0)
                           for (_, a, b, c) in taps)

    # ---- tap-validity masks, hoisted out of the kernel, laid out like P rows.
    # Trivially-true factors (zero offset in a dim) are skipped at build time.
    m_ar = jnp.arange(M, dtype=jnp.int32)
    d_i, h_i, w_i = m_ar // (H * W), (m_ar // W) % H, m_ar % W
    rows = []
    for (_, a, b, c) in taps:
        valid = jnp.ones((M,), dtype=jnp.bool_)
        if a:
            valid &= (d_i + a >= 0) & (d_i + a < D)
        if b:
            valid &= (h_i + b >= 0) & (h_i + b < H)
        if c:
            valid &= (w_i + c >= 0) & (w_i + c < W)
        rows.append(jnp.broadcast_to(valid.astype(jnp.float32)[None, :], (C, M)))
    mask = jnp.concatenate(rows, axis=0)                 # (K, M)
    mask = jnp.pad(mask, ((0, Krows - K), (0, 0)))       # group-padding rows
    mask = jnp.tile(mask, (1, fold))                     # (Krows, Ms)

    kernel = functools.partial(
        _resblock_kernel, tap_offsets=tap_offsets, tap_needs_mask=tap_needs_mask,
        group=group, n_ch=C, ms=Ms, margin=margin)

    # Two fused matmuls over the true K; invariants fetched once.
    flops = 4 * N * Cout * K * M
    bytes_accessed = 4 * (x_ext.size + mask.size + w1t.size + w2t.size
                          + b1c.size + b2c.size + N * Cout * M)

    out_flat = pl.pallas_call(
        kernel,
        out_shape=jax.ShapeDtypeStruct((G, Cout, Ms), jnp.float32),
        grid_spec=pltpu.PrefetchScalarGridSpec(
            num_scalar_prefetch=0,
            grid=(G,),
            in_specs=[
                pl.BlockSpec((None, C, Mext), lambda g: (g, 0, 0)),   # x (+halo)
                pl.BlockSpec((Cout, Krows), lambda g: (0, 0)),        # W1^T
                pl.BlockSpec((Cout, 1), lambda g: (0, 0)),            # b1
                pl.BlockSpec((Cout, Krows), lambda g: (0, 0)),        # W2^T
                pl.BlockSpec((Cout, 1), lambda g: (0, 0)),            # b2
                pl.BlockSpec((Krows, Ms), lambda g: (0, 0)),          # tap masks
            ],
            out_specs=pl.BlockSpec((None, Cout, Ms), lambda g: (g, 0, 0)),
            scratch_shapes=[
                pltpu.VMEM((Krows, Ms), jnp.float32),     # patch matrix P
                pltpu.VMEM((Cout, Mext), jnp.float32),    # intermediate h + halo
            ],
        ),
        compiler_params=pltpu.CompilerParams(
            dimension_semantics=("parallel",),
            vmem_limit_bytes=32 * 1024 * 1024,
        ),
        cost_estimate=pl.CostEstimate(
            flops=flops, transcendentals=0, bytes_accessed=bytes_accessed),
    )(x_ext, w1t, b1c, w2t, b2c, mask)

    out = out_flat.reshape(G, Cout, fold, M).transpose(0, 2, 1, 3)
    return out.reshape(N, Cout, D, H, W)


# ------------------------------- reference ---------------------------------- #

def _conv3d_ref(x_ncdhw, w, b, pad):
    y = jax.lax.conv_general_dilated(
        x_ncdhw, w, window_strides=(1, 1, 1),
        padding=[(pad, pad)] * 3,
        dimension_numbers=("NCDHW", "OIDHW", "NCDHW"))
    return y + b[None, :, None, None, None]


def _resblock_ref(x, w1, b1, w2, b2, pad):
    h = jnp.maximum(_conv3d_ref(x, w1, b1, pad), 0.0)
    return x + _conv3d_ref(h, w2, b2, pad)


# --------------------------------- main -------------------------------------- #

if __name__ == "__main__":
    # Module config: in_channel = out_channel = 4, kernel 3, stride 1, padding 1
    in_ch, out_ch, k, stride, pad = 4, 4, 3, 1, 1
    N, Dd, H, W = 2, 4, 8, 8

    key = jax.random.PRNGKey(0)
    kx, kw1, kb1, kw2, kb2 = jax.random.split(key, 5)

    x = jax.random.normal(kx, (N, in_ch, Dd, H, W), dtype=jnp.float32)
    scale = 1.0 / (in_ch * k * k * k) ** 0.5
    w1 = jax.random.normal(kw1, (out_ch, in_ch, k, k, k), jnp.float32) * scale
    b1 = jax.random.normal(kb1, (out_ch,), jnp.float32) * scale
    w2 = jax.random.normal(kw2, (out_ch, in_ch, k, k, k), jnp.float32) * scale
    b2 = jax.random.normal(kb2, (out_ch,), jnp.float32) * scale

    fwd = jax.jit(functools.partial(resblock_3d_forward, k=k, stride=stride, pad=pad))
    out = jax.block_until_ready(fwd(x, w1, b1, w2, b2))

    ref = _resblock_ref(x, w1, b1, w2, b2, pad)
    assert out.shape == x.shape
    assert jnp.allclose(out, ref, atol=1e-3, rtol=1e-3), "mismatch vs reference conv"

    print("KERNEL_OK")
</pallas_src>

<mosaic_0001>
module attributes {stable_mosaic.version = 11 : i64} {
  func.func @_resblock_kernel(%arg0: i32, %arg1: memref<1x4x768xf32, #tpu.memory_space<vmem>>, %arg2: memref<4x112xf32, #tpu.memory_space<vmem>>, %arg3: memref<4x1xf32, #tpu.memory_space<vmem>>, %arg4: memref<4x112xf32, #tpu.memory_space<vmem>>, %arg5: memref<4x1xf32, #tpu.memory_space<vmem>>, %arg6: memref<112x512xf32, #tpu.memory_space<vmem>>, %arg7: memref<1x4x512xf32, #tpu.memory_space<vmem>>, %arg8: memref<112x512xf32, #tpu.memory_space<vmem>>, %arg9: memref<4x768xf32, #tpu.memory_space<vmem>>) attributes {dimension_semantics = [#tpu.dimension_semantics<parallel>], iteration_bounds = array<i64: 1>, scalar_prefetch = 0 : i64, scratch_operands = 2 : i64, tpu.core_type = #tpu.core_type<tc>, window_params = [{transform_indices = @transform_0, window_bounds = array<i64: 1, 4, 768>}, {pipeline_mode = #tpu.pipeline_mode<synchronous>, transform_indices = @transform_1, window_bounds = array<i64: 4, 112>}, {pipeline_mode = #tpu.pipeline_mode<synchronous>, transform_indices = @transform_2, window_bounds = array<i64: 4, 1>}, {pipeline_mode = #tpu.pipeline_mode<synchronous>, transform_indices = @transform_3, window_bounds = array<i64: 4, 112>}, {pipeline_mode = #tpu.pipeline_mode<synchronous>, transform_indices = @transform_4, window_bounds = array<i64: 4, 1>}, {pipeline_mode = #tpu.pipeline_mode<synchronous>, transform_indices = @transform_5, window_bounds = array<i64: 112, 512>}, {transform_indices = @transform_6, window_bounds = array<i64: 1, 4, 512>}]} {
    %cst = arith.constant 0.000000e+00 : f32
    %0 = vector.broadcast %cst : f32 to vector<4x128xf32>
    %c0 = arith.constant 0 : index
    %c0_0 = arith.constant 0 : index
    %1 = vector.load %arg9[%c0, %c0_0] : memref<4x768xf32, #tpu.memory_space<vmem>>, vector<4x128xf32>
    tpu.vector_store %arg9[%c0, %c0_0], %0 {strides = array<i32>} : memref<4x768xf32, #tpu.memory_space<vmem>>, vector<4x128xf32>,
    %cst_1 = arith.constant 0.000000e+00 : f32
    %2 = vector.broadcast %cst_1 : f32 to vector<4x128xf32>
    %c0_2 = arith.constant 0 : index
    %c640 = arith.constant 640 : index
    %3 = vector.load %arg9[%c0_2, %c640] : memref<4x768xf32, #tpu.memory_space<vmem>>, vector<4x128xf32>
    tpu.vector_store %arg9[%c0_2, %c640], %2 {strides = array<i32>} : memref<4x768xf32, #tpu.memory_space<vmem>>, vector<4x128xf32>,
    %c0_3 = arith.constant 0 : index
    %c0_4 = arith.constant 0 : index
    %c55 = arith.constant 55 : index
    %4 = vector.load %arg1[%c0_3, %c0_4, %c55] : memref<1x4x768xf32, #tpu.memory_space<vmem>>, vector<1x4x512xf32>
    %5 = vector.shape_cast %4 : vector<1x4x512xf32> to vector<4x512xf32>
    %c0_5 = arith.constant 0 : index
    %c0_6 = arith.constant 0 : index
    %c56 = arith.constant 56 : index
    %6 = vector.load %arg1[%c0_5, %c0_6, %c56] : memref<1x4x768xf32, #tpu.memory_space<vmem>>, vector<1x4x512xf32>
    %7 = vector.shape_cast %6 : vector<1x4x512xf32> to vector<4x512xf32>
    %8 = tpu.concatenate %5, %7 in 0 : vector<4x512xf32>, vector<4x512xf32> -> vector<8x512xf32>
    %c0_7 = arith.constant 0 : index
    %c0_8 = arith.constant 0 : index
    %9 = vector.load %arg6[%c0_7, %c0_8] : memref<112x512xf32, #tpu.memory_space<vmem>>, vector<8x512xf32>
    %10 = arith.mulf %8, %9 : vector<8x512xf32>
    %c0_9 = arith.constant 0 : index
    %c0_10 = arith.constant 0 : index
    %11 = vector.load %arg8[%c0_9, %c0_10] : memref<112x512xf32, #tpu.memory_space<vmem>>, vector<8x512xf32>
    tpu.vector_store %arg8[%c0_9, %c0_10], %10 {strides = array<i32>} : memref<112x512xf32, #tpu.memory_space<vmem>>, vector<8x512xf32>,
    %c0_11 = arith.constant 0 : index
    %c0_12 = arith.constant 0 : index
    %c57 = arith.constant 57 : index
    %12 = vector.load %arg1[%c0_11, %c0_12, %c57] : memref<1x4x768xf32, #tpu.memory_space<vmem>>, vector<1x4x512xf32>
    %13 = vector.shape_cast %12 : vector<1x4x512xf32> to vector<4x512xf32>
    %c0_13 = arith.constant 0 : index
    %c0_14 = arith.constant 0 : index
    %c63 = arith.constant 63 : index
    %14 = vector.load %arg1[%c0_13, %c0_14, %c63] : memref<1x4x768xf32, #tpu.memory_space<vmem>>, vector<1x4x512xf32>
    %15 = vector.shape_cast %14 : vector<1x4x512xf32> to vector<4x512xf32>
    %16 = tpu.concatenate %13, %15 in 0 : vector<4x512xf32>, vector<4x512xf32> -> vector<8x512xf32>
    %c8 = arith.constant 8 : index
    %c0_15 = arith.constant 0 : index
    %17 = vector.load %arg6[%c8, %c0_15] : memref<112x512xf32, #tpu.memory_space<vmem>>, vector<8x512xf32>
    %18 = arith.mulf %16, %17 : vector<8x512xf32>
    %c8_16 = arith.constant 8 : index
    %c0_17 = arith.constant 0 : index
    %19 = vector.load %arg8[%c8_16, %c0_17] : memref<112x512xf32, #tpu.memory_space<vmem>>, vector<8x512xf32>
    tpu.vector_store %arg8[%c8_16, %c0_17], %18 {strides = array<i32>} : memref<112x512xf32, #tpu.memory_space<vmem>>, vector<8x512xf32>,
    %c0_18 = arith.constant 0 : index
    %c0_19 = arith.constant 0 : index
    %c64 = arith.constant 64 : index
    %20 = vector.load %arg1[%c0_18, %c0_19, %c64] : memref<1x4x768xf32, #tpu.memory_space<vmem>>, vector<1x4x512xf32>
    %21 = vector.shape_cast %20 : vector<1x4x512xf32> to vector<4x512xf32>
    %c0_20 = arith.constant 0 : index
    %c0_21 = arith.constant 0 : index
    %c65 = arith.constant 65 : index
    %22 = vector.load %arg1[%c0_20, %c0_21, %c65] : memref<1x4x768xf32, #tpu.memory_space<vmem>>, vector<1x4x512xf32>
    %23 = vector.shape_cast %22 : vector<1x4x512xf32> to vector<4x512xf32>
    %24 = tpu.concatenate %21, %23 in 0 : vector<4x512xf32>, vector<4x512xf32> -> vector<8x512xf32>
    %c16 = arith.constant 16 : index
    %c0_22 = arith.constant 0 : index
    %25 = vector.load %arg6[%c16, %c0_22] : memref<112x512xf32, #tpu.memory_space<vmem>>, vector<8x512xf32>
    %26 = arith.mulf %24, %25 : vector<8x512xf32>
    %c16_23 = arith.constant 16 : index
    %c0_24 = arith.constant 0 : index
    %27 = vector.load %arg8[%c16_23, %c0_24] : memref<112x512xf32, #tpu.memory_space<vmem>>, vector<8x512xf32>
    tpu.vector_store %arg8[%c16_23, %c0_24], %26 {strides = array<i32>} : memref<112x512xf32, #tpu.memory_space<vmem>>, vector<8x512xf32>,
    %c0_25 = arith.constant 0 : index
    %c0_26 = arith.constant 0 : index
    %c71 = arith.constant 71 : index
    %28 = vector.load %arg1[%c0_25, %c0_26, %c71] : memref<1x4x768xf32, #tpu.memory_space<vmem>>, vector<1x4x512xf32>
    %29 = vector.shape_cast %28 : vector<1x4x512xf32> to vector<4x512xf32>
    %c0_27 = arith.constant 0 : index
    %c0_28 = arith.constant 0 : index
    %c72 = arith.constant 72 : index
    %30 = vector.load %arg1[%c0_27, %c0_28, %c72] : memref<1x4x768xf32, #tpu.memory_space<vmem>>, vector<1x4x512xf32>
    %31 = vector.shape_cast %30 : vector<1x4x512xf32> to vector<4x512xf32>
    %32 = tpu.concatenate %29, %31 in 0 : vector<4x512xf32>, vector<4x512xf32> -> vector<8x512xf32>
    %c24 = arith.constant 24 : index
    %c0_29 = arith.constant 0 : index
    %33 = vector.load %arg6[%c24, %c0_29] : memref<112x512xf32, #tpu.memory_space<vmem>>, vector<8x512xf32>
    %34 = arith.mulf %32, %33 : vector<8x512xf32>
    %c24_30 = arith.constant 24 : index
    %c0_31 = arith.constant 0 : index
    %35 = vector.load %arg8[%c24_30, %c0_31] : memref<112x512xf32, #tpu.memory_space<vmem>>, vector<8x512xf32>
    tpu.vector_store %arg8[%c24_30, %c0_31], %34 {strides = array<i32>} : memref<112x512xf32, #tpu.memory_space<vmem>>, vector<8x512xf32>,
    %c0_32 = arith.constant 0 : index
    %c0_33 = arith.constant 0 : index
    %c73 = arith.constant 73 : index
    %36 = vector.load %arg1[%c0_32, %c0_33, %c73] : memref<1x4x768xf32, #tpu.memory_space<vmem>>, vector<1x4x512xf32>
    %37 = vector.shape_cast %36 : vector<1x4x512xf32> to vector<4x512xf32>
    %c0_34 = arith.constant 0 : index
    %c0_35 = arith.constant 0 : index
    %c119 = arith.constant 119 : index
    %38 = vector.load %arg1[%c0_34, %c0_35, %c119] : memref<1x4x768xf32, #tpu.memory_space<vmem>>, vector<1x4x512xf32>
    %39 = vector.shape_cast %38 : vector<1x4x512xf32> to vector<4x512xf32>
    %40 = tpu.concatenate %37, %39 in 0 : vector<4x512xf32>, vector<4x512xf32> -> vector<8x512xf32>
    %c32 = arith.constant 32 : index
    %c0_36 = arith.constant 0 : index
    %41 = vector.load %arg6[%c32, %c0_36] : memref<112x512xf32, #tpu.memory_space<vmem>>, vector<8x512xf32>
    %42 = arith.mulf %40, %41 : vector<8x512xf32>
    %c32_37 = arith.constant 32 : index
    %c0_38 = arith.constant 0 : index
    %43 = vector.load %arg8[%c32_37, %c0_38] : memref<112x512xf32, #tpu.memory_space<vmem>>, vector<8x512xf32>
    tpu.vector_store %arg8[%c32_37, %c0_38], %42 {strides = array<i32>} : memref<112x512xf32, #tpu.memory_space<vmem>>, vector<8x512xf32>,
    %c0_39 = arith.constant 0 : index
    %c0_40 = arith.constant 0 : index
    %c120 = arith.constant 120 : index
    %44 = vector.load %arg1[%c0_39, %c0_40, %c120] : memref<1x4x768xf32, #tpu.memory_space<vmem>>, vector<1x4x512xf32>
    %45 = vector.shape_cast %44 : vector<1x4x512xf32> to vector<4x512xf32>
    %c0_41 = arith.constant 0 : index
    %c0_42 = arith.constant 0 : index
    %c121 = arith.constant 121 : index
    %46 = vector.load %arg1[%c0_41, %c0_42, %c121] : memref<1x4x768xf32, #tpu.memory_space<vmem>>, vector<1x4x512xf32>
    %47 = vector.shape_cast %46 : vector<1x4x512xf32> to vector<4x512xf32>
    %48 = tpu.concatenate %45, %47 in 0 : vector<4x512xf32>, vector<4x512xf32> -> vector<8x512xf32>
    %c40 = arith.constant 40 : index
    %c0_43 = arith.constant 0 : index
    %49 = vector.load %arg6[%c40, %c0_43] : memref<112x512xf32, #tpu.memory_space<vmem>>, vector<8x512xf32>
    %50 = arith.mulf %48, %49 : vector<8x512xf32>
    %c40_44 = arith.constant 40 : index
    %c0_45 = arith.constant 0 : index
    %51 = vector.load %arg8[%c40_44, %c0_45] : memref<112x512xf32, #tpu.memory_space<vmem>>, vector<8x512xf32>
    tpu.vector_store %arg8[%c40_44, %c0_45], %50 {strides = array<i32>} : memref<112x512xf32, #tpu.memory_space<vmem>>, vector<8x512xf32>,
    %c0_46 = arith.constant 0 : index
    %c0_47 = arith.constant 0 : index
    %c127 = arith.constant 127 : index
    %52 = vector.load %arg1[%c0_46, %c0_47, %c127] : memref<1x4x768xf32, #tpu.memory_space<vmem>>, vector<1x4x512xf32>
    %53 = vector.shape_cast %52 : vector<1x4x512xf32> to vector<4x512xf32>
    %c0_48 = arith.constant 0 : index
    %c0_49 = arith.constant 0 : index
    %c128 = arith.constant 128 : index
    %54 = vector.load %arg1[%c0_48, %c0_49, %c128] : memref<1x4x768xf32, #tpu.memory_space<vmem>>, vector<1x4x512xf32>
    %55 = vector.shape_cast %54 : vector<1x4x512xf32> to vector<4x512xf32>
    %56 = tpu.concatenate %53, %55 in 0 : vector<4x512xf32>, vector<4x512xf32> -> vector<8x512xf32>
    %c48 = arith.constant 48 : index
    %c0_50 = arith.constant 0 : index
    %57 = vector.load %arg6[%c48, %c0_50] : memref<112x512xf32, #tpu.memory_space<vmem>>, vector<8x512xf32>
    %58 = arith.mulf %56, %57 : vector<8x512xf32>
    %c48_51 = arith.constant 48 : index
    %c0_52 = arith.constant 0 : index
    %59 = vector.load %arg8[%c48_51, %c0_52] : memref<112x512xf32, #tpu.memory_space<vmem>>, vector<8x512xf32>
    tpu.vector_store %arg8[%c48_51, %c0_52], %58 {strides = array<i32>} : memref<112x512xf32, #tpu.memory_space<vmem>>, vector<8x512xf32>,
    %c0_53 = arith.constant 0 : index
    %c0_54 = arith.constant 0 : index
    %c129 = arith.constant 129 : index
    %60 = vector.load %arg1[%c0_53, %c0_54, %c129] : memref<1x4x768xf32, #tpu.memory_space<vmem>>, vector<1x4x512xf32>
    %61 = vector.shape_cast %60 : vector<1x4x512xf32> to vector<4x512xf32>
    %c0_55 = arith.constant 0 : index
    %c0_56 = arith.constant 0 : index
    %c135 = arith.constant 135 : index
    %62 = vector.load %arg1[%c0_55, %c0_56, %c135] : memref<1x4x768xf32, #tpu.memory_space<vmem>>, vector<1x4x512xf32>
    %63 = vector.shape_cast %62 : vector<1x4x512xf32> to vector<4x512xf32>
    %64 = tpu.concatenate %61, %63 in 0 : vector<4x512xf32>, vector<4x512xf32> -> vector<8x512xf32>
    %c56_57 = arith.constant 56 : index
    %c0_58 = arith.constant 0 : index
    %65 = vector.load %arg6[%c56_57, %c0_58] : memref<112x512xf32, #tpu.memory_space<vmem>>, vector<8x512xf32>
    %66 = arith.mulf %64, %65 : vector<8x512xf32>
    %c56_59 = arith.constant 56 : index
    %c0_60 = arith.constant 0 : index
    %67 = vector.load %arg8[%c56_59, %c0_60] : memref<112x512xf32, #tpu.memory_space<vmem>>, vector<8x512xf32>
    tpu.vector_store %arg8[%c56_59, %c0_60], %66 {strides = array<i32>} : memref<112x512xf32, #tpu.memory_space<vmem>>, vector<8x512xf32>,
    %c0_61 = arith.constant 0 : index
    %c0_62 = arith.constant 0 : index
    %c136 = arith.constant 136 : index
    %68 = vector.load %arg1[%c0_61, %c0_62, %c136] : memref<1x4x768xf32, #tpu.memory_space<vmem>>, vector<1x4x512xf32>
    %69 = vector.shape_cast %68 : vector<1x4x512xf32> to vector<4x512xf32>
    %c0_63 = arith.constant 0 : index
    %c0_64 = arith.constant 0 : index
    %c137 = arith.constant 137 : index
    %70 = vector.load %arg1[%c0_63, %c0_64, %c137] : memref<1x4x768xf32, #tpu.memory_space<vmem>>, vector<1x4x512xf32>
    %71 = vector.shape_cast %70 : vector<1x4x512xf32> to vector<4x512xf32>
    %72 = tpu.concatenate %69, %71 in 0 : vector<4x512xf32>, vector<4x512xf32> -> vector<8x512xf32>
    %c64_65 = arith.constant 64 : index
    %c0_66 = arith.constant 0 : index
    %73 = vector.load %arg6[%c64_65, %c0_66] : memref<112x512xf32, #tpu.memory_space<vmem>>, vector<8x512xf32>
    %74 = arith.mulf %72, %73 : vector<8x512xf32>
    %c64_67 = arith.constant 64 : index
    %c0_68 = arith.constant 0 : index
    %75 = vector.load %arg8[%c64_67, %c0_68] : memref<112x512xf32, #tpu.memory_space<vmem>>, vector<8x512xf32>
    tpu.vector_store %arg8[%c64_67, %c0_68], %74 {strides = array<i32>} : memref<112x512xf32, #tpu.memory_space<vmem>>, vector<8x512xf32>,
    %c0_69 = arith.constant 0 : index
    %c0_70 = arith.constant 0 : index
    %c183 = arith.constant 183 : index
    %76 = vector.load %arg1[%c0_69, %c0_70, %c183] : memref<1x4x768xf32, #tpu.memory_space<vmem>>, vector<1x4x512xf32>
    %77 = vector.shape_cast %76 : vector<1x4x512xf32> to vector<4x512xf32>
    %c0_71 = arith.constant 0 : index
    %c0_72 = arith.constant 0 : index
    %c184 = arith.constant 184 : index
    %78 = vector.load %arg1[%c0_71, %c0_72, %c184] : memref<1x4x768xf32, #tpu.memory_space<vmem>>, vector<1x4x512xf32>
    %79 = vector.shape_cast %78 : vector<1x4x512xf32> to vector<4x512xf32>
    %80 = tpu.concatenate %77, %79 in 0 : vector<4x512xf32>, vector<4x512xf32> -> vector<8x512xf32>
    %c72_73 = arith.constant 72 : index
    %c0_74 = arith.constant 0 : index
    %81 = vector.load %arg6[%c72_73, %c0_74] : memref<112x512xf32, #tpu.memory_space<vmem>>, vector<8x512xf32>
    %82 = arith.mulf %80, %81 : vector<8x512xf32>
    %c72_75 = arith.constant 72 : index
    %c0_76 = arith.constant 0 : index
    %83 = vector.load %arg8[%c72_75, %c0_76] : memref<112x512xf32, #tpu.memory_space<vmem>>, vector<8x512xf32>
    tpu.vector_store %arg8[%c72_75, %c0_76], %82 {strides = array<i32>} : memref<112x512xf32, #tpu.memory_space<vmem>>, vector<8x512xf32>,
    %c0_77 = arith.constant 0 : index
    %c0_78 = arith.constant 0 : index
    %c185 = arith.constant 185 : index
    %84 = vector.load %arg1[%c0_77, %c0_78, %c185] : memref<1x4x768xf32, #tpu.memory_space<vmem>>, vector<1x4x512xf32>
    %85 = vector.shape_cast %84 : vector<1x4x512xf32> to vector<4x512xf32>
    %c0_79 = arith.constant 0 : index
    %c0_80 = arith.constant 0 : index
    %c191 = arith.constant 191 : index
    %86 = vector.load %arg1[%c0_79, %c0_80, %c191] : memref<1x4x768xf32, #tpu.memory_space<vmem>>, vector<1x4x512xf32>
    %87 = vector.shape_cast %86 : vector<1x4x512xf32> to vector<4x512xf32>
    %88 = tpu.concatenate %85, %87 in 0 : vector<4x512xf32>, vector<4x512xf32> -> vector<8x512xf32>
    %c80 = arith.constant 80 : index
    %c0_81 = arith.constant 0 : index
    %89 = vector.load %arg6[%c80, %c0_81] : memref<112x512xf32, #tpu.memory_space<vmem>>, vector<8x512xf32>
    %90 = arith.mulf %88, %89 : vector<8x512xf32>
    %c80_82 = arith.constant 80 : index
    %c0_83 = arith.constant 0 : index
    %91 = vector.load %arg8[%c80_82, %c0_83] : memref<112x512xf32, #tpu.memory_space<vmem>>, vector<8x512xf32>
    tpu.vector_store %arg8[%c80_82, %c0_83], %90 {strides = array<i32>} : memref<112x512xf32, #tpu.memory_space<vmem>>, vector<8x512xf32>,
    %c0_84 = arith.constant 0 : index
    %c0_85 = arith.constant 0 : index
    %c192 = arith.constant 192 : index
    %92 = vector.load %arg1[%c0_84, %c0_85, %c192] : memref<1x4x768xf32, #tpu.memory_space<vmem>>, vector<1x4x512xf32>
    %93 = vector.shape_cast %92 : vector<1x4x512xf32> to vector<4x512xf32>
    %c0_86 = arith.constant 0 : index
    %c0_87 = arith.constant 0 : index
    %c193 = arith.constant 193 : index
    %94 = vector.load %arg1[%c0_86, %c0_87, %c193] : memref<1x4x768xf32, #tpu.memory_space<vmem>>, vector<1x4x512xf32>
    %95 = vector.shape_cast %94 : vector<1x4x512xf32> to vector<4x512xf32>
    %96 = tpu.concatenate %93, %95 in 0 : vector<4x512xf32>, vector<4x512xf32> -> vector<8x512xf32>
    %c88 = arith.constant 88 : index
    %c0_88 = arith.constant 0 : index
    %97 = vector.load %arg6[%c88, %c0_88] : memref<112x512xf32, #tpu.memory_space<vmem>>, vector<8x512xf32>
    %98 = arith.mulf %96, %97 : vector<8x512xf32>
    %c88_89 = arith.constant 88 : index
    %c0_90 = arith.constant 0 : index
    %99 = vector.load %arg8[%c88_89, %c0_90] : memref<112x512xf32, #tpu.memory_space<vmem>>, vector<8x512xf32>
    tpu.vector_store %arg8[%c88_89, %c0_90], %98 {strides = array<i32>} : memref<112x512xf32, #tpu.memory_space<vmem>>, vector<8x512xf32>,
    %c0_91 = arith.constant 0 : index
    %c0_92 = arith.constant 0 : index
    %c199 = arith.constant 199 : index
    %100 = vector.load %arg1[%c0_91, %c0_92, %c199] : memref<1x4x768xf32, #tpu.memory_space<vmem>>, vector<1x4x512xf32>
    %101 = vector.shape_cast %100 : vector<1x4x512xf32> to vector<4x512xf32>
    %c0_93 = arith.constant 0 : index
    %c0_94 = arith.constant 0 : index
    %c200 = arith.constant 200 : index
    %102 = vector.load %arg1[%c0_93, %c0_94, %c200] : memref<1x4x768xf32, #tpu.memory_space<vmem>>, vector<1x4x512xf32>
    %103 = vector.shape_cast %102 : vector<1x4x512xf32> to vector<4x512xf32>
    %104 = tpu.concatenate %101, %103 in 0 : vector<4x512xf32>, vector<4x512xf32> -> vector<8x512xf32>
    %c96 = arith.constant 96 : index
    %c0_95 = arith.constant 0 : index
    %105 = vector.load %arg6[%c96, %c0_95] : memref<112x512xf32, #tpu.memory_space<vmem>>, vector<8x512xf32>
    %106 = arith.mulf %104, %105 : vector<8x512xf32>
    %c96_96 = arith.constant 96 : index
    %c0_97 = arith.constant 0 : index
    %107 = vector.load %arg8[%c96_96, %c0_97] : memref<112x512xf32, #tpu.memory_space<vmem>>, vector<8x512xf32>
    tpu.vector_store %arg8[%c96_96, %c0_97], %106 {strides = array<i32>} : memref<112x512xf32, #tpu.memory_space<vmem>>, vector<8x512xf32>,
    %c0_98 = arith.constant 0 : index
    %c0_99 = arith.constant 0 : index
    %c201 = arith.constant 201 : index
    %108 = vector.load %arg1[%c0_98, %c0_99, %c201] : memref<1x4x768xf32, #tpu.memory_space<vmem>>, vector<1x4x512xf32>
    %109 = vector.shape_cast %108 : vector<1x4x512xf32> to vector<4x512xf32>
    %cst_100 = arith.constant 0.000000e+00 : f32
    %110 = vector.broadcast %cst_100 : f32 to vector<4x512xf32>
    %111 = tpu.concatenate %109, %110 in 0 : vector<4x512xf32>, vector<4x512xf32> -> vector<8x512xf32>
    %c104 = arith.constant 104 : index
    %c0_101 = arith.constant 0 : index
    %112 = vector.load %arg6[%c104, %c0_101] : memref<112x512xf32, #tpu.memory_space<vmem>>, vector<8x512xf32>
    %113 = arith.mulf %111, %112 : vector<8x512xf32>
    %c104_102 = arith.constant 104 : index
    %c0_103 = arith.constant 0 : index
    %114 = vector.load %arg8[%c104_102, %c0_103] : memref<112x512xf32, #tpu.memory_space<vmem>>, vector<8x512xf32>
    tpu.vector_store %arg8[%c104_102, %c0_103], %113 {strides = array<i32>} : memref<112x512xf32, #tpu.memory_space<vmem>>, vector<8x512xf32>,
    %c0_104 = arith.constant 0 : index
    %c0_105 = arith.constant 0 : index
    %115 = vector.load %arg2[%c0_104, %c0_105] : memref<4x112xf32, #tpu.memory_space<vmem>>, vector<4x112xf32>
    %c0_106 = arith.constant 0 : index
    %c0_107 = arith.constant 0 : index
    %116 = vector.load %arg8[%c0_106, %c0_107] : memref<112x512xf32, #tpu.memory_space<vmem>>, vector<112x512xf32>
    %cst_108 = arith.constant dense<0.000000e+00> : vector<4x512xf32>
    %117 = tpu.matmul %115, %116, %cst_108 {dimension_numbers = #tpu.dot_dimension_numbers<[1], [0], [0], [1], [0, 0, 1, 1], [], []>} : vector<4x112xf32>, vector<112x512xf32>, vector<4x512xf32> -> vector<4x512xf32>
    %c0_109 = arith.constant 0 : index
    %c0_110 = arith.constant 0 : index
    %118 = vector.load %arg3[%c0_109, %c0_110] : memref<4x1xf32, #tpu.memory_space<vmem>>, vector<4x1xf32>
    %119 = vector.broadcast %118 : vector<4x1xf32> to vector<4x512xf32>
    %120 = arith.addf %117, %119 : vector<4x512xf32>
    %cst_111 = arith.constant 0.000000e+00 : f32
    %121 = vector.broadcast %cst_111 : f32 to vector<4x512xf32>
    %122 = arith.maximumf %120, %121 : vector<4x512xf32>
    %c0_112 = arith.constant 0 : index
    %c128_113 = arith.constant 128 : index
    %123 = vector.load %arg9[%c0_112, %c128_113] : memref<4x768xf32, #tpu.memory_space<vmem>>, vector<4x512xf32>
    tpu.vector_store %arg9[%c0_112, %c128_113], %122 {strides = array<i32>} : memref<4x768xf32, #tpu.memory_space<vmem>>, vector<4x512xf32>,
    %c0_114 = arith.constant 0 : index
    %c55_115 = arith.constant 55 : index
    %124 = vector.load %arg9[%c0_114, %c55_115] : memref<4x768xf32, #tpu.memory_space<vmem>>, vector<4x512xf32>
    %c0_116 = arith.constant 0 : index
    %c56_117 = arith.constant 56 : index
    %125 = vector.load %arg9[%c0_116, %c56_117] : memref<4x768xf32, #tpu.memory_space<vmem>>, vector<4x512xf32>
    %126 = tpu.concatenate %124, %125 in 0 : vector<4x512xf32>, vector<4x512xf32> -> vector<8x512xf32>
    %c0_118 = arith.constant 0 : index
    %c0_119 = arith.constant 0 : index
    %127 = vector.load %arg6[%c0_118, %c0_119] : memref<112x512xf32, #tpu.memory_space<vmem>>, vector<8x512xf32>
    %128 = arith.mulf %126, %127 : vector<8x512xf32>
    %c0_120 = arith.constant 0 : index
    %c0_121 = arith.constant 0 : index
    %129 = vector.load %arg8[%c0_120, %c0_121] : memref<112x512xf32, #tpu.memory_space<vmem>>, vector<8x512xf32>
    tpu.vector_store %arg8[%c0_120, %c0_121], %128 {strides = array<i32>} : memref<112x512xf32, #tpu.memory_space<vmem>>, vector<8x512xf32>,
    %c0_122 = arith.constant 0 : index
    %c57_123 = arith.constant 57 : index
    %130 = vector.load %arg9[%c0_122, %c57_123] : memref<4x768xf32, #tpu.memory_space<vmem>>, vector<4x512xf32>
    %c0_124 = arith.constant 0 : index
    %c63_125 = arith.constant 63 : index
    %131 = vector.load %arg9[%c0_124, %c63_125] : memref<4x768xf32, #tpu.memory_space<vmem>>, vector<4x512xf32>
    %132 = tpu.concatenate %130, %131 in 0 : vector<4x512xf32>, vector<4x512xf32> -> vector<8x512xf32>
    %c8_126 = arith.constant 8 : index
    %c0_127 = arith.constant 0 : index
    %133 = vector.load %arg6[%c8_126, %c0_127] : memref<112x512xf32, #tpu.memory_space<vmem>>, vector<8x512xf32>
    %134 = arith.mulf %132, %133 : vector<8x512xf32>
    %c8_128 = arith.constant 8 : index
    %c0_129 = arith.constant 0 : index
    %135 = vector.load %arg8[%c8_128, %c0_129] : memref<112x512xf32, #tpu.memory_space<vmem>>, vector<8x512xf32>
    tpu.vector_store %arg8[%c8_128, %c0_129], %134 {strides = array<i32>} : memref<112x512xf32, #tpu.memory_space<vmem>>, vector<8x512xf32>,
    %c0_130 = arith.constant 0 : index
    %c64_131 = arith.constant 64 : index
    %136 = vector.load %arg9[%c0_130, %c64_131] : memref<4x768xf32, #tpu.memory_space<vmem>>, vector<4x512xf32>
    %c0_132 = arith.constant 0 : index
    %c65_133 = arith.constant 65 : index
    %137 = vector.load %arg9[%c0_132, %c65_133] : memref<4x768xf32, #tpu.memory_space<vmem>>, vector<4x512xf32>
    %138 = tpu.concatenate %136, %137 in 0 : vector<4x512xf32>, vector<4x512xf32> -> vector<8x512xf32>
    %c16_134 = arith.constant 16 : index
    %c0_135 = arith.constant 0 : index
    %139 = vector.load %arg6[%c16_134, %c0_135] : memref<112x512xf32, #tpu.memory_space<vmem>>, vector<8x512xf32>
    %140 = arith.mulf %138, %139 : vector<8x512xf32>
    %c16_136 = arith.constant 16 : index
    %c0_137 = arith.constant 0 : index
    %141 = vector.load %arg8[%c16_136, %c0_137] : memref<112x512xf32, #tpu.memory_space<vmem>>, vector<8x512xf32>
    tpu.vector_store %arg8[%c16_136, %c0_137], %140 {strides = array<i32>} : memref<112x512xf32, #tpu.memory_space<vmem>>, vector<8x512xf32>,
    %c0_138 = arith.constant 0 : index
    %c71_139 = arith.constant 71 : index
    %142 = vector.load %arg9[%c0_138, %c71_139] : memref<4x768xf32, #tpu.memory_space<vmem>>, vector<4x512xf32>
    %c0_140 = arith.constant 0 : index
    %c72_141 = arith.constant 72 : index
    %143 = vector.load %arg9[%c0_140, %c72_141] : memref<4x768xf32, #tpu.memory_space<vmem>>, vector<4x512xf32>
    %144 = tpu.concatenate %142, %143 in 0 : vector<4x512xf32>, vector<4x512xf32> -> vector<8x512xf32>
    %c24_142 = arith.constant 24 : index
    %c0_143 = arith.constant 0 : index
    %145 = vector.load %arg6[%c24_142, %c0_143] : memref<112x512xf32, #tpu.memory_space<vmem>>, vector<8x512xf32>
    %146 = arith.mulf %144, %145 : vector<8x512xf32>
    %c24_144 = arith.constant 24 : index
    %c0_145 = arith.constant 0 : index
    %147 = vector.load %arg8[%c24_144, %c0_145] : memref<112x512xf32, #tpu.memory_space<vmem>>, vector<8x512xf32>
    tpu.vector_store %arg8[%c24_144, %c0_145], %146 {strides = array<i32>} : memref<112x512xf32, #tpu.memory_space<vmem>>, vector<8x512xf32>,
    %c0_146 = arith.constant 0 : index
    %c73_147 = arith.constant 73 : index
    %148 = vector.load %arg9[%c0_146, %c73_147] : memref<4x768xf32, #tpu.memory_space<vmem>>, vector<4x512xf32>
    %c0_148 = arith.constant 0 : index
    %c119_149 = arith.constant 119 : index
    %149 = vector.load %arg9[%c0_148, %c119_149] : memref<4x768xf32, #tpu.memory_space<vmem>>, vector<4x512xf32>
    %150 = tpu.concatenate %148, %149 in 0 : vector<4x512xf32>, vector<4x512xf32> -> vector<8x512xf32>
    %c32_150 = arith.constant 32 : index
    %c0_151 = arith.constant 0 : index
    %151 = vector.load %arg6[%c32_150, %c0_151] : memref<112x512xf32, #tpu.memory_space<vmem>>, vector<8x512xf32>
    %152 = arith.mulf %150, %151 : vector<8x512xf32>
    %c32_152 = arith.constant 32 : index
    %c0_153 = arith.constant 0 : index
    %153 = vector.load %arg8[%c32_152, %c0_153] : memref<112x512xf32, #tpu.memory_space<vmem>>, vector<8x512xf32>
    tpu.vector_store %arg8[%c32_152, %c0_153], %152 {strides = array<i32>} : memref<112x512xf32, #tpu.memory_space<vmem>>, vector<8x512xf32>,
    %c0_154 = arith.constant 0 : index
    %c120_155 = arith.constant 120 : index
    %154 = vector.load %arg9[%c0_154, %c120_155] : memref<4x768xf32, #tpu.memory_space<vmem>>, vector<4x512xf32>
    %c0_156 = arith.constant 0 : index
    %c121_157 = arith.constant 121 : index
    %155 = vector.load %arg9[%c0_156, %c121_157] : memref<4x768xf32, #tpu.memory_space<vmem>>, vector<4x512xf32>
    %156 = tpu.concatenate %154, %155 in 0 : vector<4x512xf32>, vector<4x512xf32> -> vector<8x512xf32>
    %c40_158 = arith.constant 40 : index
    %c0_159 = arith.constant 0 : index
    %157 = vector.load %arg6[%c40_158, %c0_159] : memref<112x512xf32, #tpu.memory_space<vmem>>, vector<8x512xf32>
    %158 = arith.mulf %156, %157 : vector<8x512xf32>
    %c40_160 = arith.constant 40 : index
    %c0_161 = arith.constant 0 : index
    %159 = vector.load %arg8[%c40_160, %c0_161] : memref<112x512xf32, #tpu.memory_space<vmem>>, vector<8x512xf32>
    tpu.vector_store %arg8[%c40_160, %c0_161], %158 {strides = array<i32>} : memref<112x512xf32, #tpu.memory_space<vmem>>, vector<8x512xf32>,
    %c0_162 = arith.constant 0 : index
    %c127_163 = arith.constant 127 : index
    %160 = vector.load %arg9[%c0_162, %c127_163] : memref<4x768xf32, #tpu.memory_space<vmem>>, vector<4x512xf32>
    %c0_164 = arith.constant 0 : index
    %c128_165 = arith.constant 128 : index
    %161 = vector.load %arg9[%c0_164, %c128_165] : memref<4x768xf32, #tpu.memory_space<vmem>>, vector<4x512xf32>
    %162 = tpu.concatenate %160, %161 in 0 : vector<4x512xf32>, vector<4x512xf32> -> vector<8x512xf32>
    %c48_166 = arith.constant 48 : index
    %c0_167 = arith.constant 0 : index
    %163 = vector.load %arg6[%c48_166, %c0_167] : memref<112x512xf32, #tpu.memory_space<vmem>>, vector<8x512xf32>
    %164 = arith.mulf %162, %163 : vector<8x512xf32>
    %c48_168 = arith.constant 48 : index
    %c0_169 = arith.constant 0 : index
    %165 = vector.load %arg8[%c48_168, %c0_169] : memref<112x512xf32, #tpu.memory_space<vmem>>, vector<8x512xf32>
    tpu.vector_store %arg8[%c48_168, %c0_169], %164 {strides = array<i32>} : memref<112x512xf32, #tpu.memory_space<vmem>>, vector<8x512xf32>,
    %c0_170 = arith.constant 0 : index
    %c129_171 = arith.constant 129 : index
    %166 = vector.load %arg9[%c0_170, %c129_171] : memref<4x768xf32, #tpu.memory_space<vmem>>, vector<4x512xf32>
    %c0_172 = arith.constant 0 : index
    %c135_173 = arith.constant 135 : index
    %167 = vector.load %arg9[%c0_172, %c135_173] : memref<4x768xf32, #tpu.memory_space<vmem>>, vector<4x512xf32>
    %168 = tpu.concatenate %166, %167 in 0 : vector<4x512xf32>, vector<4x512xf32> -> vector<8x512xf32>
    %c56_174 = arith.constant 56 : index
    %c0_175 = arith.constant 0 : index
    %169 = vector.load %arg6[%c56_174, %c0_175] : memref<112x512xf32, #tpu.memory_space<vmem>>, vector<8x512xf32>
    %170 = arith.mulf %168, %169 : vector<8x512xf32>
    %c56_176 = arith.constant 56 : index
    %c0_177 = arith.constant 0 : index
    %171 = vector.load %arg8[%c56_176, %c0_177] : memref<112x512xf32, #tpu.memory_space<vmem>>, vector<8x512xf32>
    tpu.vector_store %arg8[%c56_176, %c0_177], %170 {strides = array<i32>} : memref<112x512xf32, #tpu.memory_space<vmem>>, vector<8x512xf32>,
    %c0_178 = arith.constant 0 : index
    %c136_179 = arith.constant 136 : index
    %172 = vector.load %arg9[%c0_178, %c136_179] : memref<4x768xf32, #tpu.memory_space<vmem>>, vector<4x512xf32>
    %c0_180 = arith.constant 0 : index
    %c137_181 = arith.constant 137 : index
    %173 = vector.load %arg9[%c0_180, %c137_181] : memref<4x768xf32, #tpu.memory_space<vmem>>, vector<4x512xf32>
    %174 = tpu.concatenate %172, %173 in 0 : vector<4x512xf32>, vector<4x512xf32> -> vector<8x512xf32>
    %c64_182 = arith.constant 64 : index
    %c0_183 = arith.constant 0 : index
    %175 = vector.load %arg6[%c64_182, %c0_183] : memref<112x512xf32, #tpu.memory_space<vmem>>, vector<8x512xf32>
    %176 = arith.mulf %174, %175 : vector<8x512xf32>
    %c64_184 = arith.constant 64 : index
    %c0_185 = arith.constant 0 : index
    %177 = vector.load %arg8[%c64_184, %c0_185] : memref<112x512xf32, #tpu.memory_space<vmem>>, vector<8x512xf32>
    tpu.vector_store %arg8[%c64_184, %c0_185], %176 {strides = array<i32>} : memref<112x512xf32, #tpu.memory_space<vmem>>, vector<8x512xf32>,
    %c0_186 = arith.constant 0 : index
    %c183_187 = arith.constant 183 : index
    %178 = vector.load %arg9[%c0_186, %c183_187] : memref<4x768xf32, #tpu.memory_space<vmem>>, vector<4x512xf32>
    %c0_188 = arith.constant 0 : index
    %c184_189 = arith.constant 184 : index
    %179 = vector.load %arg9[%c0_188, %c184_189] : memref<4x768xf32, #tpu.memory_space<vmem>>, vector<4x512xf32>
    %180 = tpu.concatenate %178, %179 in 0 : vector<4x512xf32>, vector<4x512xf32> -> vector<8x512xf32>
    %c72_190 = arith.constant 72 : index
    %c0_191 = arith.constant 0 : index
    %181 = vector.load %arg6[%c72_190, %c0_191] : memref<112x512xf32, #tpu.memory_space<vmem>>, vector<8x512xf32>
    %182 = arith.mulf %180, %181 : vector<8x512xf32>
    %c72_192 = arith.constant 72 : index
    %c0_193 = arith.constant 0 : index
    %183 = vector.load %arg8[%c72_192, %c0_193] : memref<112x512xf32, #tpu.memory_space<vmem>>, vector<8x512xf32>
    tpu.vector_store %arg8[%c72_192, %c0_193], %182 {strides = array<i32>} : memref<112x512xf32, #tpu.memory_space<vmem>>, vector<8x512xf32>,
    %c0_194 = arith.constant 0 : index
    %c185_195 = arith.constant 185 : index
    %184 = vector.load %arg9[%c0_194, %c185_195] : memref<4x768xf32, #tpu.memory_space<vmem>>, vector<4x512xf32>
    %c0_196 = arith.constant 0 : index
    %c191_197 = arith.constant 191 : index
    %185 = vector.load %arg9[%c0_196, %c191_197] : memref<4x768xf32, #tpu.memory_space<vmem>>, vector<4x512xf32>
    %186 = tpu.concatenate %184, %185 in 0 : vector<4x512xf32>, vector<4x512xf32> -> vector<8x512xf32>
    %c80_198 = arith.constant 80 : index
    %c0_199 = arith.constant 0 : index
    %187 = vector.load %arg6[%c80_198, %c0_199] : memref<112x512xf32, #tpu.memory_space<vmem>>, vector<8x512xf32>
    %188 = arith.mulf %186, %187 : vector<8x512xf32>
    %c80_200 = arith.constant 80 : index
    %c0_201 = arith.constant 0 : index
    %189 = vector.load %arg8[%c80_200, %c0_201] : memref<112x512xf32, #tpu.memory_space<vmem>>, vector<8x512xf32>
    tpu.vector_store %arg8[%c80_200, %c0_201], %188 {strides = array<i32>} : memref<112x512xf32, #tpu.memory_space<vmem>>, vector<8x512xf32>,
    %c0_202 = arith.constant 0 : index
    %c192_203 = arith.constant 192 : index
    %190 = vector.load %arg9[%c0_202, %c192_203] : memref<4x768xf32, #tpu.memory_space<vmem>>, vector<4x512xf32>
    %c0_204 = arith.constant 0 : index
    %c193_205 = arith.constant 193 : index
    %191 = vector.load %arg9[%c0_204, %c193_205] : memref<4x768xf32, #tpu.memory_space<vmem>>, vector<4x512xf32>
    %192 = tpu.concatenate %190, %191 in 0 : vector<4x512xf32>, vector<4x512xf32> -> vector<8x512xf32>
    %c88_206 = arith.constant 88 : index
    %c0_207 = arith.constant 0 : index
    %193 = vector.load %arg6[%c88_206, %c0_207] : memref<112x512xf32, #tpu.memory_space<vmem>>, vector<8x512xf32>
    %194 = arith.mulf %192, %193 : vector<8x512xf32>
    %c88_208 = arith.constant 88 : index
    %c0_209 = arith.constant 0 : index
    %195 = vector.load %arg8[%c88_208, %c0_209] : memref<112x512xf32, #tpu.memory_space<vmem>>, vector<8x512xf32>
    tpu.vector_store %arg8[%c88_208, %c0_209], %194 {strides = array<i32>} : memref<112x512xf32, #tpu.memory_space<vmem>>, vector<8x512xf32>,
    %c0_210 = arith.constant 0 : index
    %c199_211 = arith.constant 199 : index
    %196 = vector.load %arg9[%c0_210, %c199_211] : memref<4x768xf32, #tpu.memory_space<vmem>>, vector<4x512xf32>
    %c0_212 = arith.constant 0 : index
    %c200_213 = arith.constant 200 : index
    %197 = vector.load %arg9[%c0_212, %c200_213] : memref<4x768xf32, #tpu.memory_space<vmem>>, vector<4x512xf32>
    %198 = tpu.concatenate %196, %197 in 0 : vector<4x512xf32>, vector<4x512xf32> -> vector<8x512xf32>
    %c96_214 = arith.constant 96 : index
    %c0_215 = arith.constant 0 : index
    %199 = vector.load %arg6[%c96_214, %c0_215] : memref<112x512xf32, #tpu.memory_space<vmem>>, vector<8x512xf32>
    %200 = arith.mulf %198, %199 : vector<8x512xf32>
    %c96_216 = arith.constant 96 : index
    %c0_217 = arith.constant 0 : index
    %201 = vector.load %arg8[%c96_216, %c0_217] : memref<112x512xf32, #tpu.memory_space<vmem>>, vector<8x512xf32>
    tpu.vector_store %arg8[%c96_216, %c0_217], %200 {strides = array<i32>} : memref<112x512xf32, #tpu.memory_space<vmem>>, vector<8x512xf32>,
    %c0_218 = arith.constant 0 : index
    %c201_219 = arith.constant 201 : index
    %202 = vector.load %arg9[%c0_218, %c201_219] : memref<4x768xf32, #tpu.memory_space<vmem>>, vector<4x512xf32>
    %cst_220 = arith.constant 0.000000e+00 : f32
    %203 = vector.broadcast %cst_220 : f32 to vector<4x512xf32>
    %204 = tpu.concatenate %202, %203 in 0 : vector<4x512xf32>, vector<4x512xf32> -> vector<8x512xf32>
    %c104_221 = arith.constant 104 : index
    %c0_222 = arith.constant 0 : index
    %205 = vector.load %arg6[%c104_221, %c0_222] : memref<112x512xf32, #tpu.memory_space<vmem>>, vector<8x512xf32>
    %206 = arith.mulf %204, %205 : vector<8x512xf32>
    %c104_223 = arith.constant 104 : index
    %c0_224 = arith.constant 0 : index
    %207 = vector.load %arg8[%c104_223, %c0_224] : memref<112x512xf32, #tpu.memory_space<vmem>>, vector<8x512xf32>
    tpu.vector_store %arg8[%c104_223, %c0_224], %206 {strides = array<i32>} : memref<112x512xf32, #tpu.memory_space<vmem>>, vector<8x512xf32>,
    %c0_225 = arith.constant 0 : index
    %c0_226 = arith.constant 0 : index
    %208 = vector.load %arg4[%c0_225, %c0_226] : memref<4x112xf32, #tpu.memory_space<vmem>>, vector<4x112xf32>
    %c0_227 = arith.constant 0 : index
    %c0_228 = arith.constant 0 : index
    %209 = vector.load %arg8[%c0_227, %c0_228] : memref<112x512xf32, #tpu.memory_space<vmem>>, vector<112x512xf32>
    %cst_229 = arith.constant dense<0.000000e+00> : vector<4x512xf32>
    %210 = tpu.matmul %208, %209, %cst_229 {dimension_numbers = #tpu.dot_dimension_numbers<[1], [0], [0], [1], [0, 0, 1, 1], [], []>} : vector<4x112xf32>, vector<112x512xf32>, vector<4x512xf32> -> vector<4x512xf32>
    %c0_230 = arith.constant 0 : index
    %c0_231 = arith.constant 0 : index
    %211 = vector.load %arg5[%c0_230, %c0_231] : memref<4x1xf32, #tpu.memory_space<vmem>>, vector<4x1xf32>
    %212 = vector.broadcast %211 : vector<4x1xf32> to vector<4x512xf32>
    %213 = arith.addf %210, %212 : vector<4x512xf32>
    %c0_232 = arith.constant 0 : index
    %c0_233 = arith.constant 0 : index
    %c128_234 = arith.constant 128 : index
    %214 = vector.load %arg1[%c0_232, %c0_233, %c128_234] : memref<1x4x768xf32, #tpu.memory_space<vmem>>, vector<1x4x512xf32>
    %215 = vector.shape_cast %214 : vector<1x4x512xf32> to vector<4x512xf32>
    %216 = arith.addf %213, %215 : vector<4x512xf32>
    %c0_235 = arith.constant 0 : index
    %c0_236 = arith.constant 0 : index
    %c0_237 = arith.constant 0 : index
    %217 = vector.load %arg7[%c0_235, %c0_236, %c0_237] : memref<1x4x512xf32, #tpu.memory_space<vmem>>, vector<1x4x512xf32>
    %218 = vector.shape_cast %217 : vector<1x4x512xf32> to vector<4x512xf32>
    %219 = vector.shape_cast %216 : vector<4x512xf32> to vector<1x4x512xf32>
    tpu.vector_store %arg7[%c0_235, %c0_236, %c0_237], %219 {strides = array<i32>} : memref<1x4x512xf32, #tpu.memory_space<vmem>>, vector<1x4x512xf32>,
    return
  }
  func.func @transform_0(%arg0: i32) -> (i32, i32, i32) {
    %c0_i32 = arith.constant 0 : i32
    %c0_i32_0 = arith.constant 0 : i32
    %c0_i32_1 = arith.constant 0 : i32
    return %arg0, %c0_i32, %c0_i32_0 : i32, i32, i32
  }
  func.func @transform_1(%arg0: i32) -> (i32, i32) {
    %c0_i32 = arith.constant 0 : i32
    %c0_i32_0 = arith.constant 0 : i32
    %c0_i32_1 = arith.constant 0 : i32
    return %c0_i32, %c0_i32_0 : i32, i32
  }
  func.func @transform_2(%arg0: i32) -> (i32, i32) {
    %c0_i32 = arith.constant 0 : i32
    %c0_i32_0 = arith.constant 0 : i32
    %c0_i32_1 = arith.constant 0 : i32
    return %c0_i32, %c0_i32_0 : i32, i32
  }
  func.func @transform_3(%arg0: i32) -> (i32, i32) {
    %c0_i32 = arith.constant 0 : i32
    %c0_i32_0 = arith.constant 0 : i32
    %c0_i32_1 = arith.constant 0 : i32
    return %c0_i32, %c0_i32_0 : i32, i32
  }
  func.func @transform_4(%arg0: i32) -> (i32, i32) {
    %c0_i32 = arith.constant 0 : i32
    %c0_i32_0 = arith.constant 0 : i32
    %c0_i32_1 = arith.constant 0 : i32
    return %c0_i32, %c0_i32_0 : i32, i32
  }
  func.func @transform_5(%arg0: i32) -> (i32, i32) {
    %c0_i32 = arith.constant 0 : i32
    %c0_i32_0 = arith.constant 0 : i32
    %c0_i32_1 = arith.constant 0 : i32
    return %c0_i32, %c0_i32_0 : i32, i32
  }
  func.func @transform_6(%arg0: i32) -> (i32, i32, i32) {
    %c0_i32 = arith.constant 0 : i32
    %c0_i32_0 = arith.constant 0 : i32
    %c0_i32_1 = arith.constant 0 : i32
    return %arg0, %c0_i32, %c0_i32_0 : i32, i32, i32
  }
}

</mosaic_0001>

<bundles_post_ra>
// kernel: resblock_3d_forward.1
= control target key start
LH: loop header
LB: loop body
LE: loop exit
PB: predicated region body
PF: predicated region fallthrough
CT: control target
= control target key end

     0   :  { %s3119_s25 = smov 127   ;;  %s3120_s30 = smov 55   ;;  %vm48_vm0 = vcmask 1039360   ;;  %vm58_vm1 = vcmask 1043456   ;;  %vm80_vm2 = vcmask 449536   ;;  %vm145_vm3 = vcmask 998400   ;;  %s5597_s0 = inlined_call_operand.vmem [shape: f32[1,4,768], index: 0, kind: input, shape index: {}]   ;;  %s5598_s5 = inlined_call_operand.vmem [shape: f32[112,512], index: 5, kind: input, shape index: {}]   ;;  %s5599_s2 = inlined_call_operand.vmem [shape: f32[4,1], index: 2, kind: input, shape index: {}]   ;;  %s5600_s1 = inlined_call_operand.vmem [shape: f32[4,112], index: 1, kind: input, shape index: {}]   ;;  %s5601_s4 = inlined_call_operand.vmem [shape: f32[4,1], index: 4, kind: input, shape index: {}]   ;;  %s5602_s3 = inlined_call_operand.vmem [shape: f32[4,112], index: 3, kind: input, shape index: {}]   ;;  %s5603_s6 = inlined_call_operand.vmem [shape: f32[1,4,512], index: 6, kind: output, shape index: {}]  }
   0x1   :  { %v3170_v0 = vld [vmem:[%s5597_s0 + $0x8] sm:$0xff]  ;;  %v3175_v1 = vld [vmem:[%s5597_s0] sm:$0xff]  ;;  %v3192_v4 = vld [vmem:[%s5597_s0 + $0x10] sm:$0xf]  ;;  %s3121_s13 = smov 122   ;;  %s3122_s18 = smov 57  }
   0x2   :  { %44 = vrot.lane.b32.xlu1 %v3170_v0, %s3119_s25  ;;  %40 = vrot.lane.b32.xlu0 %v3175_v1, %s3119_s25  ;;  %v3183_v2 = vcombine.low %v3170_v0, %v3170_v0  ;;  %v3187_v3 = vcombine.low %v3175_v1, %v3175_v1  ;;  %v37_v5 = vcombine.low %v3192_v4, %v3192_v4  ;;  %v64_v6 = vld [vmem:[%s5598_s5] sm:$0xff]  ;;  %v66_v7 = vld [vmem:[%s5598_s5 + $0x10] sm:$0xff]  ;;  %s3123_s28 = smov 73   ;;  %s3124_s20 = smov 71   ;;  %vm176_vm4 = vcmask 465920  }
   0x3   :  { %v65_v8 = vld [vmem:[%s5598_s5 + $0x8] sm:$0xff]  ;;  %v67_v9 = vld [vmem:[%s5598_s5 + $0x18] sm:$0xff]  ;;  %v160_v10 = vld [vmem:[%s5598_s5 + $0x20] sm:$0xff]  ;;  %s3125_s15 = smov 64   ;;  %v3389_v48 = vcombine.high %v3175_v1, %v3175_v1  ;;  %v3394_v51 = vcombine.high %v3170_v0, %v3170_v0  ;;  %s3126_s8 = smov 8   ;;  %vm109_vm5 = vcmask 596992  }
   0x4   :  { %v3229_v11 = vld [vmem:[%s5597_s0 + $0x10] sm:$0xf]  ;;  %v161_v14 = vld [vmem:[%s5598_s5 + $0x28] sm:$0xff]  ;;  %v163_v15 = vld [vmem:[%s5598_s5 + $0x38] sm:$0xff]  ;;  %s3127_s21 = smov 1   ;;  %s3128_s29 = smov 120  }
   0x5   :  { %v134_v12 = vcombine.low %v3229_v11, %v3229_v11  ;;  %v162_v13 = vld [vmem:[%s5598_s5 + $0x30] sm:$0xff]  ;;  %v1259_v18 = vld [vmem:[%s5598_s5 + $0x1a0] sm:$0xff]  ;;  %v1262_v19 = vld [vmem:[%s5598_s5 + $0x1b8] sm:$0xff]  ;;  %5647 = vst [vmem:[#allocation4_spill] sm:$0xff] %v3389_v48  ;;  %s3129_s10 = smov 82   ;;  %vm205_vm6 = vcmask 580608  }
   0x6   :  { %42 = vrot.lane.b32.xlu1 %v3183_v2, %s3119_s25  ;;  %38 = vrot.lane.b32.xlu0 %v3187_v3, %s3119_s25  ;;  %v1261_v16 = vld [vmem:[%s5598_s5 + $0x1b0] sm:$0xff]  ;;  %v3281_v21 = vld [vmem:[%s5597_s0 + $0x4] sm:$0xff]  ;;  %5648 = vst [vmem:[#allocation5_spill] sm:$0xff] %v3394_v51  ;;  %vm271_vm7 = vcmask 523264   ;;  %vm581_vm8 = vcmask 64512   ;;  %vm674_vm9 = vcmask 7168  }
   0x7   :  { %v3258_v17 = vld [vmem:[%s5597_s0 + $0xc] sm:$0xff]  ;;  %v3276_v20 = vld [vmem:[%s5597_s0 + $0x14] sm:$0xf]  ;;  %v3305_v26 = vcombine.low %v3281_v21, %v3281_v21  ;;  %v1192_v27 = vld [vmem:[%s5598_s5 + $0x198] sm:$0xff]  ;;  %vm552_vm10 = vcmask 982016   ;;  %vm428_vm11 = vcmask 670720  }
   0x8   :  { %v1164_v22 = vcombine.low %v3276_v20, %v3276_v20  ;;  %v1191_v23 = vld [vmem:[%s5598_s5 + $0x190] sm:$0xff]  ;;  %v1260_v24 = vld [vmem:[%s5598_s5 + $0x1a8] sm:$0xff]  ;;  %v3299_v25 = vcombine.low %v3258_v17, %v3258_v17  ;;  %v1189_v31 = vld [vmem:[%s5598_s5 + $0x180] sm:$0xff]  ;;  %vm1378_vm12 = vcmask 916480  }
   0x9   :  { %v3317_v28 = vld [vmem:[%s5597_s0 + $0x14] sm:$0xf]  ;;  %v1190_v29 = vld [vmem:[%s5598_s5 + $0x188] sm:$0xff]  ;;  %v1099_v32 = vld [vmem:[%s5598_s5 + $0x178] sm:$0xff] }
   0xa   :  { %72 = vrot.lane.b32.xlu1 %v64_v6, %s3120_s30  ;;  %46 = vrot.lane.b32.xlu0 %v37_v5, %s3119_s25  ;;  %v1071_v30 = vcombine.low %v3317_v28, %v3317_v28  ;;  %v3338_v33 = vld [vmem:[%s5597_s0 + $0x14] sm:$0xf]  ;;  %v1096_v36 = vld [vmem:[%s5598_s5 + $0x160] sm:$0xff] }
   0xb   :  { %v978_v34 = vcombine.low %v3338_v33, %v3338_v33  ;;  %v1098_v35 = vld [vmem:[%s5598_s5 + $0x170] sm:$0xff]  ;;  %v1097_v38 = vld [vmem:[%s5598_s5 + $0x168] sm:$0xff]  ;;  %v1006_v39 = vld [vmem:[%s5598_s5 + $0x158] sm:$0xff] }
   0xc   :  { %v1005_v37 = vld [vmem:[%s5598_s5 + $0x150] sm:$0xff] }
   0xd   :  { %v3381_v40 = vld [vmem:[%s5597_s0 + $0x14] sm:$0xf] }
   0xe   :  { %76 = vrot.lane.b32.xlu1 %v66_v7, %s3120_s30  ;;  %74 = vrot.lane.b32.xlu0 %v65_v8, %s3120_s30  ;;  %v885_v41 = vcombine.low %v3381_v40, %v3381_v40 }
  0x12   :  { %137 = vrot.lane.b32.xlu1 %v3175_v1, %s3121_s13  ;;  %78 = vrot.lane.b32.xlu0 %v67_v9, %s3120_s30 }
  0x16   :  { %141 = vrot.lane.b32.xlu1 %v3170_v0, %s3121_s13  ;;  %135 = vrot.lane.b32.xlu0 %v3187_v3, %s3121_s13 }
  0x1a   :  { %168 = vrot.lane.b32.xlu1 %v160_v10, %s3122_s18  ;;  %139 = vrot.lane.b32.xlu0 %v3183_v2, %s3121_s13 }
  0x1e   :  { %143 = vrot.lane.b32.xlu0 %v134_v12, %s3121_s13  ;;  %172 = vrot.lane.b32.xlu1 %v162_v13, %s3122_s18 }
  0x22   :  { %170 = vrot.lane.b32.xlu0 %v161_v14, %s3122_s18  ;;  %233 = vrot.lane.b32.xlu1 %v3175_v1, %s3119_s25 }
  0x26   :  { %174 = vrot.lane.b32.xlu0 %v163_v15, %s3122_s18  ;;  %1271 = vrot.lane.b32.xlu1 %v1261_v16, %s3123_s28 }
  0x2a   :  { %231 = vrot.lane.b32.xlu0 %v3187_v3, %s3119_s25  ;;  %1171 = vrot.lane.b32.xlu1 %v3258_v17, %s3119_s25 }
  0x2e   :  { %235 = vrot.lane.b32.xlu0 %v3183_v2, %s3119_s25  ;;  %1267 = vrot.lane.b32.xlu1 %v1259_v18, %s3123_s28 }
  0x32   :  { %1273 = vrot.lane.b32.xlu0 %v1262_v19, %s3123_s28  ;;  %1167 = vrot.lane.b32.xlu1 %v3281_v21, %s3119_s25 }
  0x36   :  { %1173 = vrot.lane.b32.xlu0 %v1164_v22, %s3119_s25  ;;  %1201 = vrot.lane.b32.xlu1 %v1191_v23, %s3124_s20 }
  0x3a   :  { %1269 = vrot.lane.b32.xlu0 %v1260_v24, %s3123_s28  ;;  %1078 = vrot.lane.b32.xlu1 %v3258_v17, %s3119_s25 }
  0x3e   :  { %1169 = vrot.lane.b32.xlu0 %v3299_v25, %s3119_s25  ;;  %1165 = vrot.lane.b32.xlu1 %v3305_v26, %s3119_s25 }
  0x42   :  { %1203 = vrot.lane.b32.xlu0 %v1192_v27, %s3124_s20  ;;  %1199 = vrot.lane.b32.xlu1 %v1190_v29, %s3124_s20 }
  0x46   :  { %1080 = vrot.lane.b32.xlu0 %v1071_v30, %s3119_s25  ;;  %1076 = vrot.lane.b32.xlu1 %v3299_v25, %s3119_s25 }
  0x4a   :  { %1197 = vrot.lane.b32.xlu0 %v1189_v31, %s3124_s20  ;;  %1110 = vrot.lane.b32.xlu1 %v1099_v32, %s3125_s15 }
  0x4e   :  { %1074 = vrot.lane.b32.xlu0 %v3281_v21, %s3119_s25  ;;  %987 = vrot.lane.b32.xlu1 %v978_v34, %s3121_s13  ;;  %v1003_v34 = vld [vmem:[%s5598_s5 + $0x140] sm:$0xff] }
  0x52   :  { %1108 = vrot.lane.b32.xlu0 %v1098_v35, %s3125_s15  ;;  %1104 = vrot.lane.b32.xlu1 %v1096_v36, %s3125_s15 }
  0x56   :  { %985 = vrot.lane.b32.xlu0 %v3258_v17, %s3121_s13  ;;  %981 = vrot.lane.b32.xlu1 %v3281_v21, %s3121_s13 }
  0x5a   :  { %1072 = vrot.lane.b32.xlu0 %v3305_v26, %s3119_s25  ;;  %1015 = vrot.lane.b32.xlu1 %v1005_v37, %s3122_s18 }
  0x5e   :  { %1106 = vrot.lane.b32.xlu0 %v1097_v38, %s3125_s15  ;;  %892 = vrot.lane.b32.xlu1 %v3258_v17, %s3119_s25 }
  0x62   :  { %983 = vrot.lane.b32.xlu0 %v3299_v25, %s3121_s13  ;;  %979 = vrot.lane.b32.xlu1 %v3305_v26, %s3121_s13 }
  0x66   :  { %1017 = vrot.lane.b32.xlu0 %v1006_v39, %s3122_s18 }
  0x6a   :  { %894 = vrot.lane.b32.xlu0 %v885_v41, %s3119_s25 }
  0x74   :  { %v45_v42 = vpop.permute.xlu1 %44  ;;  %v41_v43 = vpop.permute.xlu0 %40 }
  0x78   :  { %v43_v44 = vpop.permute.xlu1 %42  ;;  %v39_v45 = vpop.permute.xlu0 %38 }
  0x79   :  { %v50_v49 = vsel %vm48_vm0, %v41_v43, %v43_v44  ;;  %v49_v22 = vsel %vm48_vm0, %v39_v45, %v41_v43  ;;  %v51_v30 = vsel %vm48_vm0, %v43_v44, %v45_v42  ;;  %v912_v44 = vld [vmem:[%s5598_s5 + $0x130] sm:$0xff] }
  0x7a   :  { %v60_v53 = vsel %vm58_vm1, %v3389_v48, %v50_v49  ;;  %v61_v36 = vsel %vm58_vm1, %v3170_v0, %v51_v30 }
  0x7c   :  { %v73_v46 = vpop.permute.xlu1 %72  ;;  %v47_v47 = vpop.permute.xlu0 %46 }
  0x7d   :  { %v52_v54 = vsel %vm48_vm0, %v45_v42, %v47_v47  ;;  %v63_v57 = vsel %vm58_vm1, %v3192_v4, %v47_v47 }
  0x7e   :  { %v62_v61 = vsel %vm58_vm1, %v3394_v51, %v52_v54 }
  0x80   :  { %v75_v50 = vpop.permute.xlu0 %74  ;;  %v77_v55 = vpop.permute.xlu1 %76 }
  0x81   :  { %v81_v52 = vsel %vm80_vm2, %v73_v46, %v75_v50  ;;  %v82_v35 = vsel %vm80_vm2, %v75_v50, %v77_v55 }
  0x82   :  { %v90_v56 = vmul.f32 %v81_v52, %v60_v53  ;;  %v91_v38 = vmul.f32 %v82_v35, %v61_v36  ;;  %v1004_v53 = vld [vmem:[%s5598_s5 + $0x148] sm:$0xff]  ;;  %v724_v35 = vld [vmem:[%s5598_s5 + $0xe0] sm:$0xff] }
  0x84   :  { %v79_v58 = vpop.permute.xlu0 %78  ;;  %101 = vrot.lane.b32.xlu0 %v90_v56, %s3123_s28  ;;  %v138_v63 = vpop.permute.xlu1 %137 }
  0x85   :  { %v83_v59 = vsel %vm80_vm2, %v77_v55, %v79_v58  ;;  %v93_v60 = vmul.f32 %v79_v58, %v63_v57  ;;  %v911_v55 = vld [vmem:[%s5598_s5 + $0x128] sm:$0xff]  ;;  %v913_v57 = vld [vmem:[%s5598_s5 + $0x138] sm:$0xff] }
  0x86   :  { %v92_v62 = vmul.f32 %v83_v59, %v62_v61  ;;  %v3485_v59 = vld [vmem:[%s5597_s0 + $0x14] sm:$0xf] }
  0x87   :  { %107 = vrot.lane.b32.xlu1 %v93_v60, %s3123_s28  ;;  %v792_v61 = vcombine.low %v3485_v59, %v3485_v59 }
  0x88   :  { %v136_v5 = vpop.permute.xlu0 %135  ;;  %105 = vrot.lane.b32.xlu0 %v92_v62, %s3123_s28  ;;  %v142_v7 = vpop.permute.xlu1 %141  ;;  %v820_v62 = vld [vmem:[%s5598_s5 + $0x118] sm:$0xff] }
  0x89   :  { %v146_v37 = vsel %vm145_vm3, %v136_v5, %v138_v63 }
  0x8a   :  { %v155_v41 = vsel %vm58_vm1, %v3175_v1, %v146_v37 }
  0x8c   :  { %v140_v6 = vpop.permute.xlu0 %139  ;;  %v169_v9 = vpop.permute.xlu1 %168 }
  0x8d   :  { %v147_v4 = vsel %vm145_vm3, %v138_v63, %v140_v6  ;;  %v185_v42 = vmul.f32 %v169_v9, %v155_v41  ;;  %v148_v43 = vsel %vm145_vm3, %v140_v6, %v142_v7  ;;  %v3500_v63 = vld [vmem:[%s5597_s0 + $0x14] sm:$0xf]  ;;  %v910_v6 = vld [vmem:[%s5598_s5 + $0x120] sm:$0xff]  ;;  %v631_v41 = vld [vmem:[%s5598_s5 + $0xc8] sm:$0xff] }
  0x8e   :  { %v156_v13 = vsel %vm58_vm1, %v3389_v48, %v147_v4  ;;  %v157_v47 = vsel %vm58_vm1, %v3170_v0, %v148_v43 }
  0x90   :  { %v144_v8 = vpop.permute.xlu0 %143  ;;  %v173_v18 = vpop.permute.xlu1 %172 }
  0x91   :  { %v149_v14 = vsel %vm145_vm3, %v142_v7, %v144_v8  ;;  %v159_v16 = vsel %vm58_vm1, %v3229_v11, %v144_v8  ;;  %v59_v11 = vsel %vm58_vm1, %v3175_v1, %v49_v22  ;;  %v699_v7 = vcombine.low %v3500_v63, %v3500_v63 }
  0x92   :  { %v158_v27 = vsel %vm58_vm1, %v3394_v51, %v149_v14  ;;  %v89_v32 = vmul.f32 %v73_v46, %v59_v11  ;;  %v633_v11 = vld [vmem:[%s5598_s5 + $0xd8] sm:$0xff] }
  0x94   :  { %v171_v10 = vpop.permute.xlu0 %170  ;;  %v3447_v45 = vpop.permute.xlu1 %233 }
  0x95   :  { %v177_v12 = vsel %vm176_vm4, %v169_v9, %v171_v10  ;;  %5651 = vst [vmem:[#allocation8_spill] sm:$0xff] %v3447_v45  ;;  %v178_v46 = vsel %vm176_vm4, %v171_v10, %v173_v18  ;;  %v817_v9 = vld [vmem:[%s5598_s5 + $0x100] sm:$0xff] }
  0x96   :  { %v186_v15 = vmul.f32 %v177_v12, %v156_v13  ;;  %v187_v50 = vmul.f32 %v178_v46, %v157_v47  ;;  %v819_v12 = vld [vmem:[%s5598_s5 + $0x110] sm:$0xff]  ;;  %v539_v46 = vld [vmem:[%s5598_s5 + $0xb8] sm:$0xff] }
  0x98   :  { %v175_v19 = vpop.permute.xlu0 %174  ;;  %197 = vrot.lane.b32.xlu0 %v186_v15, %s3124_s20  ;;  %v3457_v52 = vpop.permute.xlu1 %1271  ;;  %v726_v15 = vld [vmem:[%s5598_s5 + $0xf0] sm:$0xff] }
  0x99   :  { %v179_v23 = vsel %vm176_vm4, %v173_v18, %v175_v19  ;;  %v189_v24 = vmul.f32 %v175_v19, %v159_v16  ;;  %v818_v19 = vld [vmem:[%s5598_s5 + $0x108] sm:$0xff] }
  0x9a   :  { %v188_v29 = vmul.f32 %v179_v23, %v158_v27 }
  0x9b   :  { %203 = vrot.lane.b32.xlu1 %v189_v24, %s3124_s20  ;;  %v725_v24 = vld [vmem:[%s5598_s5 + $0xe8] sm:$0xff] }
  0x9c   :  { %201 = vrot.lane.b32.xlu0 %v188_v29, %s3124_s20  ;;  %v3425_v31 = vpop.permute.xlu0 %231  ;;  %v3472_v56 = vpop.permute.xlu1 %1171  ;;  %v727_v29 = vld [vmem:[%s5598_s5 + $0xf8] sm:$0xff] }
  0x9d   :  { %5649 = vst [vmem:[#allocation6_spill] sm:$0xff] %v3425_v31 }
  0x9f   :  { %99 = vrot.lane.b32.xlu1 %v89_v32, %s3123_s28 }
  0xa0   :  { %1011 = vrot.lane.b32.xlu0 %v1003_v34, %s3122_s18  ;;  %v3436_v39 = vpop.permute.xlu0 %235  ;;  %v3488_v60 = vpop.permute.xlu1 %1267 }
  0xa1   :  { %5650 = vst [vmem:[#allocation7_spill] sm:$0xff] %v3436_v39 }
  0xa3   :  { %103 = vrot.lane.b32.xlu1 %v91_v38, %s3123_s28 }
  0xa4   :  { %888 = vrot.lane.b32.xlu0 %v3281_v21, %s3119_s25  ;;  %v3454_v49 = vpop.permute.xlu0 %1273  ;;  %v3511_v8 = vpop.permute.xlu1 %1167 }
  0xa7   :  { %195 = vrot.lane.b32.xlu1 %v185_v42, %s3124_s20  ;;  %v632_v42 = vld [vmem:[%s5598_s5 + $0xd0] sm:$0xff] }
  0xa8   :  { %922 = vrot.lane.b32.xlu0 %v912_v44, %s3120_s30  ;;  %v3464_v54 = vpop.permute.xlu0 %1173  ;;  %v3520_v10 = vpop.permute.xlu1 %1201 }
  0xab   :  { %199 = vrot.lane.b32.xlu1 %v187_v50, %s3124_s20  ;;  %v630_v50 = vld [vmem:[%s5598_s5 + $0xc0] sm:$0xff] }
  0xac   :  { %799 = vrot.lane.b32.xlu0 %v3258_v17, %s3119_s25  ;;  %v3480_v58 = vpop.permute.xlu0 %1269  ;;  %v3533_v14 = vpop.permute.xlu1 %1078 }
  0xad   :  { %v1275_v45 = vsel %vm109_vm5, %v3488_v60, %v3480_v58 }
  0xaf   :  { %1013 = vrot.lane.b32.xlu1 %v1004_v53, %s3122_s18 }
  0xb0   :  { %886 = vrot.lane.b32.xlu0 %v3305_v26, %s3119_s25  ;;  %v3502_v5 = vpop.permute.xlu0 %1169  ;;  %v3543_v18 = vpop.permute.xlu1 %1165 }
  0xb3   :  { %890 = vrot.lane.b32.xlu1 %v3299_v25, %s3119_s25 }
  0xb4   :  { %920 = vrot.lane.b32.xlu0 %v911_v55, %s3120_s30  ;;  %v3515_v4 = vpop.permute.xlu0 %1203  ;;  %v3557_v23 = vpop.permute.xlu1 %1199 }
  0xb7   :  { %924 = vrot.lane.b32.xlu1 %v913_v57, %s3120_s30 }
  0xb8   :  { %797 = vrot.lane.b32.xlu0 %v3299_v25, %s3119_s25  ;;  %v3528_v13 = vpop.permute.xlu0 %1080  ;;  %v3570_v30 = vpop.permute.xlu1 %1076 }
  0xbb   :  { %801 = vrot.lane.b32.xlu1 %v792_v61, %s3119_s25  ;;  %v536_v61 = vld [vmem:[%s5598_s5 + $0xa0] sm:$0xff] }
  0xbc   :  { %831 = vrot.lane.b32.xlu0 %v820_v62, %s3126_s8  ;;  %v3540_v16 = vpop.permute.xlu0 %1197  ;;  %v3585_v34 = vpop.permute.xlu1 %1110 }
  0xbf   :  { %918 = vrot.lane.b32.xlu1 %v910_v6, %s3120_s30  ;;  %v538_v6 = vld [vmem:[%s5598_s5 + $0xb0] sm:$0xff] }
  0xc0   :  { %708 = vrot.lane.b32.xlu0 %v699_v7, %s3121_s13  ;;  %v3552_v22 = vpop.permute.xlu0 %1074  ;;  %v3599_v38 = vpop.permute.xlu1 %987 }
  0xc3   :  { %795 = vrot.lane.b32.xlu1 %v3281_v21, %s3119_s25 }
  0xc4   :  { %825 = vrot.lane.b32.xlu0 %v817_v9, %s3126_s8  ;;  %v3564_v27 = vpop.permute.xlu0 %1108  ;;  %v3612_v44 = vpop.permute.xlu1 %1104 }
  0xc7   :  { %829 = vrot.lane.b32.xlu1 %v819_v12, %s3126_s8  ;;  %v445_v12 = vld [vmem:[%s5598_s5 + $0x90] sm:$0xff] }
  0xc8   :  { %702 = vrot.lane.b32.xlu0 %v3281_v21, %s3121_s13  ;;  %v3583_v32 = vpop.permute.xlu0 %985  ;;  %v3635_v55 = vpop.permute.xlu1 %981 }
  0xcb   :  { %706 = vrot.lane.b32.xlu1 %v3258_v17, %s3121_s13 }
  0xcc   :  { %736 = vrot.lane.b32.xlu0 %v726_v15, %s3127_s21  ;;  %v3596_v37 = vpop.permute.xlu0 %1072  ;;  %v3644_v62 = vpop.permute.xlu1 %1015 }
  0xcf   :  { %793 = vrot.lane.b32.xlu1 %v3305_v26, %s3119_s25 }
  0xd0   :  { %613 = vrot.lane.b32.xlu0 %v3299_v25, %s3119_s25  ;;  %v3610_v43 = vpop.permute.xlu0 %1106  ;;  %v3657_v9 = vpop.permute.xlu1 %892 }
  0xd3   :  { %827 = vrot.lane.b32.xlu1 %v818_v19, %s3126_s8 }
  0xd4   :  { %700 = vrot.lane.b32.xlu0 %v3305_v26, %s3121_s13  ;;  %v3625_v47 = vpop.permute.xlu0 %983  ;;  %v3667_v19 = vpop.permute.xlu1 %979 }
  0xd7   :  { %704 = vrot.lane.b32.xlu1 %v3299_v25, %s3121_s13  ;;  %v3581_v25 = vld [vmem:[%s5597_s0 + $0x10] sm:$0xf] }
  0xd8   :  { %734 = vrot.lane.b32.xlu0 %v725_v24, %s3127_s21  ;;  %5652 = vst [vmem:[#allocation9_spill] sm:$0xff] %v3581_v25  ;;  %v511_v36 = vcombine.low %v3581_v25, %v3581_v25  ;;  %v3638_v57 = vpop.permute.xlu0 %1017  ;;  %v537_v24 = vld [vmem:[%s5598_s5 + $0xa8] sm:$0xff] }
  0xdb   :  { %738 = vrot.lane.b32.xlu1 %v727_v29, %s3127_s21 }
  0xdc   :  { %611 = vrot.lane.b32.xlu0 %v3281_v21, %s3119_s25  ;;  %v3652_v7 = vpop.permute.xlu0 %894 }
  0xdf   :  { %615 = vrot.lane.b32.xlu1 %v3258_v17, %s3119_s25 }
  0xe0   :  { %644 = vrot.lane.b32.xlu0 %v633_v11, %s3119_s25 }
  0xe3   :  { %732 = vrot.lane.b32.xlu1 %v724_v35, %s3127_s21  ;;  %v444_v35 = vld [vmem:[%s5598_s5 + $0x88] sm:$0xff] }
  0xe4   :  { %520 = vrot.lane.b32.xlu0 %v511_v36, %s3119_s25 }
  0xe7   :  { %609 = vrot.lane.b32.xlu1 %v3305_v26, %s3119_s25  ;;  %v3623_v26 = vld [vmem:[%s5597_s0 + $0x10] sm:$0xf] }
  0xe8   :  { %640 = vrot.lane.b32.xlu0 %v631_v41, %s3119_s25  ;;  %5653 = vst [vmem:[#allocation10_spill] sm:$0xff] %v3623_v26  ;;  %v417_v53 = vcombine.low %v3623_v26, %v3623_v26  ;;  %v446_v41 = vld [vmem:[%s5598_s5 + $0x98] sm:$0xff]  ;;  %v1254_v26 = vsel %vm58_vm1, %v3281_v21, 0.0 }
  0xe9   :  { %v1283_v51 = vmul.f32 %v3488_v60, %v1254_v26  ;;  %v1256_v60 = vsel %vm58_vm1, %v3258_v17, 0.0  ;;  %v1276_v26 = vsel %vm109_vm5, %v3480_v58, %v3457_v52 }
  0xeb   :  { %642 = vrot.lane.b32.xlu1 %v632_v42, %s3119_s25  ;;  %v3697_v42 = vld [vmem:[%s5597_s0 + $0x10] sm:$0xf] }
  0xec   :  { %516 = vrot.lane.b32.xlu0 %v3183_v2, %s3119_s25  ;;  %5658 = vst [vmem:[#allocation15_spill] sm:$0xff] %v3697_v42 }
  0xef   :  { %518 = vrot.lane.b32.xlu1 %v3170_v0, %s3119_s25 }
  0xf0   :  { %550 = vrot.lane.b32.xlu0 %v539_v46, %s3128_s29 }
  0xf3   :  { %638 = vrot.lane.b32.xlu1 %v630_v50, %s3119_s25 }
  0xf4   :  { %426 = vrot.lane.b32.xlu0 %v417_v53, %s3129_s10  ;;  %v324_v53 = vcombine.low %v3697_v42, %v3697_v42 }
  0xf6   :  { %v3664_v15 = vpop.permute.xlu0 %101 }
  0xf7   :  { %514 = vrot.lane.b32.xlu1 %v3175_v1, %s3119_s25  ;;  %5654 = vst [vmem:[#allocation11_spill] sm:$0xff] %v3664_v15 }
  0xf8   :  { %544 = vrot.lane.b32.xlu0 %v536_v61, %s3128_s29 }
  0xf9   :  { %v3681_v11 = vpop.permute.xlu1 %107 }
  0xfa   :  { %v3676_v29 = vpop.permute.xlu0 %105  ;;  %5656 = vst [vmem:[#allocation13_spill] sm:$0xff] %v3681_v11  ;;  %v3755_v11 = vcombine.high %v3258_v17, %v3258_v17 }
  0xfb   :  { %548 = vrot.lane.b32.xlu1 %v538_v6, %s3128_s29  ;;  %5655 = vst [vmem:[#allocation12_spill] sm:$0xff] %v3676_v29  ;;  %v352_v6 = vld [vmem:[%s5598_s5 + $0x78] sm:$0xff] }
  0xfc   :  { %420 = vrot.lane.b32.xlu0 %v3175_v1, %s3129_s10 }
  0xff   :  { %424 = vrot.lane.b32.xlu1 %v3170_v0, %s3129_s10 }
 0x100   :  { %455 = vrot.lane.b32.xlu0 %v445_v12, %s3123_s28  ;;  %v3716_v12 = vld [vmem:[%s5597_s0 + $0x10] sm:$0xf] }
 0x101   :  { %5662 = vst [vmem:[#allocation19_spill] sm:$0xff] %v3716_v12 }
 0x103   :  { %512 = vrot.lane.b32.xlu1 %v3187_v3, %s3119_s25 }
 0x104   :  { %331 = vrot.lane.b32.xlu0 %v3170_v0, %s3119_s25 }
 0x107   :  { %546 = vrot.lane.b32.xlu1 %v537_v24, %s3128_s29 }
 0x108   :  { %418 = vrot.lane.b32.xlu0 %v3187_v3, %s3129_s10 }
 0x10a   :  { %v3686_v36 = vpop.permute.xlu0 %197 }
 0x10b   :  { %5657 = vst [vmem:[#allocation14_spill] sm:$0xff] %v3686_v36  ;;  %422 = vrot.lane.b32.xlu1 %v3183_v2, %s3129_s10  ;;  %v3768_v36 = vcombine.high %v3281_v21, %v3281_v21 }
 0x10c   :  { %453 = vrot.lane.b32.xlu0 %v444_v35, %s3123_s28  ;;  %v230_v35 = vcombine.low %v3716_v12, %v3716_v12 }
 0x10d   :  { %v3699_v46 = vpop.permute.xlu1 %203  ;;  %v1255_v31 = vsel %vm58_vm1, %v3768_v36, 0.0 }
 0x10e   :  { %5659 = vst [vmem:[#allocation16_spill] sm:$0xff] %v3699_v46  ;;  %v3701_v50 = vpop.permute.xlu0 %201 }
 0x10f   :  { %5660 = vst [vmem:[#allocation17_spill] sm:$0xff] %v3701_v50  ;;  %457 = vrot.lane.b32.xlu1 %v446_v41, %s3123_s28 }
 0x110   :  { %329 = vrot.lane.b32.xlu0 %v3183_v2, %s3119_s25  ;;  %v443_v2 = vld [vmem:[%s5598_s5 + $0x80] sm:$0xff] }
 0x111   :  { %v3708_v61 = vpop.permute.xlu1 %99 }
 0x112   :  { %5661 = vst [vmem:[#allocation18_spill] sm:$0xff] %v3708_v61  ;;  %v3718_v24 = vpop.permute.xlu0 %1011 }
 0x113   :  { %333 = vrot.lane.b32.xlu1 %v324_v53, %s3119_s25  ;;  %v349_v53 = vld [vmem:[%s5598_s5 + $0x60] sm:$0xff] }
 0x114   :  { %363 = vrot.lane.b32.xlu0 %v352_v6, %s3124_s20 }
 0x115   :  { %v3727_v41 = vpop.permute.xlu1 %103 }
 0x116   :  { %5663 = vst [vmem:[#allocation20_spill] sm:$0xff] %v3727_v41  ;;  %v3729_v61 = vpop.permute.xlu0 %888  ;;  %v351_v41 = vld [vmem:[%s5598_s5 + $0x70] sm:$0xff] }
 0x117   :  { %451 = vrot.lane.b32.xlu1 %v443_v2, %s3123_s28 }
 0x118   :  { %239 = vrot.lane.b32.xlu0 %v230_v35, %s3119_s25  ;;  %v257_v35 = vld [vmem:[%s5598_s5 + $0x50] sm:$0xff] }
 0x119   :  { %v3733_v15 = vpop.permute.xlu1 %195 }
 0x11a   :  { %5664 = vst [vmem:[#allocation21_spill] sm:$0xff] %v3733_v15  ;;  %v3738_v6 = vpop.permute.xlu0 %922 }
 0x11b   :  { %327 = vrot.lane.b32.xlu1 %v3175_v1, %s3119_s25 }
 0x11c   :  { %357 = vrot.lane.b32.xlu0 %v349_v53, %s3124_s20  ;;  %v255_v53 = vld [vmem:[%s5598_s5 + $0x40] sm:$0xff] }
 0x11d   :  { %v3746_v2 = vpop.permute.xlu1 %199 }
 0x11e   :  { %5665 = vst [vmem:[#allocation22_spill] sm:$0xff] %v3746_v2  ;;  %v3751_v29 = vpop.permute.xlu0 %799  ;;  %v1257_v2 = vsel %vm58_vm1, %v3755_v11, 0.0 }
 0x11f   :  { %361 = vrot.lane.b32.xlu1 %v351_v41, %s3124_s20  ;;  %v1277_v41 = vsel %vm109_vm5, %v3457_v52, %v3454_v49  ;;  %v1188_v52 = vsel %vm58_vm1, %v3276_v20, %v3464_v54  ;;  %v992_v20 = vsel %vm145_vm3, %v3583_v32, %v3599_v38 }
 0x120   :  { %267 = vrot.lane.b32.xlu0 %v257_v35, %s3125_s15  ;;  %v1286_v50 = vmul.f32 %v1277_v41, %v1257_v2  ;;  %v350_v2 = vld [vmem:[%s5598_s5 + $0x68] sm:$0xff]  ;;  %v1284_v41 = vmul.f32 %v1275_v45, %v1255_v31 }
 0x121   :  { %v3759_v1 = vpop.permute.xlu1 %1013 }
 0x122   :  { %v3764_v15 = vpop.permute.xlu0 %886 }
 0x123   :  { %237 = vrot.lane.b32.xlu1 %v3170_v0, %s3119_s25  ;;  %v1178_v0 = vsel %vm48_vm0, %v3472_v56, %v3464_v54  ;;  %v1217_v54 = vmul.f32 %v3515_v4, %v1188_v52 }
 0x124   :  { %263 = vrot.lane.b32.xlu0 %v255_v53, %s3125_s15  ;;  %v1187_v12 = vsel %vm58_vm1, %v3755_v11, %v1178_v0  ;;  %v1247_v0 = vld [vmem:[%s5597_s0 + $0x14] sm:$0xf] }
 0x125   :  { %v3778_v35 = vpop.permute.xlu1 %890 }
 0x126   :  { %v3780_v46 = vpop.permute.xlu0 %920 }
 0x127   :  { %325 = vrot.lane.b32.xlu1 %v3187_v3, %s3119_s25  ;;  %v1207_v3 = vsel %vm205_vm6, %v3520_v10, %v3515_v4  ;;  %v1021_v4 = vsel %vm176_vm4, %v3644_v62, %v3638_v57 }
 0x128   :  { %1299 = vrot.lane.b32.xlu0 %v1286_v50, %s3120_s30  ;;  %v258_v50 = vld [vmem:[%s5598_s5 + $0x58] sm:$0xff]  ;;  %v1216_v31 = vmul.f32 %v1207_v3, %v1187_v12  ;;  %v256_v12 = vld [vmem:[%s5598_s5 + $0x48] sm:$0xff]  ;;  %v1258_v3 = vsel %vm58_vm1, %v1247_v0, 0.0 }
 0x129   :  { %v3796_v53 = vpop.permute.xlu1 %924 }
 0x12a   :  { %v3798_v39 = vpop.permute.xlu0 %797 }
 0x12b   :  { %359 = vrot.lane.b32.xlu1 %v350_v2, %s3124_s20  ;;  %v1177_v2 = vsel %vm48_vm0, %v3502_v5, %v3472_v56  ;;  %v1206_v56 = vsel %vm205_vm6, %v3557_v23, %v3520_v10  ;;  %v1095_v10 = vsel %vm58_vm1, %v3317_v28, %v3528_v13  ;;  %v1176_v28 = vsel %vm48_vm0, %v3511_v8, %v3502_v5 }
 0x12c   :  { %1295 = vrot.lane.b32.xlu0 %v1284_v41, %s3120_s30  ;;  %v1124_v58 = vmul.f32 %v3585_v34, %v1095_v10  ;;  %v1185_v5 = vsel %vm58_vm1, %v3768_v36, %v1176_v28  ;;  %v1085_v10 = vsel %vm48_vm0, %v3533_v14, %v3528_v13 }
 0x12d   :  { %v3810_v42 = vpop.permute.xlu1 %801  ;;  %v1094_v13 = vsel %vm58_vm1, %v3755_v11, %v1085_v10 }
 0x12e   :  { %v3812_v45 = vpop.permute.xlu0 %831 }
 0x12f   :  { %269 = vrot.lane.b32.xlu1 %v258_v50, %s3125_s15  ;;  %v1186_v50 = vsel %vm58_vm1, %v3258_v17, %v1177_v2 }
 0x130   :  { %1229 = vrot.lane.b32.xlu0 %v1216_v31, %s3122_s18  ;;  %v1287_v31 = vmul.f32 %v3454_v49, %v1258_v3  ;;  %v1215_v0 = vmul.f32 %v1206_v56, %v1186_v50  ;;  %v1285_v49 = vmul.f32 %v1276_v26, %v1256_v60  ;;  %v1112_v56 = vsel %vm271_vm7, %v3612_v44, %v3610_v43 }
 0x131   :  { %v3827_v41 = vpop.permute.xlu1 %918  ;;  %v1205_v60 = vsel %vm205_vm6, %v3540_v16, %v3557_v23  ;;  %v1082_v23 = vsel %vm48_vm0, %v3596_v37, %v3552_v22 }
 0x132   :  { %v3831_v48 = vpop.permute.xlu0 %708 }
 0x133   :  { %265 = vrot.lane.b32.xlu1 %v256_v12, %s3125_s15 }
 0x134   :  { %1293 = vrot.lane.b32.xlu0 %v1283_v51, %s3120_s30  ;;  %v1083_v51 = vsel %vm48_vm0, %v3552_v22, %v3570_v30  ;;  %v1091_v22 = vsel %vm58_vm1, %v3281_v21, %v1082_v23  ;;  %v1002_v23 = vsel %vm58_vm1, %v3338_v33, %v3599_v38  ;;  %v990_v33 = vsel %vm145_vm3, %v3635_v55, %v3625_v47 }
 0x135   :  { %v3841_v25 = vpop.permute.xlu1 %795  ;;  %v1092_v50 = vsel %vm58_vm1, %v3768_v36, %v1083_v51  ;;  %v1001_v51 = vsel %vm58_vm1, %v3755_v11, %v992_v20 }
 0x136   :  { %v3848_v2 = vpop.permute.xlu0 %825  ;;  %v1121_v26 = vmul.f32 %v1112_v56, %v1092_v50  ;;  %v1030_v28 = vmul.f32 %v1021_v4, %v1001_v51  ;;  %v1175_v56 = vsel %vm48_vm0, %v3543_v18, %v3511_v8  ;;  %v1084_v18 = vsel %vm48_vm0, %v3570_v30, %v3533_v14 }
 0x137   :  { %1301 = vrot.lane.b32.xlu1 %v1287_v31, %s3120_s30  ;;  %v1093_v10 = vsel %vm58_vm1, %v3258_v17, %v1084_v18  ;;  %v1113_v14 = vsel %vm271_vm7, %v3610_v43, %v3564_v27  ;;  %v909_v51 = vsel %vm58_vm1, %v3381_v40, %v3652_v7  ;;  %v1031_v40 = vmul.f32 %v3638_v57, %v1002_v23 }
 0x138   :  { %1227 = vrot.lane.b32.xlu0 %v1215_v0, %s3122_s18  ;;  %v938_v43 = vmul.f32 %v3796_v53, %v909_v51  ;;  %v999_v57 = vsel %vm58_vm1, %v3768_v36, %v990_v33  ;;  %v896_v18 = vsel %vm48_vm0, %v3764_v15, %v3729_v61  ;;  %v898_v51 = vsel %vm48_vm0, %v3778_v35, %v3657_v9 }
 0x139   :  { %v3858_v12 = vpop.permute.xlu1 %829  ;;  %v905_v15 = vsel %vm58_vm1, %v3281_v21, %v896_v18  ;;  %v816_v33 = vsel %vm58_vm1, %v3485_v59, %v3810_v42 }
 0x13a   :  { %v3864_v3 = vpop.permute.xlu0 %702  ;;  %v845_v59 = vmul.f32 %v3812_v45, %v816_v33 }
 0x13b   :  { %1297 = vrot.lane.b32.xlu1 %v1285_v49, %s3120_s30  ;;  %v1214_v49 = vmul.f32 %v1205_v60, %v1185_v5  ;;  %v991_v5 = vsel %vm145_vm3, %v3625_v47, %v3583_v32  ;;  %v1020_v60 = vsel %vm176_vm4, %v3759_v1, %v3644_v62  ;;  %v835_v47 = vsel %vm581_vm8, %v3858_v12, %v3812_v45 }
 0x13c   :  { %1138 = vrot.lane.b32.xlu0 %v1124_v58, %s3125_s15  ;;  %v1114_v58 = vsel %vm271_vm7, %v3564_v27, %v3585_v34  ;;  %v1184_v34 = vsel %vm58_vm1, %v3281_v21, %v1175_v56  ;;  %v897_v27 = vsel %vm48_vm0, %v3729_v61, %v3778_v35  ;;  %v806_v56 = vsel %vm48_vm0, %v3751_v29, %v3810_v42 }
 0x13d   :  { %v3880_v31 = vpop.permute.xlu1 %706  ;;  %v1123_v37 = vmul.f32 %v1114_v58, %v1094_v13  ;;  %v926_v13 = vsel %vm80_vm2, %v3827_v41, %v3780_v46  ;;  %v906_v38 = vsel %vm58_vm1, %v3768_v36, %v897_v27  ;;  %v927_v35 = vsel %vm80_vm2, %v3780_v46, %v3738_v6 }
 0x13e   :  { %v3887_v0 = vpop.permute.xlu0 %736  ;;  %v804_v42 = vsel %vm48_vm0, %v3841_v25, %v3798_v39 }
 0x13f   :  { %1231 = vrot.lane.b32.xlu1 %v1217_v54, %s3122_s18  ;;  %v1120_v54 = vmul.f32 %v3612_v44, %v1091_v22  ;;  %v1213_v44 = vmul.f32 %v3540_v16, %v1184_v34  ;;  %v1122_v16 = vmul.f32 %v1113_v14, %v1093_v10  ;;  %v935_v22 = vmul.f32 %v926_v13, %v906_v38 }
 0x140   :  { %1132 = vrot.lane.b32.xlu0 %v1121_v26, %s3125_s15  ;;  %v1000_v26 = vsel %vm58_vm1, %v3258_v17, %v991_v5  ;;  %v989_v10 = vsel %vm145_vm3, %v3667_v19, %v3635_v55 }
 0x141   :  { %v3902_v52 = vpop.permute.xlu1 %793  ;;  %v1029_v30 = vmul.f32 %v1020_v60, %v1000_v26  ;;  %v928_v60 = vsel %vm80_vm2, %v3738_v6, %v3796_v53  ;;  %v805_v53 = vsel %vm48_vm0, %v3798_v39, %v3751_v29  ;;  %v998_v19 = vsel %vm58_vm1, %v3281_v21, %v989_v10 }
 0x142   :  { %v3909_v50 = vpop.permute.xlu0 %613  ;;  %v1027_v29 = vmul.f32 %v3718_v24, %v998_v19  ;;  %v596_v19 = vld [vmem:[%s5597_s0 + $0x10] sm:$0xf] }
 0x143   :  { %1225 = vrot.lane.b32.xlu1 %v1214_v49, %s3122_s18 }
 0x144   :  { %1043 = vrot.lane.b32.xlu0 %v1030_v28, %s3124_s20  ;;  %v1019_v28 = vsel %vm176_vm4, %v3718_v24, %v3759_v1  ;;  %v899_v1 = vsel %vm48_vm0, %v3657_v9, %v3652_v7  ;;  %v907_v9 = vsel %vm58_vm1, %v3258_v17, %v898_v51  ;;  %v723_v24 = vsel %vm58_vm1, %v3500_v63, %v3831_v48 }
 0x145   :  { %v3918_v20 = vpop.permute.xlu1 %827  ;;  %v1028_v34 = vmul.f32 %v1019_v28, %v999_v57  ;;  %v908_v7 = vsel %vm58_vm1, %v3755_v11, %v899_v1 }
 0x146   :  { %v3926_v8 = vpop.permute.xlu0 %700  ;;  %v937_v61 = vmul.f32 %v928_v60, %v908_v7  ;;  %v834_v55 = vsel %vm581_vm8, %v3918_v20, %v3858_v12 }
 0x147   :  { %1136 = vrot.lane.b32.xlu1 %v1123_v37, %s3125_s15 }
 0x148   :  { %1130 = vrot.lane.b32.xlu0 %v1120_v54, %s3125_s15  ;;  %v815_v54 = vsel %vm58_vm1, %v3755_v11, %v806_v56 }
 0x149   :  { %v3939_v32 = vpop.permute.xlu1 %704 }
 0x14a   :  { %v3946_v62 = vpop.permute.xlu0 %734  ;;  %v711_v46 = vsel %vm145_vm3, %v3864_v3, %v3939_v32 }
 0x14b   :  { %1223 = vrot.lane.b32.xlu1 %v1213_v44, %s3122_s18  ;;  %v844_v44 = vmul.f32 %v835_v47, %v815_v54  ;;  %v720_v28 = vsel %vm58_vm1, %v3768_v36, %v711_v46  ;;  %v833_v47 = vsel %vm581_vm8, %v3848_v2, %v3918_v20  ;;  %v713_v20 = vsel %vm145_vm3, %v3880_v31, %v3831_v48  ;;  %v5667_v46 = vld [vmem:[#allocation4_spill] sm:$0xff] }
 0x14c   :  { %1041 = vrot.lane.b32.xlu0 %v1029_v30, %s3124_s20  ;;  %v934_v30 = vmul.f32 %v3827_v41, %v905_v15  ;;  %v814_v41 = vsel %vm58_vm1, %v3258_v17, %v805_v53  ;;  %v803_v48 = vsel %vm48_vm0, %v3902_v52, %v3841_v25  ;;  %v722_v15 = vsel %vm58_vm1, %v3755_v11, %v713_v20 }
 0x14d   :  { %v3953_v4 = vpop.permute.xlu1 %738  ;;  %v843_v12 = vmul.f32 %v834_v55, %v814_v41  ;;  %v712_v11 = vsel %vm145_vm3, %v3939_v32, %v3880_v31  ;;  %v741_v55 = vsel %vm674_vm9, %v3946_v62, %v3887_v0 }
 0x14e   :  { %v3962_v49 = vpop.permute.xlu0 %611  ;;  %v752_v6 = vmul.f32 %v3953_v4, %v723_v24  ;;  %v742_v7 = vsel %vm674_vm9, %v3887_v0, %v3953_v4  ;;  %v812_v4 = vsel %vm58_vm1, %v3281_v21, %v803_v48  ;;  %v4205_v48 = vld [vmem:[%s5597_s0] sm:$0xff] }
 0x14f   :  { %1134 = vrot.lane.b32.xlu1 %v1122_v16, %s3125_s15  ;;  %v618_v25 = vsel %vm48_vm0, %v3962_v49, %v3909_v50 }
 0x150   :  { %952 = vrot.lane.b32.xlu0 %v938_v43, %s3123_s28  ;;  %v936_v43 = vmul.f32 %v927_v35, %v907_v9 }
 0x151   :  { %v3975_v58 = vpop.permute.xlu1 %615 }
 0x152   :  { %v3983_v37 = vpop.permute.xlu0 %644  ;;  %v619_v57 = vsel %vm48_vm0, %v3909_v50, %v3975_v58 }
 0x153   :  { %1045 = vrot.lane.b32.xlu1 %v1031_v40, %s3124_s20  ;;  %v595_v40 = vld [vmem:[%s5597_s0 + $0x8] sm:$0xff] }
 0x154   :  { %946 = vrot.lane.b32.xlu0 %v935_v22, %s3123_s28  ;;  %v602_v56 = vcombine.high %v595_v40, %v595_v40  ;;  %v627_v51 = vsel %vm58_vm1, %v595_v40, %v618_v25 }
 0x155   :  { %v3997_v5 = vpop.permute.xlu1 %732 }
 0x156   :  { %v4005_v26 = vpop.permute.xlu0 %520  ;;  %v740_v63 = vsel %vm674_vm9, %v3997_v5, %v3946_v62  ;;  %v628_v18 = vsel %vm58_vm1, %v602_v56, %v619_v57  ;;  %v629_v62 = vsel %vm58_vm1, %v596_v19, %v3975_v58 }
 0x157   :  { %1039 = vrot.lane.b32.xlu1 %v1028_v34, %s3124_s20  ;;  %v749_v1 = vmul.f32 %v740_v63, %v720_v28  ;;  %v813_v34 = vsel %vm58_vm1, %v3768_v36, %v804_v42 }
 0x158   :  { %857 = vrot.lane.b32.xlu0 %v844_v44, %s3128_s29  ;;  %v842_v54 = vmul.f32 %v833_v47, %v813_v34  ;;  %v710_v44 = vsel %vm145_vm3, %v3926_v8, %v3864_v3  ;;  %v751_v8 = vmul.f32 %v742_v7, %v722_v15 }
 0x159   :  { %v4016_v14 = vpop.permute.xlu1 %609  ;;  %v719_v3 = vsel %vm58_vm1, %v3281_v21, %v710_v44  ;;  %v841_v21 = vmul.f32 %v3848_v2, %v812_v4 }
 0x15a   :  { %v4022_v16 = vpop.permute.xlu0 %640  ;;  %v748_v52 = vmul.f32 %v3997_v5, %v719_v3  ;;  %v721_v5 = vsel %vm58_vm1, %v3258_v17, %v712_v11  ;;  %v594_v17 = vld [vmem:[%s5597_s0] sm:$0xff]  ;;  %v617_v24 = vsel %vm48_vm0, %v4016_v14, %v3962_v49  ;;  %v4176_v49 = vld [vmem:[%s5597_s0 + $0x8] sm:$0xff] }
 0x15b   :  { %950 = vrot.lane.b32.xlu1 %v937_v61, %s3123_s28  ;;  %v750_v41 = vmul.f32 %v741_v55, %v721_v5 }
 0x15c   :  { %944 = vrot.lane.b32.xlu0 %v934_v30, %s3123_s28 }
 0x15d   :  { %v643_v23 = vpop.permute.xlu1 %642 }
 0x15e   :  { %v4042_v27 = vpop.permute.xlu0 %516  ;;  %v648_v39 = vsel %vm48_vm0, %v643_v23, %v3983_v37  ;;  %v647_v30 = vsel %vm48_vm0, %v4022_v16, %v643_v23 }
 0x15f   :  { %1037 = vrot.lane.b32.xlu1 %v1027_v29, %s3124_s20  ;;  %v657_v36 = vmul.f32 %v648_v39, %v628_v18  ;;  %v656_v31 = vmul.f32 %v647_v30, %v627_v51  ;;  %v5666_v29 = vld [vmem:[#allocation9_spill] sm:$0xff] }
 0x160   :  { %855 = vrot.lane.b32.xlu0 %v843_v12, %s3128_s29  ;;  %v535_v2 = vsel %vm58_vm1, %v5666_v29, %v4005_v26  ;;  %v601_v12 = vcombine.high %v594_v17, %v594_v17 }
 0x161   :  { %v4049_v13 = vpop.permute.xlu1 %518 }
 0x162   :  { %v4061_v38 = vpop.permute.xlu0 %550  ;;  %v525_v42 = vsel %vm48_vm0, %v4049_v13, %v4005_v26  ;;  %v524_v15 = vsel %vm48_vm0, %v4042_v27, %v4049_v13 }
 0x163   :  { %948 = vrot.lane.b32.xlu1 %v936_v43, %s3123_s28  ;;  %v565_v23 = vmul.f32 %v4061_v38, %v535_v2  ;;  %v658_v43 = vmul.f32 %v3983_v37, %v629_v62  ;;  %v626_v37 = vsel %vm58_vm1, %v601_v12, %v617_v24  ;;  %v533_v11 = vsel %vm58_vm1, %v4176_v49, %v524_v15 }
 0x164   :  { %766 = vrot.lane.b32.xlu0 %v752_v6, %s3119_s25 }
 0x165   :  { %v4074_v22 = vpop.permute.xlu1 %638 }
 0x166   :  { %v4082_v45 = vpop.permute.xlu0 %426  ;;  %v646_v33 = vsel %vm48_vm0, %v4074_v22, %v4022_v16  ;;  %v4180_v16 = vcombine.high %v4176_v49, %v4176_v49 }
 0x167   :  { %859 = vrot.lane.b32.xlu1 %v845_v59, %s3128_s29  ;;  %v655_v28 = vmul.f32 %v646_v33, %v626_v37 }
 0x168   :  { %760 = vrot.lane.b32.xlu0 %v749_v1, %s3119_s25  ;;  %v534_v39 = vsel %vm58_vm1, %v4180_v16, %v525_v42 }
 0x169   :  { %v4094_v60 = vpop.permute.xlu1 %514 }
 0x16a   :  { %v4102_v10 = vpop.permute.xlu0 %544  ;;  %v523_v35 = vsel %vm48_vm0, %v4094_v60, %v4042_v27 }
 0x16b   :  { %853 = vrot.lane.b32.xlu1 %v842_v54, %s3128_s29  ;;  %v532_v6 = vsel %vm58_vm1, %v5667_v46, %v523_v35  ;;  %v5668_v54 = vld [vmem:[#allocation5_spill] sm:$0xff] }
 0x16c   :  { %670 = vrot.lane.b32.xlu0 %v657_v36, %s3127_s21  ;;  %v625_v36 = vsel %vm58_vm1, %v594_v17, %v4016_v14 }
 0x16d   :  { %v4113_v61 = vpop.permute.xlu1 %548  ;;  %v654_v3 = vmul.f32 %v4074_v22, %v625_v36  ;;  %v5672_v36 = vld [vmem:[#allocation7_spill] sm:$0xff] }
 0x16e   :  { %v4121_v53 = vpop.permute.xlu0 %420  ;;  %v555_v47 = vsel %vm552_vm10, %v4113_v61, %v4061_v38 }
 0x16f   :  { %764 = vrot.lane.b32.xlu1 %v751_v8, %s3119_s25  ;;  %v564_v34 = vmul.f32 %v555_v47, %v534_v39 }
 0x170   :  { %758 = vrot.lane.b32.xlu0 %v748_v52, %s3119_s25 }
 0x171   :  { %v425_v50 = vpop.permute.xlu1 %424 }
 0x172   :  { %v456_v32 = vpop.permute.xlu0 %455  ;;  %v432_v1 = vsel %vm428_vm11, %v425_v50, %v4082_v45 }
 0x173   :  { %851 = vrot.lane.b32.xlu1 %v841_v21, %s3128_s29  ;;  %v441_v18 = vsel %vm58_vm1, %v5668_v54, %v432_v1 }
 0x174   :  { %668 = vrot.lane.b32.xlu0 %v656_v31, %s3127_s21 }
 0x175   :  { %v513_v0 = vpop.permute.xlu1 %512 }
 0x176   :  { %v4151_v9 = vpop.permute.xlu0 %331  ;;  %v522_v26 = vsel %vm48_vm0, %v513_v0, %v4094_v60 }
 0x177   :  { %762 = vrot.lane.b32.xlu1 %v750_v41, %s3119_s25  ;;  %v531_v60 = vsel %vm58_vm1, %v4205_v48, %v522_v26 }
 0x178   :  { %579 = vrot.lane.b32.xlu0 %v565_v23, %s3126_s8  ;;  %v561_v52 = vmul.f32 %v4102_v10, %v531_v60  ;;  %v5673_v60 = vld [vmem:[#allocation8_spill] sm:$0xff] }
 0x179   :  { %v547_v58 = vpop.permute.xlu1 %546  ;;  %v242_v15 = vsel %vm48_vm0, %v5673_v60, %v5672_v36 }
 0x17a   :  { %v553_v40 = vsel %vm552_vm10, %v4102_v10, %v547_v58  ;;  %v4169_v63 = vpop.permute.xlu0 %418  ;;  %v554_v14 = vsel %vm552_vm10, %v547_v58, %v4113_v61  ;;  %v5669_v10 = vld [vmem:[#allocation10_spill] sm:$0xff] }
 0x17b   :  { %v562_v59 = vmul.f32 %v553_v40, %v532_v6  ;;  %672 = vrot.lane.b32.xlu1 %v658_v43, %s3127_s21  ;;  %v563_v22 = vmul.f32 %v554_v14, %v533_v11  ;;  %v442_v61 = vsel %vm58_vm1, %v5669_v10, %v4082_v45  ;;  %v429_v12 = vsel %vm428_vm11, %v4169_v63, %v4121_v53 }
 0x17c   :  { %v438_v33 = vsel %vm58_vm1, %v4205_v48, %v429_v12 }
 0x17d   :  { %v423_v56 = vpop.permute.xlu1 %422  ;;  %573 = vrot.lane.b32.xlu0 %v562_v59, %s3126_s8 }
 0x17e   :  { %v454_v57 = vpop.permute.xlu0 %453  ;;  %v431_v8 = vsel %vm428_vm11, %v423_v56, %v425_v50  ;;  %v5670_v50 = vld [vmem:[#allocation15_spill] sm:$0xff]  ;;  %v430_v55 = vsel %vm428_vm11, %v4121_v53, %v423_v56 }
 0x17f   :  { %666 = vrot.lane.b32.xlu1 %v655_v28, %s3127_s21  ;;  %v440_v27 = vsel %vm58_vm1, %v4176_v49, %v431_v8  ;;  %v460_v13 = vsel %vm109_vm5, %v454_v57, %v456_v32  ;;  %v439_v41 = vsel %vm58_vm1, %v5667_v46, %v430_v55 }
 0x180   :  { %v469_v51 = vmul.f32 %v460_v13, %v440_v27  ;;  %v3130_v27 = vmov 0.0  }
 0x181   :  { %v458_v20 = vpop.permute.xlu1 %457  ;;  %23 = vst [vmem:[#allocation3] sm:$0xf] %v3130_v27  ;;  %24 = vst [vmem:[#allocation3 + $0x14] sm:$0xf] %v3130_v27  ;;  %1446 = vmatprep.mubr.f32.mxu0 %v3130_v27  ;;  %1517 = vmatprep.mubr.f32.mxu1 %v3130_v27 }
 0x182   :  { %v461_v44 = vsel %vm109_vm5, %v456_v32, %v458_v20  ;;  %v330_v38 = vpop.permute.xlu0 %329  ;;  %v471_v31 = vmul.f32 %v458_v20, %v442_v61 }
 0x183   :  { %v470_v7 = vmul.f32 %v461_v44, %v441_v18  ;;  %577 = vrot.lane.b32.xlu1 %v564_v34, %s3126_s8  ;;  %v337_v37 = vsel %vm48_vm0, %v330_v38, %v4151_v9  ;;  %v5671_v34 = vld [vmem:[#allocation19_spill] sm:$0xff] }
 0x184   :  { %v346_v63 = vsel %vm58_vm1, %v4176_v49, %v337_v37 }
 0x185   :  { %v334_v4 = vpop.permute.xlu1 %333  ;;  %483 = vrot.lane.b32.xlu0 %v470_v7, %s3120_s30  ;;  %v224_v7 = vcombine.high %v4205_v48, %v4205_v48 }
 0x186   :  { %v364_v25 = vpop.permute.xlu0 %363  ;;  %v348_v5 = vsel %vm58_vm1, %v5670_v50, %v334_v4  ;;  %v338_v45 = vsel %vm48_vm0, %v4151_v9, %v334_v4 }
 0x187   :  { %664 = vrot.lane.b32.xlu1 %v654_v3, %s3127_s21  ;;  %v377_v2 = vmul.f32 %v364_v25, %v348_v5  ;;  %v347_v35 = vsel %vm58_vm1, %v5668_v54, %v338_v45 }
 0x189   :  { %v452_v30 = vpop.permute.xlu1 %451  ;;  %571 = vrot.lane.b32.xlu0 %v561_v52, %s3126_s8 }
 0x18a   :  { %v240_v21 = vpop.permute.xlu0 %239  ;;  %v459_v19 = vsel %vm109_vm5, %v452_v30, %v454_v57  ;;  %v467_v6 = vmul.f32 %v452_v30, %v438_v33  ;;  %v1578_v33 = vld [vmem:[%s5598_s5 + $0x18] sm:$0xff] }
 0x18b   :  { %575 = vrot.lane.b32.xlu1 %v563_v22, %s3126_s8  ;;  %v468_v17 = vmul.f32 %v459_v19, %v439_v41  ;;  %v254_v26 = vsel %vm58_vm1, %v5671_v34, %v240_v21 }
 0x18d   :  { %v328_v32 = vpop.permute.xlu1 %327  ;;  %481 = vrot.lane.b32.xlu0 %v469_v51, %s3120_s30  ;;  %v3131_v51 = vmov 0  }
 0x18e   :  { %v358_v29 = vpop.permute.xlu0 %357  ;;  %v336_v42 = vsel %vm48_vm0, %v328_v32, %v330_v38  ;;  %3067 = vset.pattern.permute.xlu0 %v3131_v51 }
 0x18f   :  { %485 = vrot.lane.b32.xlu1 %v471_v31, %s3120_s30  ;;  %v345_v53 = vsel %vm58_vm1, %v5667_v46, %v336_v42  ;;  %v2760_v42 = vld [vmem:[%s5598_s5 + $0x1a0] sm:$0xff] }
 0x191   :  { %v362_v0 = vpop.permute.xlu1 %361  ;;  %391 = vrot.lane.b32.xlu0 %v377_v2, %s3122_s18 }
 0x192   :  { %v367_v62 = vsel %vm205_vm6, %v362_v0, %v364_v25  ;;  %v268_v23 = vpop.permute.xlu0 %267  ;;  %v251_v25 = vsel %vm58_vm1, %v224_v7, %v242_v15  ;;  %v2693_v7 = vld [vmem:[%s5598_s5 + $0x198] sm:$0xff] }
 0x193   :  { %479 = vrot.lane.b32.xlu1 %v468_v17, %s3120_s30  ;;  %v376_v43 = vmul.f32 %v367_v62, %v347_v35  ;;  %v1577_v35 = vld [vmem:[%s5598_s5 + $0x10] sm:$0xff] }
 0x195   :  { %v238_v24 = vpop.permute.xlu1 %237 }
 0x196   :  { %v264_v58 = vpop.permute.xlu0 %263  ;;  %v244_v1 = vsel %vm48_vm0, %v238_v24, %v240_v21  ;;  %v243_v13 = vsel %vm48_vm0, %v5672_v36, %v238_v24  ;;  %v4363_v36 = vld [vmem:[#allocation3 + $0x14] sm:$0xf] }
 0x197   :  { %389 = vrot.lane.b32.xlu1 %v376_v43, %s3122_s18  ;;  %v253_v46 = vsel %vm58_vm1, %v4180_v16, %v244_v1  ;;  %v5674_v16 = vld [vmem:[#allocation6_spill] sm:$0xff]  ;;  %v252_v50 = vsel %vm58_vm1, %v4176_v49, %v243_v13  ;;  %v1372_v49 = vld [vmem:[%s5599_s2] sm:$0xf]  ;;  %v2762_v1 = vld [vmem:[%s5598_s5 + $0x1b0] sm:$0xff] }
 0x198   :  { %v241_v14 = vsel %vm48_vm0, %v5674_v16, %v5673_v60  ;;  %v2692_v60 = vld [vmem:[%s5598_s5 + $0x190] sm:$0xff]  ;;  %v2597_v13 = vld [vmem:[%s5598_s5 + $0x160] sm:$0xff] }
 0x199   :  { %v326_v40 = vpop.permute.xlu1 %325  ;;  %v250_v61 = vsel %vm58_vm1, %v4205_v48, %v241_v14  ;;  %v2598_v14 = vld [vmem:[%s5598_s5 + $0x168] sm:$0xff] }
 0x19a   :  { %v1300_v59 = vpop.permute.xlu0 %1299  ;;  %v335_v20 = vsel %vm48_vm0, %v326_v40, %v328_v32  ;;  %v280_v31 = vmul.f32 %v264_v58, %v250_v61 }
 0x19b   :  { %477 = vrot.lane.b32.xlu1 %v467_v6, %s3120_s30  ;;  %v344_v8 = vsel %vm58_vm1, %v4205_v48, %v335_v20  ;;  %v1575_v48 = vld [vmem:[%s5598_s5] sm:$0xff]  ;;  %v2761_v6 = vld [vmem:[%s5598_s5 + $0x1a8] sm:$0xff] }
 0x19c   :  { %v373_v22 = vmul.f32 %v358_v29, %v344_v8  ;;  %v2691_v20 = vld [vmem:[%s5598_s5 + $0x188] sm:$0xff]  ;;  %v2572_v8 = vcombine.low %v4363_v36, %v4363_v36 }
 0x19d   :  { %v360_v28 = vpop.permute.xlu1 %359 }
 0x19e   :  { %v365_v56 = vsel %vm205_vm6, %v358_v29, %v360_v28  ;;  %v366_v47 = vsel %vm205_vm6, %v360_v28, %v362_v0  ;;  %v1296_v57 = vpop.permute.xlu0 %1295  ;;  %v2763_v28 = vld [vmem:[%s5598_s5 + $0x1b8] sm:$0xff] }
 0x19f   :  { %v374_v39 = vmul.f32 %v365_v56, %v345_v53  ;;  %v375_v9 = vmul.f32 %v366_v47, %v346_v63  ;;  %v4336_v53 = vld [vmem:[#allocation3 + $0x14] sm:$0xf] }
 0x1a0   :  { %v2665_v56 = vcombine.low %v4336_v53, %v4336_v53 }
 0x1a1   :  { %v270_v54 = vpop.permute.xlu1 %269  ;;  %387 = vrot.lane.b32.xlu1 %v375_v9, %s3122_s18  ;;  %385 = vrot.lane.b32.xlu0 %v374_v39, %s3122_s18 }
 0x1a2   :  { %v274_v18 = vsel %vm271_vm7, %v268_v23, %v270_v54  ;;  %v284_v44 = vmul.f32 %v270_v54, %v254_v26  ;;  %v1230_v38 = vpop.permute.xlu0 %1229  ;;  %v2690_v54 = vld [vmem:[%s5598_s5 + $0x180] sm:$0xff] }
 0x1a3   :  { %v283_v3 = vmul.f32 %v274_v18, %v253_v46 }
 0x1a5   :  { %v266_v4 = vpop.permute.xlu1 %265  ;;  %298 = vrot.lane.b32.xlu1 %v284_v44, %s3125_s15  ;;  %296 = vrot.lane.b32.xlu0 %v283_v3, %s3125_s15 }
 0x1a6   :  { %v272_v52 = vsel %vm271_vm7, %v264_v58, %v266_v4  ;;  %v1294_v11 = vpop.permute.xlu0 %1293  ;;  %v273_v21 = vsel %vm271_vm7, %v266_v4, %v268_v23  ;;  %v1576_v23 = vld [vmem:[%s5598_s5 + $0x8] sm:$0xff] }
 0x1a7   :  { %v281_v30 = vmul.f32 %v272_v52, %v251_v25  ;;  %v282_v32 = vmul.f32 %v273_v21, %v252_v50  ;;  %v1303_v45 = vsel %vm80_vm2, %v1294_v11, %v1296_v57 }
 0x1a9   :  { %v1302_v10 = vpop.permute.xlu1 %1301  ;;  %383 = vrot.lane.b32.xlu0 %v373_v22, %s3122_s18  ;;  %292 = vrot.lane.b32.xlu1 %v281_v30, %s3125_s15  ;;  %v2600_v22 = vld [vmem:[%s5598_s5 + $0x178] sm:$0xff] }
 0x1aa   :  { %v1228_v5 = vpop.permute.xlu0 %1227  ;;  %v1306_v55 = vsel %vm80_vm2, %v1300_v59, %v1302_v10  ;;  %v2599_v10 = vld [vmem:[%s5598_s5 + $0x170] sm:$0xff] }
 0x1ab   :  { %1457 = vmatprep.subr.mxu1 %v1306_v55  ;;  %v1235_v12 = vsel %vm176_vm4, %v1228_v5, %v1230_v38 }
 0x1ad   :  { %v1298_v19 = vpop.permute.xlu1 %1297  ;;  %294 = vrot.lane.b32.xlu0 %v282_v32, %s3125_s15  ;;  %290 = vrot.lane.b32.xlu1 %v280_v31, %s3125_s15 }
 0x1ae   :  { %v1139_v29 = vpop.permute.xlu0 %1138  ;;  %v1304_v2 = vsel %vm80_vm2, %v1296_v57, %v1298_v19  ;;  %v1305_v41 = vsel %vm80_vm2, %v1298_v19, %v1300_v59 }
 0x1af   :  { %1386 = vmatprep.subr.mxu0 %v1304_v2  ;;  %1458 = vmatpush1.msra.mxu1 %v1305_v41 }
 0x1b0   :  { %1387 = vmatpush1.msra.mxu0 %v1303_v45 }
 0x1b1   :  { %v1232_v17 = vpop.permute.xlu1 %1231  ;;  %1375 = vperm.xlu0 %3067, %v1372_v49   ;;  %1583 = vrot.lane.b32.xlu1 %v1575_v48, %s3120_s30 }
 0x1b2   :  { %v1133_v0 = vpop.permute.xlu0 %1132  ;;  %v1236_v62 = vsel %vm176_vm4, %v1230_v38, %v1232_v17 }
 0x1b3   :  { %1459 = vmatprep.subr.mxu1 %v1236_v62 }
 0x1b4   :  { %1460 = vmatpush1.msra.mxu1 %v1235_v12 }
 0x1b5   :  { %v1226_v43 = vpop.permute.xlu1 %1225  ;;  %1585 = vrot.lane.b32.xlu0 %v1576_v23, %s3120_s30  ;;  %1587 = vrot.lane.b32.xlu1 %v1577_v35, %s3120_s30 }
 0x1b6   :  { %v1044_v24 = vpop.permute.xlu0 %1043  ;;  %v1234_v58 = vsel %vm176_vm4, %v1226_v43, %v1228_v5 }
 0x1b7   :  { %1388 = vmatprep.subr.mxu0 %v1234_v58 }
 0x1b9   :  { %v1137_v40 = vpop.permute.xlu1 %1136  ;;  %1589 = vrot.lane.b32.xlu0 %v1578_v33, %s3120_s30  ;;  %2770 = vrot.lane.b32.xlu1 %v2761_v6, %s3123_s28 }
 0x1ba   :  { %v1131_v59 = vpop.permute.xlu0 %1130  ;;  %v1143_v37 = vsel %vm271_vm7, %v1137_v40, %v1139_v29 }
 0x1bb   :  { %1461 = vmatprep.subr.mxu1 %v1143_v37  ;;  %v1140_v46 = vsel %vm271_vm7, %v1131_v59, %v1133_v0 }
 0x1bd   :  { %v1224_v63 = vpop.permute.xlu1 %1223  ;;  %2768 = vrot.lane.b32.xlu0 %v2760_v42, %s3123_s28  ;;  %2774 = vrot.lane.b32.xlu1 %v2763_v28, %s3123_s28 }
 0x1be   :  { %v1042_v47 = vpop.permute.xlu0 %1041  ;;  %v1233_v57 = vsel %vm176_vm4, %v1224_v63, %v1226_v43 }
 0x1bf   :  { %1389 = vmatpush1.msra.mxu0 %v1233_v57  ;;  %v1049_v15 = vsel %vm205_vm6, %v1042_v47, %v1044_v24 }
 0x1c1   :  { %v1135_v39 = vpop.permute.xlu1 %1134  ;;  %2772 = vrot.lane.b32.xlu0 %v2762_v1, %s3123_s28  ;;  %2674 = vrot.lane.b32.xlu1 %v2665_v56, %s3119_s25 }
 0x1c2   :  { %v953_v9 = vpop.permute.xlu0 %952  ;;  %v1141_v34 = vsel %vm271_vm7, %v1133_v0, %v1135_v39  ;;  %v1142_v26 = vsel %vm271_vm7, %v1135_v39, %v1137_v40 }
 0x1c3   :  { %1390 = vmatprep.subr.mxu0 %v1141_v34  ;;  %1462 = vmatpush1.msra.mxu1 %v1142_v26 }
 0x1c4   :  { %1391 = vmatpush1.msra.mxu0 %v1140_v46 }
 0x1c5   :  { %v1046_v18 = vpop.permute.xlu1 %1045  ;;  %2700 = vrot.lane.b32.xlu0 %v2691_v20, %s3124_s20  ;;  %2698 = vrot.lane.b32.xlu1 %v2690_v54, %s3124_s20 }
 0x1c6   :  { %v947_v44 = vpop.permute.xlu0 %946  ;;  %v1050_v38 = vsel %vm205_vm6, %v1044_v24, %v1046_v18 }
 0x1c7   :  { %1463 = vmatprep.subr.mxu1 %v1050_v38 }
 0x1c8   :  { %1464 = vmatpush1.msra.mxu1 %v1049_v15 }
 0x1c9   :  { %v1040_v3 = vpop.permute.xlu1 %1039  ;;  %2704 = vrot.lane.b32.xlu0 %v2693_v7, %s3124_s20  ;;  %2702 = vrot.lane.b32.xlu1 %v2692_v60, %s3124_s20 }
 0x1ca   :  { %v858_v4 = vpop.permute.xlu0 %857  ;;  %v1048_v16 = vsel %vm205_vm6, %v1040_v3, %v1042_v47 }
 0x1cb   :  { %1392 = vmatprep.subr.mxu0 %v1048_v16 }
 0x1cd   :  { %v951_v25 = vpop.permute.xlu1 %950  ;;  %2581 = vrot.lane.b32.xlu0 %v2572_v8, %s3119_s25  ;;  %2607 = vrot.lane.b32.xlu1 %v2598_v14, %s3125_s15 }
 0x1ce   :  { %v945_v52 = vpop.permute.xlu0 %944  ;;  %v957_v11 = vsel %vm109_vm5, %v951_v25, %v953_v9 }
 0x1cf   :  { %1465 = vmatprep.subr.mxu1 %v957_v11  ;;  %v954_v31 = vsel %vm109_vm5, %v945_v52, %v947_v44 }
 0x1d1   :  { %v1038_v30 = vpop.permute.xlu1 %1037  ;;  %2605 = vrot.lane.b32.xlu0 %v2597_v13, %s3125_s15  ;;  %2611 = vrot.lane.b32.xlu1 %v2600_v22, %s3125_s15 }
 0x1d2   :  { %v856_v21 = vpop.permute.xlu0 %855  ;;  %v1047_v51 = vsel %vm205_vm6, %v1038_v30, %v1040_v3 }
 0x1d3   :  { %1393 = vmatpush1.msra.mxu0 %v1047_v51  ;;  %v863_v2 = vsel %vm552_vm10, %v856_v21, %v858_v4 }
 0x1d5   :  { %v949_v61 = vpop.permute.xlu1 %948  ;;  %2609 = vrot.lane.b32.xlu0 %v2599_v10, %s3125_s15 }
 0x1d6   :  { %v767_v50 = vpop.permute.xlu0 %766  ;;  %v955_v5 = vsel %vm109_vm5, %v947_v44, %v949_v61  ;;  %v956_v55 = vsel %vm109_vm5, %v949_v61, %v951_v25 }
 0x1d7   :  { %1394 = vmatprep.subr.mxu0 %v955_v5  ;;  %1466 = vmatpush1.msra.mxu1 %v956_v55 }
 0x1d8   :  { %1395 = vmatpush1.msra.mxu0 %v954_v31  ;;  %v5675_v31 = vld [vmem:[#allocation16_spill] sm:$0xff] }
 0x1d9   :  { %v860_v32 = vpop.permute.xlu1 %859 }
 0x1da   :  { %v761_v19 = vpop.permute.xlu0 %760  ;;  %v864_v29 = vsel %vm552_vm10, %v858_v4, %v860_v32  ;;  %v5676_v32 = vld [vmem:[#allocation17_spill] sm:$0xff] }
 0x1db   :  { %1467 = vmatprep.subr.mxu1 %v864_v29  ;;  %v5677_v29 = vld [vmem:[#allocation22_spill] sm:$0xff] }
 0x1dc   :  { %1468 = vmatpush1.msra.mxu1 %v863_v2  ;;  %v5678_v2 = vld [vmem:[#allocation14_spill] sm:$0xff] }
 0x1dd   :  { %v854_v41 = vpop.permute.xlu1 %853 }
 0x1de   :  { %v671_v49 = vpop.permute.xlu0 %670  ;;  %v862_v48 = vsel %vm552_vm10, %v854_v41, %v856_v21 }
 0x1df   :  { %1396 = vmatprep.subr.mxu0 %v862_v48  ;;  %v5679_v48 = vld [vmem:[#allocation21_spill] sm:$0xff] }
 0x1e1   :  { %v765_v45 = vpop.permute.xlu1 %764 }
 0x1e2   :  { %v759_v17 = vpop.permute.xlu0 %758  ;;  %v771_v0 = vsel %vm48_vm0, %v765_v45, %v767_v50 }
 0x1e3   :  { %1469 = vmatprep.subr.mxu1 %v771_v0  ;;  %v768_v58 = vsel %vm48_vm0, %v759_v17, %v761_v19  ;;  %v5680_v17 = vld [vmem:[#allocation13_spill] sm:$0xff]  ;;  %v5681_v0 = vld [vmem:[#allocation12_spill] sm:$0xff] }
 0x1e5   :  { %v852_v62 = vpop.permute.xlu1 %851 }
 0x1e6   :  { %v861_v23 = vsel %vm552_vm10, %v852_v62, %v854_v41  ;;  %v669_v35 = vpop.permute.xlu0 %668  ;;  %v207_v41 = vsel %vm205_vm6, %v5678_v2, %v5677_v29  ;;  %v113_v62 = vsel %vm109_vm5, %v5681_v0, %v5680_v17 }
 0x1e7   :  { %1397 = vmatpush1.msra.mxu0 %v861_v23  ;;  %v677_v59 = vsel %vm674_vm9, %v669_v35, %v671_v49  ;;  %v1315_v23 = vld [vmem:[%s5600_s1] sm:$0xf] }
 0x1e9   :  { %v763_v12 = vpop.permute.xlu1 %762 }
 0x1ea   :  { %v769_v43 = vsel %vm48_vm0, %v761_v19, %v763_v12  ;;  %v770_v24 = vsel %vm48_vm0, %v763_v12, %v765_v45  ;;  %v580_v33 = vpop.permute.xlu0 %579  ;;  %v209_v19 = vsel %vm205_vm6, %v5676_v32, %v5675_v31  ;;  %v206_v45 = vsel %vm205_vm6, %v5679_v48, %v5678_v2  ;;  %v5683_v12 = vld [vmem:[#allocation11_spill] sm:$0xff]  ;;  %v2318_v2 = vld [vmem:[%s5598_s5 + $0x100] sm:$0xff] }
 0x1eb   :  { %1398 = vmatprep.subr.mxu0 %v769_v43  ;;  %1470 = vmatpush1.msra.mxu1 %v770_v24  ;;  %v2320_v48 = vld [vmem:[%s5598_s5 + $0x110] sm:$0xff] }
 0x1ec   :  { %1399 = vmatpush1.msra.mxu0 %v768_v58  ;;  %v5684_v58 = vld [vmem:[#allocation18_spill] sm:$0xff] }
 0x1ed   :  { %v673_v6 = vpop.permute.xlu1 %672 }
 0x1ee   :  { %v678_v40 = vsel %vm674_vm9, %v671_v49, %v673_v6  ;;  %v208_v49 = vsel %vm205_vm6, %v5677_v29, %v5676_v32  ;;  %v2505_v6 = vld [vmem:[%s5598_s5 + $0x148] sm:$0xff] }
 0x1ef   :  { %1471 = vmatprep.subr.mxu1 %v678_v40  ;;  %v574_v28 = vpop.permute.xlu0 %573  ;;  %2514 = vrot.lane.b32.xlu0 %v2505_v6, %s3122_s18  ;;  %v4459_v40 = vld [vmem:[#allocation3 + $0x14] sm:$0xf]  ;;  %v2319_v32 = vld [vmem:[%s5598_s5 + $0x108] sm:$0xff] }
 0x1f0   :  { %1472 = vmatpush1.msra.mxu1 %v677_v59  ;;  %v2479_v59 = vcombine.low %v4459_v40, %v4459_v40 }
 0x1f1   :  { %v667_v37 = vpop.permute.xlu1 %666 }
 0x1f2   :  { %v676_v42 = vsel %vm674_vm9, %v667_v37, %v669_v35  ;;  %v5682_v35 = vld [vmem:[#allocation20_spill] sm:$0xff]  ;;  %2488 = vrot.lane.b32.xlu1 %v2479_v59, %s3121_s13 }
 0x1f3   :  { %1400 = vmatprep.subr.mxu0 %v676_v42  ;;  %v111_v43 = vsel %vm109_vm5, %v5683_v12, %v5682_v35  ;;  %v112_v24 = vsel %vm109_vm5, %v5682_v35, %v5681_v0  ;;  %v2506_v42 = vld [vmem:[%s5598_s5 + $0x150] sm:$0xff]  ;;  %v2225_v35 = vld [vmem:[%s5598_s5 + $0xe0] sm:$0xff]  ;;  %v2228_v59 = vld [vmem:[%s5598_s5 + $0xf8] sm:$0xff] }
 0x1f5   :  { %v578_v63 = vpop.permute.xlu1 %577 }
 0x1f6   :  { %v585_v56 = vsel %vm581_vm8, %v578_v63, %v580_v33  ;;  %v110_v33 = vsel %vm109_vm5, %v5684_v58, %v5683_v12 }
 0x1f7   :  { %1473 = vmatprep.subr.mxu1 %v585_v56  ;;  %v484_v47 = vpop.permute.xlu0 %483 }
 0x1f9   :  { %v665_v57 = vpop.permute.xlu1 %664 }
 0x1fa   :  { %v675_v1 = vsel %vm674_vm9, %v665_v57, %v667_v37  ;;  %v2507_v37 = vld [vmem:[%s5598_s5 + $0x158] sm:$0xff] }
 0x1fb   :  { %1401 = vmatpush1.msra.mxu0 %v675_v1  ;;  %v572_v39 = vpop.permute.xlu0 %571  ;;  %2518 = vrot.lane.b32.xlu0 %v2507_v37, %s3122_s18 }
 0x1fc   :  { %v582_v20 = vsel %vm581_vm8, %v572_v39, %v574_v28 }
 0x1fd   :  { %v576_v9 = vpop.permute.xlu1 %575 }
 0x1fe   :  { %v583_v34 = vsel %vm581_vm8, %v574_v28, %v576_v9  ;;  %v584_v26 = vsel %vm581_vm8, %v576_v9, %v578_v63 }
 0x1ff   :  { %1402 = vmatprep.subr.mxu0 %v583_v34  ;;  %1474 = vmatpush1.msra.mxu1 %v584_v26  ;;  %v482_v54 = vpop.permute.xlu0 %481 }
 0x200   :  { %1403 = vmatpush1.msra.mxu0 %v582_v20  ;;  %v489_v44 = vsel %vm80_vm2, %v482_v54, %v484_v47 }
 0x201   :  { %v486_v46 = vpop.permute.xlu1 %485 }
 0x202   :  { %v490_v18 = vsel %vm80_vm2, %v484_v47, %v486_v46 }
 0x203   :  { %1475 = vmatprep.subr.mxu1 %v490_v18  ;;  %v392_v60 = vpop.permute.xlu0 %391 }
 0x204   :  { %1476 = vmatpush1.msra.mxu1 %v489_v44 }
 0x205   :  { %v480_v38 = vpop.permute.xlu1 %479 }
 0x206   :  { %v488_v7 = vsel %vm80_vm2, %v480_v38, %v482_v54 }
 0x207   :  { %1404 = vmatprep.subr.mxu0 %v488_v7 }
 0x209   :  { %v390_v15 = vpop.permute.xlu1 %389 }
 0x20a   :  { %v396_v3 = vsel %vm176_vm4, %v390_v15, %v392_v60 }
 0x20b   :  { %1477 = vmatprep.subr.mxu1 %v396_v3 }
 0x20d   :  { %v478_v8 = vpop.permute.xlu1 %477 }
 0x20e   :  { %v487_v4 = vsel %vm80_vm2, %v478_v8, %v480_v38 }
 0x20f   :  { %1405 = vmatpush1.msra.mxu0 %v487_v4 }
 0x213   :  { %v388_v16 = vpop.permute.xlu1 %387  ;;  %v386_v14 = vpop.permute.xlu0 %385 }
 0x214   :  { %v394_v25 = vsel %vm176_vm4, %v386_v14, %v388_v16  ;;  %v395_v52 = vsel %vm176_vm4, %v388_v16, %v390_v15 }
 0x215   :  { %1406 = vmatprep.subr.mxu0 %v394_v25  ;;  %1478 = vmatpush1.msra.mxu1 %v395_v52  ;;  %v2411_v52 = vld [vmem:[%s5598_s5 + $0x120] sm:$0xff] }
 0x217   :  { %v299_v11 = vpop.permute.xlu1 %298  ;;  %v297_v13 = vpop.permute.xlu0 %296 }
 0x218   :  { %v303_v22 = vsel %vm271_vm7, %v297_v13, %v299_v11 }
 0x219   :  { %1479 = vmatprep.subr.mxu1 %v303_v22  ;;  %v2413_v22 = vld [vmem:[%s5598_s5 + $0x130] sm:$0xff] }
 0x21b   :  { %v293_v30 = vpop.permute.xlu1 %292  ;;  %v384_v21 = vpop.permute.xlu0 %383 }
 0x21c   :  { %v393_v51 = vsel %vm176_vm4, %v384_v21, %v386_v14  ;;  %v4547_v14 = vld [vmem:[#allocation3 + $0x14] sm:$0xf]  ;;  %v2412_v21 = vld [vmem:[%s5598_s5 + $0x128] sm:$0xff] }
 0x21d   :  { %1407 = vmatpush1.msra.mxu0 %v393_v51  ;;  %v2386_v25 = vcombine.low %v4547_v14, %v4547_v14 }
 0x21f   :  { %v291_v10 = vpop.permute.xlu1 %290  ;;  %v295_v61 = vpop.permute.xlu0 %294 }
 0x220   :  { %v301_v50 = vsel %vm271_vm7, %v293_v30, %v295_v61  ;;  %v302_v5 = vsel %vm271_vm7, %v295_v61, %v297_v13  ;;  %v300_v55 = vsel %vm271_vm7, %v291_v10, %v293_v30  ;;  %v2414_v10 = vld [vmem:[%s5598_s5 + $0x138] sm:$0xff] }
 0x221   :  { %1408 = vmatprep.subr.mxu0 %v301_v50  ;;  %1480 = vmatpush1.msra.mxu1 %v302_v5  ;;  %v4594_v5 = vld [vmem:[#allocation3 + $0x14] sm:$0xf] }
 0x222   :  { %1409 = vmatpush1.msra.mxu0 %v300_v55  ;;  %1481 = vmatprep.subr.mxu1 %v209_v19  ;;  %5687 = vst [vmem:[#allocation5_spill] sm:$0xff] %v4594_v5  ;;  %v2293_v31 = vcombine.low %v4594_v5, %v4594_v5 }
 0x223   :  { %1410 = vmatprep.subr.mxu0 %v207_v41  ;;  %1482 = vmatpush1.msra.mxu1 %v208_v49  ;;  %v4563_v13 = vpop.permute.xlu1 %1583  ;;  %v2321_v41 = vld [vmem:[%s5598_s5 + $0x118] sm:$0xff] }
 0x224   :  { %1411 = vmatpush1.msra.mxu0 %v206_v45  ;;  %1483 = vmatprep.subr.mxu1 %v113_v62  ;;  %v4626_v45 = vld [vmem:[#allocation3 + $0x14] sm:$0xf] }
 0x225   :  { %1412 = vmatprep.subr.mxu0 %v111_v43  ;;  %1484 = vmatpush1.msra.mxu1 %v112_v24  ;;  %5688 = vst [vmem:[#allocation10_spill] sm:$0xff] %v4626_v45  ;;  %v2200_v0 = vcombine.low %v4626_v45, %v4626_v45  ;;  %v2227_v43 = vld [vmem:[%s5598_s5 + $0xf0] sm:$0xff] }
 0x226   :  { %1413 = vmatpush1.msra.mxu0 %v110_v33  ;;  %3051 = vmatmul.mubr.msk.f32.vlgmr.msra.gmra.mxu1 %vm1378_vm12, %v1315_v23  ;;  %v2226_v33 = vld [vmem:[%s5598_s5 + $0xe8] sm:$0xff] }
 0x227   :  { %3050 = vmatmul.mubr.msk.f32.vlgmr.msra.gmra.mxu0 %vm1378_vm12, %v1315_v23  ;;  %3017 = vmatprep.mubr.f32.mxu1 %v3130_v27  ;;  %v4579_v51 = vpop.permute.xlu1 %1587 }
 0x228   :  { %2946 = vmatprep.mubr.f32.mxu0 %v3130_v27  ;;  %v2504_v27 = vld [vmem:[%s5598_s5 + $0x140] sm:$0xff] }
 0x229   :  { %2512 = vrot.lane.b32.xlu1 %v2504_v27, %s3122_s18  ;;  %v2132_v27 = vld [vmem:[%s5598_s5 + $0xc0] sm:$0xff] }
 0x22b   :  { %v4589_v50 = vpop.permute.xlu1 %2770 }
 0x22c   :  { %v1376_v63 = vpop.permute.xlu0 %1375 }
 0x22d   :  { %2516 = vrot.lane.b32.xlu1 %v2506_v42, %s3122_s18 }
 0x22f   :  { %v4607_v19 = vpop.permute.xlu1 %2774 }
 0x230   :  { %v4561_v11 = vpop.permute.xlu0 %1585 }
 0x233   :  { %v4619_v49 = vpop.permute.xlu1 %2674 }
 0x234   :  { %v4571_v30 = vpop.permute.xlu0 %1589 }
 0x237   :  { %v4635_v62 = vpop.permute.xlu1 %2698 }
 0x238   :  { %v4587_v61 = vpop.permute.xlu0 %2768 }
 0x23b   :  { %v4645_v12 = vpop.permute.xlu1 %2702 }
 0x23c   :  { %v4596_v55 = vpop.permute.xlu0 %2772 }
 0x23f   :  { %v4658_v58 = vpop.permute.xlu1 %2607 }
 0x240   :  { %v4611_v29 = vpop.permute.xlu0 %2700 }
 0x243   :  { %v4671_v37 = vpop.permute.xlu1 %2611 }
 0x244   :  { %v4628_v17 = vpop.permute.xlu0 %2704 }
 0x248   :  { %v4640_v23 = vpop.permute.xlu0 %2581 }
 0x24c   :  { %v4653_v24 = vpop.permute.xlu0 %2605 }
 0x250   :  { %v4664_v6 = vpop.permute.xlu0 %2609 }
 0x261   :  { %v4679_v42 = vpop.permute.xlu0 %2514 }
 0x2e6   :  { %v1519_v28 = vpop.f32.mrf.mxu1 }
 0x2e7   :  { %v1448_v56 = vpop.f32.mrf.mxu0  ;;  %v1520_v47 = vadd.f32 %v1519_v28, %v1376_v63  ;;  %v4683_v28 = vpop.permute.xlu1 %2488 }
 0x2e8   :  { %v1449_v57 = vadd.f32 %v1448_v56, %v1376_v63  ;;  %v1521_v1 = vpop.f32.mrf.mxu1  ;;  %v4691_v56 = vpop.permute.xlu0 %2518 }
 0x2e9   :  { %v1450_v39 = vpop.f32.mrf.mxu0  ;;  %v1522_v9 = vadd.f32 %v1521_v1, %v1376_v63  ;;  %v1526_v34 = vmax.f32 %v1520_v47, 0.0  ;;  %v2133_v47 = vld [vmem:[%s5598_s5 + $0xc8] sm:$0xff]  ;;  %v2135_v1 = vld [vmem:[%s5598_s5 + $0xd8] sm:$0xff] }
 0x2ea   :  { %v1451_v26 = vadd.f32 %v1450_v39, %v1376_v63  ;;  %v1524_v54 = vmax.f32 %v1449_v57, 0.0  ;;  %v2134_v63 = vld [vmem:[%s5598_s5 + $0xd0] sm:$0xff] }
 0x2eb   :  { %v4476_v20 = vmax.f32 %v1522_v9, 0.0  ;;  %v4537_v16 = vcombine.low %v1526_v34, %v1526_v34  ;;  %v4697_v57 = vpop.permute.xlu1 %2512 }
 0x2ec   :  { %v4478_v46 = vmax.f32 %v1451_v26, 0.0  ;;  %v4531_v4 = vcombine.low %v1524_v54, %v1524_v54 }
 0x2ed   :  { %v4481_v18 = vcombine.low %v1526_v34, %v4476_v20 }
 0x2ee   :  { %v4484_v44 = vcombine.low %v1524_v54, %v4478_v46  ;;  %v2041_v54 = vld [vmem:[%s5598_s5 + $0xa8] sm:$0xff] }
 0x2ef   :  { %1537 = vst [vmem:[#allocation3 + $0xc] sm:$0xff] %v4481_v18  ;;  %v4708_v9 = vpop.permute.xlu1 %2516 }
 0x2f0   :  { %1536 = vst [vmem:[#allocation3 + $0x4] sm:$0xff] %v4484_v44  ;;  %2668 = vrot.lane.b32.xlu0 %v4484_v44, %s3119_s25 }
 0x2f4   :  { %2672 = vrot.lane.b32.xlu0 %v4481_v18, %s3119_s25 }
 0x2f6   :  { %v4508_v15 = vld [vmem:[#allocation3 + $0x10] sm:$0xf] }
 0x2f7   :  { %v4492_v38 = vld [vmem:[#allocation3] sm:$0xff]  ;;  %v4498_v7 = vld [vmem:[#allocation3 + $0x8] sm:$0xff]  ;;  %v1550_v3 = vcombine.low %v4508_v15, %v4508_v15  ;;  %v4714_v26 = vld [vmem:[#allocation3 + $0x10] sm:$0xf] }
 0x2f8   :  { %5685 = vst [vmem:[#allocation9_spill] sm:$0xff] %v4492_v38  ;;  %1553 = vrot.lane.b32.xlu1 %v4492_v38, %s3119_s25  ;;  %2482 = vrot.lane.b32.xlu0 %v4484_v44, %s3121_s13  ;;  %5686 = vst [vmem:[#allocation4_spill] sm:$0xff] %v4498_v7  ;;  %v4506_v60 = vcombine.low %v4498_v7, %v4498_v7  ;;  %v4521_v8 = vcombine.low %v4492_v38, %v4492_v38 }
 0x2f9   :  { %5689 = vst [vmem:[#allocation15_spill] sm:$0xff] %v4714_v26 }
 0x2fc   :  { %1557 = vrot.lane.b32.xlu1 %v4498_v7, %s3119_s25  ;;  %2486 = vrot.lane.b32.xlu0 %v4481_v18, %s3121_s13 }
 0x300   :  { %1646 = vrot.lane.b32.xlu1 %v4492_v38, %s3121_s13  ;;  %1555 = vrot.lane.b32.xlu0 %v4506_v60, %s3119_s25 }
 0x304   :  { %1650 = vrot.lane.b32.xlu1 %v4498_v7, %s3121_s13  ;;  %1559 = vrot.lane.b32.xlu0 %v1550_v3, %s3119_s25 }
 0x308   :  { %2575 = vrot.lane.b32.xlu1 %v4484_v44, %s3119_s25  ;;  %1644 = vrot.lane.b32.xlu0 %v4521_v8, %s3121_s13 }
 0x30c   :  { %2579 = vrot.lane.b32.xlu1 %v4481_v18, %s3119_s25  ;;  %1648 = vrot.lane.b32.xlu0 %v4506_v60, %s3121_s13 }
 0x310   :  { %2389 = vrot.lane.b32.xlu1 %v4484_v44, %s3119_s25  ;;  %2666 = vrot.lane.b32.xlu0 %v4531_v4, %s3119_s25 }
 0x314   :  { %2393 = vrot.lane.b32.xlu1 %v4481_v18, %s3119_s25  ;;  %2577 = vrot.lane.b32.xlu0 %v4537_v16, %s3119_s25 }
 0x318   :  { %1551 = vrot.lane.b32.xlu1 %v4521_v8, %s3119_s25  ;;  %2480 = vrot.lane.b32.xlu0 %v4531_v4, %s3121_s13 }
 0x31c   :  { %2670 = vrot.lane.b32.xlu1 %v4537_v16, %s3119_s25  ;;  %2391 = vrot.lane.b32.xlu0 %v4537_v16, %s3119_s25 }
 0x320   :  { %2573 = vrot.lane.b32.xlu1 %v4531_v4, %s3119_s25  ;;  %2395 = vrot.lane.b32.xlu0 %v2386_v25, %s3119_s25  ;;  %v2040_v25 = vld [vmem:[%s5598_s5 + $0xa0] sm:$0xff] }
 0x324   :  { %2484 = vrot.lane.b32.xlu1 %v4537_v16, %s3121_s13  ;;  %2419 = vrot.lane.b32.xlu0 %v2411_v52, %s3120_s30  ;;  %v2043_v52 = vld [vmem:[%s5598_s5 + $0xb8] sm:$0xff] }
 0x328   :  { %2387 = vrot.lane.b32.xlu1 %v4531_v4, %s3119_s25  ;;  %2423 = vrot.lane.b32.xlu0 %v2413_v22, %s3120_s30 }
 0x32c   :  { %2421 = vrot.lane.b32.xlu1 %v2412_v21, %s3120_s30  ;;  %2296 = vrot.lane.b32.xlu0 %v4484_v44, %s3119_s25 }
 0x330   :  { %2425 = vrot.lane.b32.xlu1 %v2414_v10, %s3120_s30  ;;  %2300 = vrot.lane.b32.xlu0 %v4481_v18, %s3119_s25  ;;  %v2042_v10 = vld [vmem:[%s5598_s5 + $0xb0] sm:$0xff] }
 0x334   :  { %2298 = vrot.lane.b32.xlu1 %v4537_v16, %s3119_s25  ;;  %2294 = vrot.lane.b32.xlu0 %v4531_v4, %s3119_s25 }
 0x338   :  { %2302 = vrot.lane.b32.xlu1 %v2293_v31, %s3119_s25  ;;  %2328 = vrot.lane.b32.xlu0 %v2319_v32, %s3126_s8 }
 0x33c   :  { %2326 = vrot.lane.b32.xlu1 %v2318_v2, %s3126_s8  ;;  %2332 = vrot.lane.b32.xlu0 %v2321_v41, %s3126_s8  ;;  %v4744_v2 = vld [vmem:[#allocation3 + $0x10] sm:$0xf] }
 0x33d   :  { %5691 = vst [vmem:[#allocation7_spill] sm:$0xff] %v4744_v2 }
 0x340   :  { %2330 = vrot.lane.b32.xlu1 %v2320_v48, %s3126_s8  ;;  %2205 = vrot.lane.b32.xlu0 %v4537_v16, %s3121_s13 }
 0x344   :  { %2203 = vrot.lane.b32.xlu1 %v4484_v44, %s3121_s13  ;;  %2209 = vrot.lane.b32.xlu0 %v2200_v0, %s3121_s13  ;;  %v1922_v0 = vcombine.low %v4744_v2, %v4744_v2  ;;  %v4815_v2 = vld [vmem:[#allocation3 + $0x10] sm:$0xf] }
 0x345   :  { %5697 = vst [vmem:[#allocation14_spill] sm:$0xff] %v4815_v2 }
 0x348   :  { %2207 = vrot.lane.b32.xlu1 %v4481_v18, %s3121_s13  ;;  %2233 = vrot.lane.b32.xlu0 %v2225_v35, %s3127_s21  ;;  %v1947_v35 = vld [vmem:[%s5598_s5 + $0x80] sm:$0xff] }
 0x34c   :  { %2201 = vrot.lane.b32.xlu1 %v4531_v4, %s3121_s13  ;;  %2237 = vrot.lane.b32.xlu0 %v2227_v43, %s3127_s21 }
 0x350   :  { %2235 = vrot.lane.b32.xlu1 %v2226_v33, %s3127_s21  ;;  %2111 = vrot.lane.b32.xlu0 %v4531_v4, %s3119_s25  ;;  %v2015_v4 = vcombine.low %v4714_v26, %v4714_v26 }
 0x354   :  { %2239 = vrot.lane.b32.xlu1 %v2228_v59, %s3127_s21  ;;  %2115 = vrot.lane.b32.xlu0 %v4537_v16, %s3119_s25  ;;  %v1949_v59 = vld [vmem:[%s5598_s5 + $0x90] sm:$0xff] }
 0x358   :  { %2113 = vrot.lane.b32.xlu1 %v4484_v44, %s3119_s25  ;;  %2140 = vrot.lane.b32.xlu0 %v2132_v27, %s3119_s25 }
 0x35c   :  { %2117 = vrot.lane.b32.xlu1 %v4481_v18, %s3119_s25  ;;  %2144 = vrot.lane.b32.xlu0 %v2134_v63, %s3119_s25 }
 0x360   :  { %2142 = vrot.lane.b32.xlu1 %v2133_v47, %s3119_s25  ;;  %2018 = vrot.lane.b32.xlu0 %v4492_v38, %s3119_s25  ;;  %v1948_v47 = vld [vmem:[%s5598_s5 + $0x88] sm:$0xff] }
 0x362   :  { %v4705_v39 = vpop.permute.xlu0 %2668 }
 0x364   :  { %2146 = vrot.lane.b32.xlu1 %v2135_v1, %s3119_s25  ;;  %2022 = vrot.lane.b32.xlu0 %v4498_v7, %s3119_s25 }
 0x366   :  { %v4712_v34 = vpop.permute.xlu0 %2672 }
 0x368   :  { %2020 = vrot.lane.b32.xlu1 %v4506_v60, %s3119_s25  ;;  %2016 = vrot.lane.b32.xlu0 %v4521_v8, %s3119_s25 }
 0x36a   :  { %v1554_v3 = vpop.permute.xlu1 %1553  ;;  %v4725_v16 = vpop.permute.xlu0 %2482 }
 0x36c   :  { %2024 = vrot.lane.b32.xlu1 %v2015_v4, %s3119_s25  ;;  %2050 = vrot.lane.b32.xlu0 %v2041_v54, %s3128_s29 }
 0x36e   :  { %v1558_v22 = vpop.permute.xlu1 %1557  ;;  %v4735_v21 = vpop.permute.xlu0 %2486 }
 0x370   :  { %2048 = vrot.lane.b32.xlu1 %v2040_v25, %s3128_s29  ;;  %2054 = vrot.lane.b32.xlu0 %v2043_v52, %s3128_s29  ;;  %v4789_v25 = vcombine.high %v4492_v38, %v4492_v38  ;;  %v1950_v52 = vld [vmem:[%s5598_s5 + $0x98] sm:$0xff] }
 0x372   :  { %v4742_v31 = vpop.permute.xlu1 %1646  ;;  %v1556_v32 = vpop.permute.xlu0 %1555  ;;  %5695 = vst [vmem:[#allocation17_spill] sm:$0xff] %v4789_v25 }
 0x373   :  { %5690 = vst [vmem:[#allocation19_spill] sm:$0xff] %v4742_v31  ;;  %v1562_v4 = vsel %vm48_vm0, %v1554_v3, %v1556_v32 }
 0x374   :  { %2052 = vrot.lane.b32.xlu1 %v2042_v10, %s3128_s29  ;;  %1927 = vrot.lane.b32.xlu0 %v4506_v60, %s3129_s10 }
 0x376   :  { %v4749_v41 = vpop.permute.xlu1 %1650  ;;  %v1560_v48 = vpop.permute.xlu0 %1559 }
 0x377   :  { %5692 = vst [vmem:[#allocation8_spill] sm:$0xff] %v4749_v41 }
 0x378   :  { %1925 = vrot.lane.b32.xlu1 %v4492_v38, %s3129_s10  ;;  %1931 = vrot.lane.b32.xlu0 %v1922_v0, %s3129_s10 }
 0x37a   :  { %v4759_v43 = vpop.permute.xlu1 %2575  ;;  %v4761_v33 = vpop.permute.xlu0 %1644 }
 0x37b   :  { %5693 = vst [vmem:[#allocation6_spill] sm:$0xff] %v4761_v33  ;;  %v4809_v33 = vcombine.high %v4498_v7, %v4498_v7 }
 0x37c   :  { %1929 = vrot.lane.b32.xlu1 %v4498_v7, %s3129_s10  ;;  %1955 = vrot.lane.b32.xlu0 %v1947_v35, %s3123_s28  ;;  %v1571_v35 = vsel %vm58_vm1, %v4789_v25, %v1562_v4 }
 0x37d   :  { %5696 = vst [vmem:[#allocation22_spill] sm:$0xff] %v4809_v33 }
 0x37e   :  { %v4769_v27 = vpop.permute.xlu1 %2579  ;;  %v4771_v63 = vpop.permute.xlu0 %1648 }
 0x37f   :  { %5694 = vst [vmem:[#allocation16_spill] sm:$0xff] %v4771_v63 }
 0x380   :  { %1923 = vrot.lane.b32.xlu1 %v4521_v8, %s3129_s10  ;;  %1959 = vrot.lane.b32.xlu0 %v1949_v59, %s3123_s28  ;;  %v1564_v59 = vsel %vm48_vm0, %v1558_v22, %v1560_v48 }
 0x381   :  { %v1573_v4 = vsel %vm58_vm1, %v4809_v33, %v1564_v59  ;;  %v1574_v59 = vsel %vm58_vm1, %v4508_v15, %v1560_v48  ;;  %v1855_v15 = vld [vmem:[%s5598_s5 + $0x68] sm:$0xff] }
 0x382   :  { %v4779_v1 = vpop.permute.xlu1 %2389  ;;  %v4781_v54 = vpop.permute.xlu0 %2666 }
 0x384   :  { %1957 = vrot.lane.b32.xlu1 %v1948_v47, %s3123_s28  ;;  %1832 = vrot.lane.b32.xlu0 %v4492_v38, %s3119_s25  ;;  %v1591_v47 = vsel %vm80_vm2, %v4563_v13, %v4561_v11 }
 0x385   :  { %v1600_v31 = vmul.f32 %v1591_v47, %v1571_v35  ;;  %v1829_v35 = vcombine.low %v4815_v2, %v4815_v2  ;;  %v1563_v2 = vsel %vm48_vm0, %v1556_v32, %v1558_v22  ;;  %v1592_v22 = vsel %vm80_vm2, %v4561_v11, %v4579_v51  ;;  %v1857_v32 = vld [vmem:[%s5598_s5 + $0x78] sm:$0xff] }
 0x386   :  { %v4794_v10 = vpop.permute.xlu1 %2393  ;;  %v4796_v0 = vpop.permute.xlu0 %2577  ;;  %v1572_v48 = vsel %vm58_vm1, %v4498_v7, %v1563_v2  ;;  %v1854_v2 = vld [vmem:[%s5598_s5 + $0x60] sm:$0xff] }
 0x388   :  { %1961 = vrot.lane.b32.xlu1 %v1950_v52, %s3123_s28  ;;  %1836 = vrot.lane.b32.xlu0 %v4498_v7, %s3119_s25  ;;  %v1593_v52 = vsel %vm80_vm2, %v4579_v51, %v4571_v30  ;;  %v4876_v51 = vld [vmem:[#allocation3 + $0x10] sm:$0xf] }
 0x389   :  { %v1602_v26 = vmul.f32 %v1593_v52, %v1573_v4  ;;  %5699 = vst [vmem:[#allocation13_spill] sm:$0xff] %v4876_v51 }
 0x38a   :  { %v1552_v63 = vpop.permute.xlu1 %1551  ;;  %v4811_v41 = vpop.permute.xlu0 %2480 }
 0x38b   :  { %v1561_v33 = vsel %vm48_vm0, %v1552_v63, %v1554_v3 }
 0x38c   :  { %1834 = vrot.lane.b32.xlu1 %v4506_v60, %s3119_s25  ;;  %1611 = vrot.lane.b32.xlu0 %v1600_v31, %s3123_s28  ;;  %v1603_v31 = vmul.f32 %v4571_v30, %v1574_v59  ;;  %v1570_v52 = vsel %vm58_vm1, %v4492_v38, %v1561_v33  ;;  %v1856_v59 = vld [vmem:[%s5598_s5 + $0x70] sm:$0xff] }
 0x38d   :  { %v1599_v30 = vmul.f32 %v4563_v13, %v1570_v52  ;;  %v1601_v13 = vmul.f32 %v1592_v22, %v1572_v48  ;;  %v1763_v22 = vld [vmem:[%s5598_s5 + $0x50] sm:$0xff] }
 0x38e   :  { %v4823_v25 = vpop.permute.xlu1 %2670  ;;  %v4827_v47 = vpop.permute.xlu0 %2391 }
 0x390   :  { %1838 = vrot.lane.b32.xlu1 %v1829_v35, %s3119_s25  ;;  %1615 = vrot.lane.b32.xlu0 %v1602_v26, %s3123_s28 }
 0x392   :  { %v4835_v45 = vpop.permute.xlu1 %2573  ;;  %v4837_v4 = vpop.permute.xlu0 %2395 }
 0x394   :  { %1617 = vrot.lane.b32.xlu1 %v1603_v31, %s3123_s28  ;;  %1830 = vrot.lane.b32.xlu0 %v4521_v8, %s3119_s25 }
 0x396   :  { %v4849_v26 = vpop.permute.xlu1 %2484  ;;  %v4851_v3 = vpop.permute.xlu0 %2419 }
 0x398   :  { %1609 = vrot.lane.b32.xlu1 %v1599_v30, %s3123_s28  ;;  %1864 = vrot.lane.b32.xlu0 %v1855_v15, %s3124_s20  ;;  %v1736_v15 = vcombine.low %v4876_v51, %v4876_v51  ;;  %v1761_v30 = vld [vmem:[%s5598_s5 + $0x40] sm:$0xff]  ;;  %v1762_v51 = vld [vmem:[%s5598_s5 + $0x48] sm:$0xff] }
 0x39a   :  { %v4863_v33 = vpop.permute.xlu1 %2387  ;;  %v4865_v63 = vpop.permute.xlu0 %2423 }
 0x39b   :  { %5698 = vst [vmem:[#allocation21_spill] sm:$0xff] %v4863_v33 }
 0x39c   :  { %1613 = vrot.lane.b32.xlu1 %v1601_v13, %s3123_s28  ;;  %1868 = vrot.lane.b32.xlu0 %v1857_v32, %s3124_s20 }
 0x39e   :  { %v4872_v35 = vpop.permute.xlu1 %2421  ;;  %v4874_v11 = vpop.permute.xlu0 %2296 }
 0x3a0   :  { %1862 = vrot.lane.b32.xlu1 %v1854_v2, %s3124_s20  ;;  %1741 = vrot.lane.b32.xlu0 %v4506_v60, %s3119_s25  ;;  %v4909_v2 = vld [vmem:[#allocation3 + $0x10] sm:$0xf] }
 0x3a1   :  { %5702 = vst [vmem:[#allocation11_spill] sm:$0xff] %v4909_v2 }
 0x3a2   :  { %v4884_v31 = vpop.permute.xlu1 %2425  ;;  %v4886_v52 = vpop.permute.xlu0 %2300 }
 0x3a3   :  { %5700 = vst [vmem:[#allocation12_spill] sm:$0xff] %v4886_v52  ;;  %v2778_v52 = vsel %vm109_vm5, %v4596_v55, %v4607_v19 }
 0x3a4   :  { %1866 = vrot.lane.b32.xlu1 %v1856_v59, %s3124_s20  ;;  %1745 = vrot.lane.b32.xlu0 %v1736_v15, %s3119_s25 }
 0x3a6   :  { %v4895_v60 = vpop.permute.xlu1 %2298  ;;  %v4897_v48 = vpop.permute.xlu0 %2294 }
 0x3a7   :  { %5701 = vst [vmem:[#allocation20_spill] sm:$0xff] %v4897_v48  ;;  %v2757_v48 = vsel %vm58_vm1, %v4481_v18, 0.0 }
 0x3a8   :  { %1739 = vrot.lane.b32.xlu1 %v4492_v38, %s3119_s25  ;;  %1769 = vrot.lane.b32.xlu0 %v1761_v30, %s3125_s15  ;;  %v1643_v30 = vcombine.low %v4909_v2, %v4909_v2 }
 0x3aa   :  { %v4905_v32 = vpop.permute.xlu1 %2302  ;;  %v4907_v13 = vpop.permute.xlu0 %2328 }
 0x3ac   :  { %1743 = vrot.lane.b32.xlu1 %v4498_v7, %s3119_s25  ;;  %1773 = vrot.lane.b32.xlu0 %v1763_v22, %s3125_s15  ;;  %v1669_v22 = vld [vmem:[%s5598_s5 + $0x28] sm:$0xff] }
 0x3ae   :  { %v4914_v59 = vpop.permute.xlu1 %2326  ;;  %v4916_v15 = vpop.permute.xlu0 %2332 }
 0x3af   :  { %5703 = vst [vmem:[#allocation18_spill] sm:$0xff] %v4916_v15 }
 0x3b0   :  { %1737 = vrot.lane.b32.xlu1 %v4521_v8, %s3119_s25  ;;  %1652 = vrot.lane.b32.xlu0 %v1643_v30, %s3121_s13  ;;  %v1764_v8 = vld [vmem:[%s5598_s5 + $0x58] sm:$0xff] }
 0x3b1   :  { %v1671_v30 = vld [vmem:[%s5598_s5 + $0x38] sm:$0xff] }
 0x3b2   :  { %v4929_v7 = vpop.permute.xlu1 %2330  ;;  %v4931_v38 = vpop.permute.xlu0 %2205 }
 0x3b3   :  { %5704 = vst [vmem:[#allocation23_spill] sm:$0xff] %v4929_v7  ;;  %5705 = vst [vmem:[#allocation24_spill] sm:$0xff] %v4931_v38  ;;  %v1668_v38 = vld [vmem:[%s5598_s5 + $0x20] sm:$0xff]  ;;  %v4961_v7 = vcombine.low %v4478_v46, %v4478_v46 }
 0x3b4   :  { %1771 = vrot.lane.b32.xlu1 %v1762_v51, %s3125_s15  ;;  %1678 = vrot.lane.b32.xlu0 %v1669_v22, %s3122_s18  ;;  %v2777_v51 = vsel %vm109_vm5, %v4589_v50, %v4596_v55  ;;  %v2748_v22 = vld [vmem:[#allocation3 + $0x14] sm:$0xf] }
 0x3b5   :  { %v2786_v33 = vmul.f32 %v2777_v51, %v2757_v48  ;;  %v2759_v15 = vsel %vm58_vm1, %v2748_v22, 0.0  ;;  %v1670_v48 = vld [vmem:[%s5598_s5 + $0x30] sm:$0xff]  ;;  %v2756_v22 = vsel %vm58_vm1, %v4961_v7, 0.0 }
 0x3b6   :  { %v4941_v2 = vpop.permute.xlu1 %2203  ;;  %v4943_v5 = vpop.permute.xlu0 %2209 }
 0x3b7   :  { %5706 = vst [vmem:[#allocation25_spill] sm:$0xff] %v4941_v2  ;;  %5707 = vst [vmem:[#allocation26_spill] sm:$0xff] %v4943_v5 }
 0x3b8   :  { %1775 = vrot.lane.b32.xlu1 %v1764_v8, %s3125_s15  ;;  %1682 = vrot.lane.b32.xlu0 %v1671_v30, %s3122_s18  ;;  %v2677_v8 = vsel %vm48_vm0, %v4705_v39, %v4823_v25  ;;  %v2788_v30 = vmul.f32 %v4607_v19, %v2759_v15  ;;  %v2679_v15 = vsel %vm48_vm0, %v4712_v34, %v4619_v49  ;;  %v2755_v19 = vsel %vm58_vm1, %v4484_v44, 0.0 }
 0x3ba   :  { %v4955_v2 = vpop.permute.xlu1 %2207  ;;  %v4957_v5 = vpop.permute.xlu0 %2233 }
 0x3bb   :  { %5708 = vst [vmem:[#allocation27_spill] sm:$0xff] %v4955_v2  ;;  %5709 = vst [vmem:[#allocation28_spill] sm:$0xff] %v4957_v5  ;;  %v2776_v5 = vsel %vm109_vm5, %v4587_v61, %v4589_v50 }
 0x3bc   :  { %1676 = vrot.lane.b32.xlu1 %v1668_v38, %s3122_s18  ;;  %2798 = vrot.lane.b32.xlu0 %v2786_v33, %s3120_s30  ;;  %v4984_v38 = vcombine.low %v4476_v20, %v4476_v20  ;;  %v2686_v33 = vsel %vm58_vm1, %v4961_v7, %v2677_v8  ;;  %v2785_v50 = vmul.f32 %v2776_v5, %v2756_v22 }
 0x3bd   :  { %v2708_v5 = vsel %vm205_vm6, %v4645_v12, %v4628_v17 }
 0x3be   :  { %v4973_v51 = vpop.permute.xlu1 %2201  ;;  %v4975_v46 = vpop.permute.xlu0 %2237  ;;  %v2758_v8 = vsel %vm58_vm1, %v4984_v38, 0.0 }
 0x3bf   :  { %5710 = vst [vmem:[#allocation29_spill] sm:$0xff] %v4973_v51  ;;  %5711 = vst [vmem:[#allocation30_spill] sm:$0xff] %v4975_v46  ;;  %v2706_v51 = vsel %vm205_vm6, %v4635_v62, %v4611_v29 }
 0x3c0   :  { %1680 = vrot.lane.b32.xlu1 %v1670_v48, %s3122_s18  ;;  %2802 = vrot.lane.b32.xlu0 %v2788_v30, %s3120_s30  ;;  %v2715_v46 = vmul.f32 %v2706_v51, %v2686_v33  ;;  %v2688_v48 = vsel %vm58_vm1, %v4984_v38, %v2679_v15  ;;  %v2676_v30 = vsel %vm48_vm0, %v4781_v54, %v4705_v39 }
 0x3c1   :  { %v2787_v51 = vmul.f32 %v2778_v52, %v2758_v8  ;;  %v2717_v22 = vmul.f32 %v2708_v5, %v2688_v48  ;;  %v2685_v39 = vsel %vm58_vm1, %v4484_v44, %v2676_v30  ;;  %v2678_v54 = vsel %vm48_vm0, %v4823_v25, %v4712_v34 }
 0x3c2   :  { %v4996_v2 = vpop.permute.xlu1 %2235  ;;  %v4998_v20 = vpop.permute.xlu0 %2111  ;;  %v2784_v52 = vmul.f32 %v4587_v61, %v2755_v19  ;;  %v2714_v15 = vmul.f32 %v4635_v62, %v2685_v39  ;;  %v2687_v48 = vsel %vm58_vm1, %v4481_v18, %v2678_v54  ;;  %v2707_v61 = vsel %vm205_vm6, %v4611_v29, %v4645_v12 }
 0x3c3   :  { %v2614_v62 = vsel %vm271_vm7, %v4658_v58, %v4664_v6  ;;  %v2716_v25 = vmul.f32 %v2707_v61, %v2687_v48  ;;  %v2596_v19 = vsel %vm58_vm1, %v4363_v36, %v4640_v23  ;;  %v2584_v29 = vsel %vm48_vm0, %v4759_v43, %v4796_v0 }
 0x3c4   :  { %2796 = vrot.lane.b32.xlu1 %v2785_v50, %s3120_s30  ;;  %2726 = vrot.lane.b32.xlu0 %v2715_v46, %s3122_s18  ;;  %v2585_v46 = vsel %vm48_vm0, %v4796_v0, %v4769_v27  ;;  %v2491_v12 = vsel %vm145_vm3, %v4725_v16, %v4849_v26  ;;  %v2593_v36 = vsel %vm58_vm1, %v4961_v7, %v2584_v29 }
 0x3c5   :  { %v2594_v34 = vsel %vm58_vm1, %v4481_v18, %v2585_v46  ;;  %v2500_v0 = vsel %vm58_vm1, %v4961_v7, %v2491_v12  ;;  %v2493_v46 = vsel %vm145_vm3, %v4735_v21, %v4683_v28 }
 0x3c6   :  { %v5015_v33 = vpop.permute.xlu1 %2239  ;;  %v5017_v55 = vpop.permute.xlu0 %2115  ;;  %v2623_v30 = vmul.f32 %v2614_v62, %v2594_v34 }
 0x3c8   :  { %2800 = vrot.lane.b32.xlu1 %v2787_v51, %s3120_s30  ;;  %2730 = vrot.lane.b32.xlu0 %v2717_v22, %s3122_s18  ;;  %v2689_v22 = vsel %vm58_vm1, %v4336_v53, %v4619_v49  ;;  %v2625_v53 = vmul.f32 %v4671_v37, %v2596_v19 }
 0x3c9   :  { %v2718_v39 = vmul.f32 %v4628_v17, %v2689_v22  ;;  %v2586_v17 = vsel %vm48_vm0, %v4769_v27, %v4640_v23  ;;  %v2502_v23 = vsel %vm58_vm1, %v4984_v38, %v2493_v46  ;;  %v2522_v22 = vsel %vm176_vm4, %v4708_v9, %v4691_v56 }
 0x3ca   :  { %v5033_v50 = vpop.permute.xlu1 %2113  ;;  %v5035_v8 = vpop.permute.xlu0 %2140  ;;  %v2595_v27 = vsel %vm58_vm1, %v4984_v38, %v2586_v17  ;;  %v2531_v19 = vmul.f32 %v2522_v22, %v2502_v23 }
 0x3cc   :  { %2794 = vrot.lane.b32.xlu1 %v2784_v52, %s3120_s30  ;;  %2724 = vrot.lane.b32.xlu0 %v2714_v15, %s3122_s18  ;;  %v2613_v52 = vsel %vm271_vm7, %v4653_v24, %v4658_v58  ;;  %v2520_v15 = vsel %vm176_vm4, %v4697_v57, %v4679_v42  ;;  %v2583_v58 = vsel %vm48_vm0, %v4835_v45, %v4759_v43 }
 0x3cd   :  { %v2622_v48 = vmul.f32 %v2613_v52, %v2593_v36  ;;  %v2529_v34 = vmul.f32 %v2520_v15, %v2500_v0  ;;  %v2503_v15 = vsel %vm58_vm1, %v4459_v40, %v4683_v28  ;;  %v2305_v40 = vsel %vm48_vm0, %v4874_v11, %v4895_v60 }
 0x3ce   :  { %v5049_v5 = vpop.permute.xlu1 %2117  ;;  %v5051_v51 = vpop.permute.xlu0 %2144 }
 0x3d0   :  { %2728 = vrot.lane.b32.xlu1 %v2716_v25, %s3122_s18  ;;  %2635 = vrot.lane.b32.xlu0 %v2623_v30, %s3125_s15  ;;  %v2490_v25 = vsel %vm145_vm3, %v4811_v41, %v4725_v16  ;;  %v2615_v30 = vsel %vm271_vm7, %v4664_v6, %v4671_v37  ;;  %v2592_v16 = vsel %vm58_vm1, %v4484_v44, %v2583_v58 }
 0x3d1   :  { %v2624_v29 = vmul.f32 %v2615_v30, %v2595_v27  ;;  %v2499_v41 = vsel %vm58_vm1, %v4484_v44, %v2490_v25  ;;  %v2492_v6 = vsel %vm145_vm3, %v4849_v26, %v4735_v21  ;;  %v2621_v37 = vmul.f32 %v4653_v24, %v2592_v16 }
 0x3d2   :  { %v5069_v49 = vpop.permute.xlu1 %2142  ;;  %v5071_v54 = vpop.permute.xlu0 %2018  ;;  %v2528_v43 = vmul.f32 %v4697_v57, %v2499_v41  ;;  %v2501_v0 = vsel %vm58_vm1, %v4481_v18, %v2492_v6  ;;  %v2428_v21 = vsel %vm80_vm2, %v4872_v35, %v4865_v63  ;;  %v2521_v24 = vsel %vm176_vm4, %v4679_v42, %v4708_v9  ;;  %v5713_v41 = vld [vmem:[#allocation18_spill] sm:$0xff]  ;;  %v5714_v6 = vld [vmem:[#allocation23_spill] sm:$0xff] }
 0x3d3   :  { %v2530_v26 = vmul.f32 %v2521_v24, %v2501_v0  ;;  %v2410_v42 = vsel %vm58_vm1, %v4547_v14, %v4837_v4  ;;  %v2532_v9 = vmul.f32 %v4691_v56, %v2503_v15  ;;  %v2427_v14 = vsel %vm80_vm2, %v4851_v3, %v4872_v35  ;;  %v5712_v35 = vld [vmem:[#allocation12_spill] sm:$0xff] }
 0x3d4   :  { %2732 = vrot.lane.b32.xlu1 %v2718_v39, %s3122_s18  ;;  %2639 = vrot.lane.b32.xlu0 %v2625_v53, %s3125_s15  ;;  %v2399_v39 = vsel %vm48_vm0, %v4827_v47, %v4794_v10  ;;  %v2334_v56 = vsel %vm581_vm8, %v4914_v59, %v4907_v13  ;;  %v2314_v27 = vsel %vm58_vm1, %v4961_v7, %v2305_v40 }
 0x3d5   :  { %v2408_v57 = vsel %vm58_vm1, %v4481_v18, %v2399_v39  ;;  %v2400_v58 = vsel %vm48_vm0, %v4794_v10, %v4837_v4  ;;  %v2307_v30 = vsel %vm48_vm0, %v5712_v35, %v4905_v32  ;;  %v2343_v22 = vmul.f32 %v2334_v56, %v2314_v27  ;;  %v5715_v10 = vld [vmem:[#allocation21_spill] sm:$0xff]  ;;  %v5719_v56 = vld [vmem:[#allocation30_spill] sm:$0xff] }
 0x3d6   :  { %v5091_v61 = vpop.permute.xlu1 %2146  ;;  %v5093_v62 = vpop.permute.xlu0 %2022  ;;  %v2437_v46 = vmul.f32 %v2428_v21, %v2408_v57  ;;  %v2429_v16 = vsel %vm80_vm2, %v4865_v63, %v4884_v31  ;;  %v2397_v4 = vsel %vm48_vm0, %v5715_v10, %v4779_v1  ;;  %v2316_v39 = vsel %vm58_vm1, %v4984_v38, %v2307_v30  ;;  %v5716_v63 = vld [vmem:[#allocation20_spill] sm:$0xff]  ;;  %v5721_v30 = vld [vmem:[#allocation26_spill] sm:$0xff] }
 0x3d8   :  { %2633 = vrot.lane.b32.xlu1 %v2622_v48, %s3125_s15  ;;  %2540 = vrot.lane.b32.xlu0 %v2529_v34, %s3124_s20  ;;  %v2398_v48 = vsel %vm48_vm0, %v4779_v1, %v4827_v47  ;;  %v2439_v34 = vmul.f32 %v4884_v31, %v2410_v42  ;;  %v2304_v31 = vsel %vm48_vm0, %v5716_v63, %v4874_v11  ;;  %v5717_v42 = vld [vmem:[#allocation27_spill] sm:$0xff] }
 0x3d9   :  { %v2407_v47 = vsel %vm58_vm1, %v4961_v7, %v2398_v48  ;;  %v2406_v1 = vsel %vm58_vm1, %v4484_v44, %v2397_v4  ;;  %v2306_v11 = vsel %vm48_vm0, %v4895_v60, %v5712_v35  ;;  %v2119_v4 = vsel %vm48_vm0, %v4998_v20, %v5033_v50 }
 0x3da   :  { %v5113_v12 = vpop.permute.xlu1 %2020  ;;  %v5115_v45 = vpop.permute.xlu0 %2016  ;;  %v2436_v25 = vmul.f32 %v2427_v14, %v2407_v47  ;;  %v2335_v14 = vsel %vm581_vm8, %v4907_v13, %v5714_v6  ;;  %v2315_v60 = vsel %vm58_vm1, %v4481_v18, %v2306_v11  ;;  %v5720_v13 = vld [vmem:[#allocation5_spill] sm:$0xff] }
 0x3db   :  { %v2344_v47 = vmul.f32 %v2335_v14, %v2315_v60  ;;  %v2317_v35 = vsel %vm58_vm1, %v5720_v13, %v4905_v32  ;;  %v5724_v32 = vld [vmem:[#allocation28_spill] sm:$0xff]  ;;  %v5728_v13 = vld [vmem:[#allocation9_spill] sm:$0xff] }
 0x3dc   :  { %2637 = vrot.lane.b32.xlu1 %v2624_v29, %s3125_s15  ;;  %2544 = vrot.lane.b32.xlu0 %v2531_v19, %s3124_s20 }
 0x3de   :  { %v5131_v53 = vpop.permute.xlu1 %2024  ;;  %v5133_v36 = vpop.permute.xlu0 %2050 }
 0x3e0   :  { %2631 = vrot.lane.b32.xlu1 %v2621_v37, %s3125_s15  ;;  %2538 = vrot.lane.b32.xlu0 %v2528_v43, %s3124_s20  ;;  %v2336_v37 = vsel %vm581_vm8, %v5714_v6, %v5713_v41  ;;  %v2409_v43 = vsel %vm58_vm1, %v4984_v38, %v2400_v58  ;;  %v5723_v6 = vld [vmem:[#allocation25_spill] sm:$0xff] }
 0x3e1   :  { %v2438_v0 = vmul.f32 %v2429_v16, %v2409_v43  ;;  %v2345_v21 = vmul.f32 %v2336_v37, %v2316_v39 }
 0x3e2   :  { %v5147_v17 = vpop.permute.xlu1 %2048  ;;  %v5149_v52 = vpop.permute.xlu0 %2054 }
 0x3e4   :  { %2542 = vrot.lane.b32.xlu1 %v2530_v26, %s3124_s20  ;;  %2449 = vrot.lane.b32.xlu0 %v2437_v46, %s3123_s28  ;;  %v2313_v26 = vsel %vm58_vm1, %v4484_v44, %v2304_v31  ;;  %v2435_v46 = vmul.f32 %v4851_v3, %v2406_v1  ;;  %v2242_v3 = vsel %vm674_vm9, %v4996_v2, %v5719_v56  ;;  %v5725_v31 = vld [vmem:[#allocation17_spill] sm:$0xff] }
 0x3e5   :  { %v2342_v15 = vmul.f32 %v4914_v59, %v2313_v26  ;;  %v2214_v1 = vsel %vm145_vm3, %v5717_v42, %v5721_v30 }
 0x3e6   :  { %v5167_v28 = vpop.permute.xlu1 %2052  ;;  %v5169_v23 = vpop.permute.xlu0 %1927  ;;  %v2223_v14 = vsel %vm58_vm1, %v4984_v38, %v2214_v1 }
 0x3e8   :  { %2546 = vrot.lane.b32.xlu1 %v2532_v9, %s3124_s20  ;;  %2453 = vrot.lane.b32.xlu0 %v2439_v34, %s3123_s28  ;;  %v5718_v9 = vld [vmem:[#allocation24_spill] sm:$0xff] }
 0x3e9   :  { %v2213_v48 = vsel %vm145_vm3, %v5718_v9, %v5717_v42  ;;  %v2212_v37 = vsel %vm145_vm3, %v5723_v6, %v5718_v9  ;;  %v2150_v9 = vsel %vm48_vm0, %v5051_v51, %v5091_v61 }
 0x3ea   :  { %v5189_v19 = vpop.permute.xlu1 %1925  ;;  %v5191_v29 = vpop.permute.xlu0 %1931  ;;  %v2222_v59 = vsel %vm58_vm1, %v4481_v18, %v2213_v48  ;;  %v2346_v18 = vmul.f32 %v5713_v41, %v2317_v35  ;;  %v2148_v41 = vsel %vm48_vm0, %v5035_v8, %v5069_v49  ;;  %v2221_v63 = vsel %vm58_vm1, %v4961_v7, %v2212_v37  ;;  %v5726_v48 = vld [vmem:[#allocation29_spill] sm:$0xff] }
 0x3eb   :  { %v2251_v27 = vmul.f32 %v2242_v3, %v2222_v59  ;;  %v2243_v7 = vsel %vm674_vm9, %v5719_v56, %v5015_v33  ;;  %v2211_v42 = vsel %vm145_vm3, %v5726_v48, %v5723_v6  ;;  %v5727_v3 = vld [vmem:[#allocation22_spill] sm:$0xff]  ;;  %v2127_v35 = vsel %vm58_vm1, %v5728_v13, %v4998_v20 }
 0x3ec   :  { %2447 = vrot.lane.b32.xlu1 %v2436_v25, %s3123_s28  ;;  %2354 = vrot.lane.b32.xlu0 %v2343_v22, %s3128_s29  ;;  %v5722_v22 = vld [vmem:[#allocation10_spill] sm:$0xff]  ;;  %v2252_v59 = vmul.f32 %v2243_v7, %v2223_v14  ;;  %v2149_v6 = vsel %vm48_vm0, %v5069_v49, %v5051_v51  ;;  %v2057_v20 = vsel %vm552_vm10, %v5133_v36, %v5167_v28 }
 0x3ed   :  { %v2224_v16 = vsel %vm58_vm1, %v5722_v22, %v5721_v30  ;;  %v2120_v30 = vsel %vm48_vm0, %v5033_v50, %v5017_v55  ;;  %v2156_v22 = vmul.f32 %v5035_v8, %v2127_v35  ;;  %v2029_v14 = vsel %vm48_vm0, %v5093_v62, %v5131_v53 }
 0x3ee   :  { %v5211_v24 = vpop.permute.xlu1 %1929  ;;  %v5213_v57 = vpop.permute.xlu0 %1955  ;;  %v2253_v10 = vmul.f32 %v5015_v33, %v2224_v16 }
 0x3f0   :  { %2451 = vrot.lane.b32.xlu1 %v2438_v0, %s3123_s28  ;;  %2358 = vrot.lane.b32.xlu0 %v2345_v21, %s3128_s29  ;;  %v2241_v0 = vsel %vm674_vm9, %v5724_v32, %v4996_v2  ;;  %v2128_v21 = vsel %vm58_vm1, %v5725_v31, %v2119_v4  ;;  %v2121_v2 = vsel %vm48_vm0, %v5017_v55, %v5049_v5  ;;  %v5729_v55 = vld [vmem:[#allocation4_spill] sm:$0xff] }
 0x3f1   :  { %v2250_v26 = vmul.f32 %v2241_v0, %v2221_v63  ;;  %v2130_v60 = vsel %vm58_vm1, %v5727_v3, %v2121_v2  ;;  %v2129_v50 = vsel %vm58_vm1, %v5729_v55, %v2120_v30  ;;  %v2098_v0 = vld [vmem:[#allocation3 + $0x10] sm:$0xf] }
 0x3f2   :  { %v5229_v34 = vpop.permute.xlu1 %1923  ;;  %v5231_v40 = vpop.permute.xlu0 %1959  ;;  %v2159_v33 = vmul.f32 %v2150_v9, %v2130_v60  ;;  %v5730_v63 = vld [vmem:[#allocation15_spill] sm:$0xff] }
 0x3f4   :  { %2445 = vrot.lane.b32.xlu1 %v2435_v46, %s3123_s28  ;;  %2352 = vrot.lane.b32.xlu0 %v2342_v15, %s3128_s29  ;;  %v2157_v46 = vmul.f32 %v2148_v41, %v2128_v21  ;;  %v2131_v41 = vsel %vm58_vm1, %v2098_v0, %v5049_v5  ;;  %v2039_v21 = vsel %vm58_vm1, %v5730_v63, %v5131_v53 }
 0x3f5   :  { %v2160_v1 = vmul.f32 %v5091_v61, %v2131_v41  ;;  %v2068_v2 = vmul.f32 %v5149_v52, %v2039_v21  ;;  %v2056_v5 = vsel %vm552_vm10, %v5147_v17, %v5133_v36  ;;  %v2038_v53 = vsel %vm58_vm1, %v5727_v3, %v2029_v14 }
 0x3f6   :  { %v5245_v58 = vpop.permute.xlu1 %1957  ;;  %v5247_v25 = vpop.permute.xlu0 %1832 }
 0x3f7   :  { %v1963_v61 = vsel %vm109_vm5, %v5213_v57, %v5245_v58 }
 0x3f8   :  { %2356 = vrot.lane.b32.xlu1 %v2344_v47, %s3128_s29  ;;  %2263 = vrot.lane.b32.xlu0 %v2251_v27, %s3119_s25  ;;  %v2220_v27 = vsel %vm58_vm1, %v4484_v44, %v2211_v42  ;;  %v2028_v44 = vsel %vm48_vm0, %v5113_v12, %v5093_v62  ;;  %v1933_v62 = vsel %vm428_vm11, %v5229_v34, %v5189_v19 }
 0x3f9   :  { %v2249_v38 = vmul.f32 %v5724_v32, %v2220_v27  ;;  %v2037_v8 = vsel %vm58_vm1, %v5729_v55, %v2028_v44  ;;  %v2058_v27 = vsel %vm552_vm10, %v5167_v28, %v5149_v52  ;;  %v2026_v52 = vsel %vm48_vm0, %v5115_v45, %v5071_v54 }
 0x3fa   :  { %v5265_v43 = vpop.permute.xlu1 %1961  ;;  %v5267_v39 = vpop.permute.xlu0 %1836  ;;  %v2066_v4 = vmul.f32 %v2057_v20, %v2037_v8  ;;  %v2067_v28 = vmul.f32 %v2058_v27, %v2038_v53  ;;  %v2035_v34 = vsel %vm58_vm1, %v5728_v13, %v2026_v52  ;;  %v1964_v8 = vsel %vm109_vm5, %v5245_v58, %v5231_v40 }
 0x3fb   :  { %v1965_v35 = vsel %vm109_vm5, %v5231_v40, %v5265_v43  ;;  %v5731_v40 = vld [vmem:[#allocation7_spill] sm:$0xff] }
 0x3fc   :  { %2360 = vrot.lane.b32.xlu1 %v2346_v18, %s3128_s29  ;;  %2267 = vrot.lane.b32.xlu0 %v2253_v10, %s3119_s25  ;;  %v2158_v10 = vmul.f32 %v2149_v6, %v2129_v50  ;;  %v1946_v58 = vsel %vm58_vm1, %v5731_v40, %v5191_v29 }
 0x3fd   :  { %v1975_v41 = vmul.f32 %v5265_v43, %v1946_v58  ;;  %v5737_v58 = vld [vmem:[#allocation11_spill] sm:$0xff] }
 0x3fe   :  { %v5287_v11 = vpop.permute.xlu1 %1834  ;;  %v1612_v15 = vpop.permute.xlu0 %1611 }
 0x3ff   :  { %v1842_v6 = vsel %vm48_vm0, %v5287_v11, %v5267_v39 }
 0x400   :  { %2261 = vrot.lane.b32.xlu1 %v2250_v26, %s3119_s25  ;;  %2168 = vrot.lane.b32.xlu0 %v2157_v46, %s3127_s21  ;;  %v2027_v26 = vsel %vm48_vm0, %v5071_v54, %v5113_v12  ;;  %v1934_v46 = vsel %vm428_vm11, %v5189_v19, %v5169_v23  ;;  %v1942_v19 = vsel %vm58_vm1, %v5728_v13, %v1933_v62 }
 0x401   :  { %v2036_v42 = vsel %vm58_vm1, %v5725_v31, %v2027_v26  ;;  %v1943_v36 = vsel %vm58_vm1, %v5725_v31, %v1934_v46  ;;  %v1935_v54 = vsel %vm428_vm11, %v5169_v23, %v5211_v24  ;;  %v1971_v45 = vmul.f32 %v5213_v57, %v1942_v19 }
 0x402   :  { %v5304_v56 = vpop.permute.xlu1 %1838  ;;  %v1616_v47 = vpop.permute.xlu0 %1615  ;;  %v2065_v60 = vmul.f32 %v2056_v5, %v2036_v42  ;;  %v1851_v23 = vsel %vm58_vm1, %v5729_v55, %v1842_v6  ;;  %v3113_v5 = vld [vmem:[#allocation3 + $0x8] sm:$0xff] }
 0x404   :  { %2265 = vrot.lane.b32.xlu1 %v2252_v59, %s3119_s25  ;;  %2172 = vrot.lane.b32.xlu0 %v2159_v33, %s3127_s21  ;;  %v1972_v59 = vmul.f32 %v1963_v61, %v1943_v36  ;;  %v1824_v61 = vcombine.high %v3113_v5, %v3113_v5 }
 0x406   :  { %v1618_v16 = vpop.permute.xlu1 %1617  ;;  %v5321_v18 = vpop.permute.xlu0 %1830 }
 0x407   :  { %v5330_v37 = vsel %vm109_vm5, %v1616_v47, %v1618_v16  ;;  %v2064_v16 = vmul.f32 %v5147_v17, %v2035_v34  ;;  %v1944_v17 = vsel %vm58_vm1, %v5729_v55, %v1935_v54  ;;  %v1841_v55 = vsel %vm48_vm0, %v5247_v25, %v5287_v11  ;;  %v5733_v34 = vld [vmem:[#allocation8_spill] sm:$0xff] }
 0x408   :  { %2259 = vrot.lane.b32.xlu1 %v2249_v38, %s3119_s25  ;;  %2166 = vrot.lane.b32.xlu0 %v2156_v22, %s3127_s21  ;;  %v1850_v43 = vsel %vm58_vm1, %v5725_v31, %v1841_v55  ;;  %v1843_v11 = vsel %vm48_vm0, %v5267_v39, %v5304_v56 }
 0x409   :  { %v1852_v39 = vsel %vm58_vm1, %v1824_v61, %v1843_v11 }
 0x40a   :  { %v1610_v51 = vpop.permute.xlu1 %1609  ;;  %v5338_v49 = vpop.permute.xlu0 %1864 }
 0x40b   :  { %v5341_v32 = vsel %vm109_vm5, %v1610_v51, %v1612_v15  ;;  %v5732_v51 = vld [vmem:[#allocation14_spill] sm:$0xff] }
 0x40c   :  { %2170 = vrot.lane.b32.xlu1 %v2158_v10, %s3127_s21  ;;  %2078 = vrot.lane.b32.xlu0 %v2066_v4, %s3126_s8  ;;  %v1853_v0 = vsel %vm58_vm1, %v5732_v51, %v5304_v56  ;;  %v1840_v56 = vsel %vm48_vm0, %v5321_v18, %v5247_v25 }
 0x40e   :  { %v1614_v7 = vpop.permute.xlu1 %1613  ;;  %v5358_v9 = vpop.permute.xlu0 %1868 }
 0x40f   :  { %v5367_v48 = vsel %vm109_vm5, %v1614_v7, %v1616_v47  ;;  %v5370_v12 = vsel %vm109_vm5, %v1612_v15, %v1614_v7  ;;  %v1936_v15 = vsel %vm428_vm11, %v5211_v24, %v5191_v29  ;;  %v1973_v24 = vmul.f32 %v1964_v8, %v1944_v17 }
 0x410   :  { %2174 = vrot.lane.b32.xlu1 %v2160_v1, %s3127_s21  ;;  %2082 = vrot.lane.b32.xlu0 %v2068_v2, %s3126_s8  ;;  %v1945_v38 = vsel %vm58_vm1, %v5727_v3, %v1936_v15  ;;  %v1882_v63 = vmul.f32 %v5358_v9, %v1853_v0 }
 0x411   :  { %v1974_v30 = vmul.f32 %v1965_v35, %v1945_v38  ;;  %v3114_v38 = vld [vmem:[#allocation3] sm:$0xff] }
 0x412   :  { %v5384_v33 = vpop.permute.xlu1 %1862  ;;  %v5386_v47 = vpop.permute.xlu0 %1741  ;;  %v1849_v52 = vsel %vm58_vm1, %v3114_v38, %v1840_v56 }
 0x413   :  { %v1870_v26 = vsel %vm205_vm6, %v5384_v33, %v5338_v49  ;;  %v1878_v25 = vmul.f32 %v5384_v33, %v1849_v52 }
 0x414   :  { %2076 = vrot.lane.b32.xlu1 %v2065_v60, %s3126_s8  ;;  %1983 = vrot.lane.b32.xlu0 %v1972_v59, %s3120_s30  ;;  %v1879_v2 = vmul.f32 %v1870_v26, %v1850_v43 }
 0x416   :  { %v1867_v22 = vpop.permute.xlu1 %1866  ;;  %v5406_v44 = vpop.permute.xlu0 %1745 }
 0x417   :  { %v1871_v13 = vsel %vm205_vm6, %v5338_v49, %v1867_v22  ;;  %v1872_v49 = vsel %vm205_vm6, %v1867_v22, %v5358_v9 }
 0x418   :  { %2080 = vrot.lane.b32.xlu1 %v2067_v28, %s3126_s8  ;;  %1987 = vrot.lane.b32.xlu0 %v1974_v30, %s3120_s30  ;;  %v1880_v57 = vmul.f32 %v1871_v13, %v1851_v23  ;;  %v1881_v15 = vmul.f32 %v1872_v49, %v1852_v39  ;;  %v5735_v23 = vld [vmem:[#allocation13_spill] sm:$0xff] }
 0x41a   :  { %v1740_v20 = vpop.permute.xlu1 %1739  ;;  %v1770_v50 = vpop.permute.xlu0 %1769 }
 0x41b   :  { %v1748_v29 = vsel %vm48_vm0, %v1740_v20, %v5386_v47 }
 0x41c   :  { %2074 = vrot.lane.b32.xlu1 %v2064_v16, %s3126_s8  ;;  %1981 = vrot.lane.b32.xlu0 %v1971_v45, %s3120_s30  ;;  %v1757_v42 = vsel %vm58_vm1, %v5725_v31, %v1748_v29  ;;  %v5734_v16 = vld [vmem:[#allocation16_spill] sm:$0xff] }
 0x41d   :  { %v1656_v54 = vsel %vm145_vm3, %v5734_v16, %v5733_v34 }
 0x41e   :  { %v1744_v10 = vpop.permute.xlu1 %1743  ;;  %v1774_v4 = vpop.permute.xlu0 %1773  ;;  %v1665_v8 = vsel %vm58_vm1, %v3113_v5, %v1656_v54 }
 0x41f   :  { %v1750_v14 = vsel %vm48_vm0, %v1744_v10, %v5406_v44  ;;  %v1749_v18 = vsel %vm48_vm0, %v5386_v47, %v1744_v10 }
 0x420   :  { %1985 = vrot.lane.b32.xlu1 %v1973_v24, %s3120_s30  ;;  %1892 = vrot.lane.b32.xlu0 %v1880_v57, %s3122_s18  ;;  %v1759_v35 = vsel %vm58_vm1, %v1824_v61, %v1750_v14  ;;  %v1758_v6 = vsel %vm58_vm1, %v3113_v5, %v1749_v18  ;;  %v5736_v24 = vld [vmem:[#allocation19_spill] sm:$0xff] }
 0x421   :  { %v1655_v57 = vsel %vm145_vm3, %v5736_v24, %v5734_v16 }
 0x422   :  { %v1738_v21 = vpop.permute.xlu1 %1737  ;;  %v5446_v1 = vpop.permute.xlu0 %1652 }
 0x423   :  { %v1747_v9 = vsel %vm48_vm0, %v1738_v21, %v1740_v20  ;;  %v1667_v51 = vsel %vm58_vm1, %v5737_v58, %v5446_v1 }
 0x424   :  { %1989 = vrot.lane.b32.xlu1 %v1975_v41, %s3120_s30  ;;  %1896 = vrot.lane.b32.xlu0 %v1882_v63, %s3122_s18  ;;  %v1756_v28 = vsel %vm58_vm1, %v3114_v38, %v1747_v9  ;;  %v1657_v63 = vsel %vm145_vm3, %v5733_v34, %v5446_v1  ;;  %v5738_v1 = vld [vmem:[#allocation6_spill] sm:$0xff] }
 0x425   :  { %v1785_v45 = vmul.f32 %v1770_v50, %v1756_v28 }
 0x426   :  { %v1772_v46 = vpop.permute.xlu1 %1771  ;;  %v1679_v7 = vpop.permute.xlu0 %1678 }
 0x427   :  { %v1777_v36 = vsel %vm271_vm7, %v1770_v50, %v1772_v46  ;;  %v1778_v19 = vsel %vm271_vm7, %v1772_v46, %v1774_v4  ;;  %v1760_v50 = vsel %vm58_vm1, %v5735_v23, %v5406_v44  ;;  %v1664_v44 = vsel %vm58_vm1, %v5725_v31, %v1655_v57  ;;  %v2873_v46 = vld [vmem:[%s5601_s4] sm:$0xf] }
 0x428   :  { %v1786_v60 = vmul.f32 %v1777_v36, %v1757_v42  ;;  %1890 = vrot.lane.b32.xlu1 %v1879_v2, %s3122_s18  ;;  %v1787_v20 = vmul.f32 %v1778_v19, %v1758_v6  ;;  %v1666_v31 = vsel %vm58_vm1, %v5727_v3, %v1657_v63 }
 0x42a   :  { %v1776_v59 = vpop.permute.xlu1 %1775  ;;  %1797 = vrot.lane.b32.xlu0 %v1786_v60, %s3125_s15  ;;  %v1683_v27 = vpop.permute.xlu0 %1682 }
 0x42b   :  { %v1779_v62 = vsel %vm271_vm7, %v1774_v4, %v1776_v59  ;;  %v1789_v10 = vmul.f32 %v1776_v59, %v1760_v50  ;;  %v1696_v55 = vmul.f32 %v1683_v27, %v1667_v51 }
 0x42c   :  { %v1788_v53 = vmul.f32 %v1779_v62, %v1759_v35  ;;  %1894 = vrot.lane.b32.xlu1 %v1881_v15, %s3122_s18 }
 0x42e   :  { %v1677_v30 = vpop.permute.xlu1 %1676  ;;  %1801 = vrot.lane.b32.xlu0 %v1788_v53, %s3125_s15  ;;  %v2799_v22 = vpop.permute.xlu0 %2798 }
 0x42f   :  { %v1684_v0 = vsel %vm176_vm4, %v1677_v30, %v1679_v7 }
 0x430   :  { %1888 = vrot.lane.b32.xlu1 %v1878_v25, %s3122_s18  ;;  %v1693_v21 = vmul.f32 %v1684_v0, %v1664_v44 }
 0x432   :  { %v1681_v33 = vpop.permute.xlu1 %1680  ;;  %1795 = vrot.lane.b32.xlu0 %v1785_v45, %s3125_s15  ;;  %v2803_v47 = vpop.permute.xlu0 %2802 }
 0x433   :  { %v1685_v13 = vsel %vm176_vm4, %v1679_v7, %v1681_v33  ;;  %v1686_v43 = vsel %vm176_vm4, %v1681_v33, %v1683_v27  ;;  %v1654_v7 = vsel %vm145_vm3, %v5738_v1, %v5736_v24 }
 0x434   :  { %v1694_v17 = vmul.f32 %v1685_v13, %v1665_v8  ;;  %1799 = vrot.lane.b32.xlu1 %v1787_v20, %s3125_s15  ;;  %v1695_v5 = vmul.f32 %v1686_v43, %v1666_v31  ;;  %v1663_v36 = vsel %vm58_vm1, %v3114_v38, %v1654_v7 }
 0x435   :  { %v1692_v14 = vmul.f32 %v1677_v30, %v1663_v36 }
 0x436   :  { %v2797_v4 = vpop.permute.xlu1 %2796  ;;  %1706 = vrot.lane.b32.xlu0 %v1694_v17, %s3124_s20  ;;  %v2727_v40 = vpop.permute.xlu0 %2726 }
 0x437   :  { %v2805_v41 = vsel %vm80_vm2, %v2797_v4, %v2799_v22 }
 0x438   :  { %1803 = vrot.lane.b32.xlu1 %v1789_v10, %s3125_s15  ;;  %2886 = vmatprep.subr.mxu0 %v2805_v41 }
 0x43a   :  { %v2801_v26 = vpop.permute.xlu1 %2800  ;;  %1710 = vrot.lane.b32.xlu0 %v1696_v55, %s3124_s20  ;;  %v2731_v29 = vpop.permute.xlu0 %2730 }
 0x43b   :  { %v2806_v11 = vsel %vm80_vm2, %v2799_v22, %v2801_v26  ;;  %v2807_v2 = vsel %vm80_vm2, %v2801_v26, %v2803_v47 }
 0x43c   :  { %1704 = vrot.lane.b32.xlu1 %v1693_v21, %s3124_s20  ;;  %2957 = vmatprep.subr.mxu1 %v2807_v2 }
 0x43d   :  { %2958 = vmatpush1.msra.mxu1 %v2806_v11 }
 0x43e   :  { %v2795_v61 = vpop.permute.xlu1 %2794  ;;  %2876 = vperm.xlu0 %3067, %v2873_v46   ;;  %v2725_v49 = vpop.permute.xlu0 %2724 }
 0x43f   :  { %v2804_v42 = vsel %vm80_vm2, %v2795_v61, %v2797_v4  ;;  %v2734_v56 = vsel %vm176_vm4, %v2725_v49, %v2727_v40 }
 0x440   :  { %1708 = vrot.lane.b32.xlu1 %v1695_v5, %s3124_s20  ;;  %2887 = vmatpush1.msra.mxu0 %v2804_v42 }
 0x442   :  { %v2729_v60 = vpop.permute.xlu1 %2728  ;;  %v2636_v39 = vpop.permute.xlu0 %2635 }
 0x443   :  { %v2735_v3 = vsel %vm176_vm4, %v2727_v40, %v2729_v60  ;;  %v2736_v27 = vsel %vm176_vm4, %v2729_v60, %v2731_v29 }
 0x444   :  { %1702 = vrot.lane.b32.xlu1 %v1692_v14, %s3124_s20  ;;  %2888 = vmatprep.subr.mxu0 %v2735_v3 }
 0x445   :  { %2889 = vmatpush1.msra.mxu0 %v2734_v56 }
 0x446   :  { %v2733_v15 = vpop.permute.xlu1 %2732  ;;  %v2640_v9 = vpop.permute.xlu0 %2639 }
 0x447   :  { %v2737_v59 = vsel %vm176_vm4, %v2731_v29, %v2733_v15 }
 0x448   :  { %2959 = vmatprep.subr.mxu1 %v2737_v59 }
 0x449   :  { %2960 = vmatpush1.msra.mxu1 %v2736_v27 }
 0x44a   :  { %v2634_v35 = vpop.permute.xlu1 %2633  ;;  %v2541_v62 = vpop.permute.xlu0 %2540 }
 0x44b   :  { %v2642_v53 = vsel %vm271_vm7, %v2634_v35, %v2636_v39 }
 0x44c   :  { %2890 = vmatprep.subr.mxu0 %v2642_v53 }
 0x44e   :  { %v2638_v38 = vpop.permute.xlu1 %2637  ;;  %v2545_v52 = vpop.permute.xlu0 %2544 }
 0x44f   :  { %v2643_v28 = vsel %vm271_vm7, %v2636_v39, %v2638_v38  ;;  %v2644_v25 = vsel %vm271_vm7, %v2638_v38, %v2640_v9 }
 0x450   :  { %2961 = vmatprep.subr.mxu1 %v2644_v25 }
 0x451   :  { %2962 = vmatpush1.msra.mxu1 %v2643_v28 }
 0x452   :  { %v2632_v18 = vpop.permute.xlu1 %2631  ;;  %v2539_v30 = vpop.permute.xlu0 %2538 }
 0x453   :  { %v2641_v22 = vsel %vm271_vm7, %v2632_v18, %v2634_v35  ;;  %v2548_v54 = vsel %vm205_vm6, %v2539_v30, %v2541_v62 }
 0x454   :  { %2891 = vmatpush1.msra.mxu0 %v2641_v22 }
 0x456   :  { %v2543_v19 = vpop.permute.xlu1 %2542  ;;  %v2450_v34 = vpop.permute.xlu0 %2449 }
 0x457   :  { %v2549_v16 = vsel %vm205_vm6, %v2541_v62, %v2543_v19  ;;  %v2550_v33 = vsel %vm205_vm6, %v2543_v19, %v2545_v52 }
 0x458   :  { %2892 = vmatprep.subr.mxu0 %v2549_v16 }
 0x459   :  { %2893 = vmatpush1.msra.mxu0 %v2548_v54 }
 0x45a   :  { %v2547_v45 = vpop.permute.xlu1 %2546  ;;  %v2454_v6 = vpop.permute.xlu0 %2453 }
 0x45b   :  { %v2551_v20 = vsel %vm205_vm6, %v2545_v52, %v2547_v45 }
 0x45c   :  { %2963 = vmatprep.subr.mxu1 %v2551_v20 }
 0x45d   :  { %2964 = vmatpush1.msra.mxu1 %v2550_v33 }
 0x45e   :  { %v2448_v47 = vpop.permute.xlu1 %2447  ;;  %v2355_v8 = vpop.permute.xlu0 %2354 }
 0x45f   :  { %v2456_v13 = vsel %vm109_vm5, %v2448_v47, %v2450_v34 }
 0x460   :  { %2894 = vmatprep.subr.mxu0 %v2456_v13 }
 0x462   :  { %v2452_v17 = vpop.permute.xlu1 %2451  ;;  %v2359_v23 = vpop.permute.xlu0 %2358 }
 0x463   :  { %v2457_v50 = vsel %vm109_vm5, %v2450_v34, %v2452_v17  ;;  %v2458_v24 = vsel %vm109_vm5, %v2452_v17, %v2454_v6 }
 0x464   :  { %2965 = vmatprep.subr.mxu1 %v2458_v24 }
 0x465   :  { %2966 = vmatpush1.msra.mxu1 %v2457_v50 }
 0x466   :  { %v2446_v57 = vpop.permute.xlu1 %2445  ;;  %v2353_v10 = vpop.permute.xlu0 %2352 }
 0x467   :  { %v2455_v4 = vsel %vm109_vm5, %v2446_v57, %v2448_v47  ;;  %v2362_v0 = vsel %vm552_vm10, %v2353_v10, %v2355_v8 }
 0x468   :  { %2895 = vmatpush1.msra.mxu0 %v2455_v4 }
 0x46a   :  { %v2357_v40 = vpop.permute.xlu1 %2356  ;;  %v2264_v58 = vpop.permute.xlu0 %2263 }
 0x46b   :  { %v2363_v51 = vsel %vm552_vm10, %v2355_v8, %v2357_v40  ;;  %v2364_v63 = vsel %vm552_vm10, %v2357_v40, %v2359_v23 }
 0x46c   :  { %2896 = vmatprep.subr.mxu0 %v2363_v51 }
 0x46d   :  { %2897 = vmatpush1.msra.mxu0 %v2362_v0 }
 0x46e   :  { %v2361_v41 = vpop.permute.xlu1 %2360  ;;  %v2268_v55 = vpop.permute.xlu0 %2267 }
 0x46f   :  { %v2365_v44 = vsel %vm552_vm10, %v2359_v23, %v2361_v41 }
 0x470   :  { %2967 = vmatprep.subr.mxu1 %v2365_v44 }
 0x471   :  { %2968 = vmatpush1.msra.mxu1 %v2364_v63  ;;  %v2816_v63 = vld [vmem:[%s5602_s3] sm:$0xf] }
 0x472   :  { %v2262_v21 = vpop.permute.xlu1 %2261  ;;  %v2169_v26 = vpop.permute.xlu0 %2168 }
 0x473   :  { %v2270_v29 = vsel %vm48_vm0, %v2262_v21, %v2264_v58 }
 0x474   :  { %2898 = vmatprep.subr.mxu0 %v2270_v29  ;;  %v3025_v29 = vld [vmem:[%s5597_s0 + $0xc] sm:$0xff] }
 0x476   :  { %v2266_v43 = vpop.permute.xlu1 %2265  ;;  %v2173_v11 = vpop.permute.xlu0 %2172 }
 0x477   :  { %v2271_v2 = vsel %vm48_vm0, %v2264_v58, %v2266_v43  ;;  %v2272_v46 = vsel %vm48_vm0, %v2266_v43, %v2268_v55 }
 0x478   :  { %2969 = vmatprep.subr.mxu1 %v2272_v46 }
 0x479   :  { %2970 = vmatpush1.msra.mxu1 %v2271_v2  ;;  %v3029_v2 = vcombine.high %v3025_v29, %v3025_v29 }
 0x47a   :  { %v2260_v31 = vpop.permute.xlu1 %2259  ;;  %v2167_v1 = vpop.permute.xlu0 %2166 }
 0x47b   :  { %v2269_v7 = vsel %vm48_vm0, %v2260_v31, %v2262_v21  ;;  %v2176_v42 = vsel %vm674_vm9, %v2167_v1, %v2169_v26 }
 0x47c   :  { %2899 = vmatpush1.msra.mxu0 %v2269_v7 }
 0x47e   :  { %v2171_v5 = vpop.permute.xlu1 %2170  ;;  %v2079_v61 = vpop.permute.xlu0 %2078 }
 0x47f   :  { %v2177_v49 = vsel %vm674_vm9, %v2169_v26, %v2171_v5  ;;  %v2178_v39 = vsel %vm674_vm9, %v2171_v5, %v2173_v11 }
 0x480   :  { %2900 = vmatprep.subr.mxu0 %v2177_v49 }
 0x481   :  { %2901 = vmatpush1.msra.mxu0 %v2176_v42 }
 0x482   :  { %v2175_v36 = vpop.permute.xlu1 %2174  ;;  %v2083_v14 = vpop.permute.xlu0 %2082 }
 0x483   :  { %v2179_v60 = vsel %vm674_vm9, %v2173_v11, %v2175_v36 }
 0x484   :  { %2971 = vmatprep.subr.mxu1 %v2179_v60 }
 0x485   :  { %2972 = vmatpush1.msra.mxu1 %v2178_v39 }
 0x486   :  { %v2077_v3 = vpop.permute.xlu1 %2076  ;;  %v1984_v56 = vpop.permute.xlu0 %1983 }
 0x487   :  { %v2085_v15 = vsel %vm581_vm8, %v2077_v3, %v2079_v61 }
 0x488   :  { %2902 = vmatprep.subr.mxu0 %v2085_v15 }
 0x48a   :  { %v2081_v9 = vpop.permute.xlu1 %2080  ;;  %v1988_v59 = vpop.permute.xlu0 %1987 }
 0x48b   :  { %v2086_v27 = vsel %vm581_vm8, %v2079_v61, %v2081_v9  ;;  %v2087_v35 = vsel %vm581_vm8, %v2081_v9, %v2083_v14 }
 0x48c   :  { %2973 = vmatprep.subr.mxu1 %v2087_v35 }
 0x48d   :  { %2974 = vmatpush1.msra.mxu1 %v2086_v27 }
 0x48e   :  { %v2075_v62 = vpop.permute.xlu1 %2074  ;;  %v1982_v53 = vpop.permute.xlu0 %1981 }
 0x48f   :  { %v2084_v38 = vsel %vm581_vm8, %v2075_v62, %v2077_v3  ;;  %v1991_v18 = vsel %vm80_vm2, %v1982_v53, %v1984_v56 }
 0x490   :  { %2903 = vmatpush1.msra.mxu0 %v2084_v38 }
 0x492   :  { %v1986_v52 = vpop.permute.xlu1 %1985  ;;  %v1893_v28 = vpop.permute.xlu0 %1892 }
 0x493   :  { %v1992_v25 = vsel %vm80_vm2, %v1984_v56, %v1986_v52  ;;  %v1993_v19 = vsel %vm80_vm2, %v1986_v52, %v1988_v59 }
 0x494   :  { %2904 = vmatprep.subr.mxu0 %v1992_v25 }
 0x495   :  { %2905 = vmatpush1.msra.mxu0 %v1991_v18 }
 0x496   :  { %v1990_v30 = vpop.permute.xlu1 %1989  ;;  %v1897_v34 = vpop.permute.xlu0 %1896 }
 0x497   :  { %v1994_v22 = vsel %vm80_vm2, %v1988_v59, %v1990_v30 }
 0x498   :  { %2975 = vmatprep.subr.mxu1 %v1994_v22 }
 0x499   :  { %2976 = vmatpush1.msra.mxu1 %v1993_v19 }
 0x49a   :  { %v1891_v16 = vpop.permute.xlu1 %1890 }
 0x49b   :  { %v1899_v54 = vsel %vm176_vm4, %v1891_v16, %v1893_v28 }
 0x49c   :  { %2906 = vmatprep.subr.mxu0 %v1899_v54  ;;  %v1798_v45 = vpop.permute.xlu0 %1797 }
 0x49e   :  { %v1895_v6 = vpop.permute.xlu1 %1894 }
 0x49f   :  { %v1900_v20 = vsel %vm176_vm4, %v1893_v28, %v1895_v6  ;;  %v1901_v33 = vsel %vm176_vm4, %v1895_v6, %v1897_v34 }
 0x4a0   :  { %2977 = vmatprep.subr.mxu1 %v1901_v33  ;;  %v1802_v47 = vpop.permute.xlu0 %1801 }
 0x4a1   :  { %2978 = vmatpush1.msra.mxu1 %v1900_v20 }
 0x4a2   :  { %v1889_v8 = vpop.permute.xlu1 %1888 }
 0x4a3   :  { %v1898_v13 = vsel %vm176_vm4, %v1889_v8, %v1891_v16 }
 0x4a4   :  { %2907 = vmatpush1.msra.mxu0 %v1898_v13  ;;  %v1796_v17 = vpop.permute.xlu0 %1795 }
 0x4a5   :  { %v1805_v24 = vsel %vm271_vm7, %v1796_v17, %v1798_v45 }
 0x4a6   :  { %v1800_v23 = vpop.permute.xlu1 %1799 }
 0x4a7   :  { %v1806_v50 = vsel %vm271_vm7, %v1798_v45, %v1800_v23  ;;  %v1807_v4 = vsel %vm271_vm7, %v1800_v23, %v1802_v47 }
 0x4a8   :  { %2908 = vmatprep.subr.mxu0 %v1806_v50  ;;  %v1707_v40 = vpop.permute.xlu0 %1706 }
 0x4a9   :  { %2909 = vmatpush1.msra.mxu0 %v1805_v24 }
 0x4aa   :  { %v1804_v57 = vpop.permute.xlu1 %1803 }
 0x4ab   :  { %v1808_v10 = vsel %vm271_vm7, %v1802_v47, %v1804_v57 }
 0x4ac   :  { %2979 = vmatprep.subr.mxu1 %v1808_v10  ;;  %v1711_v41 = vpop.permute.xlu0 %1710 }
 0x4ad   :  { %2980 = vmatpush1.msra.mxu1 %v1807_v4 }
 0x4ae   :  { %v1705_v58 = vpop.permute.xlu1 %1704 }
 0x4af   :  { %v1713_v51 = vsel %vm205_vm6, %v1705_v58, %v1707_v40 }
 0x4b0   :  { %2910 = vmatprep.subr.mxu0 %v1713_v51 }
 0x4b2   :  { %v1709_v0 = vpop.permute.xlu1 %1708 }
 0x4b3   :  { %v1714_v55 = vsel %vm205_vm6, %v1707_v40, %v1709_v0  ;;  %v1715_v44 = vsel %vm205_vm6, %v1709_v0, %v1711_v41 }
 0x4b4   :  { %2981 = vmatprep.subr.mxu1 %v1715_v44 }
 0x4b5   :  { %2982 = vmatpush1.msra.mxu1 %v1714_v55 }
 0x4b6   :  { %v1703_v21 = vpop.permute.xlu1 %1702  ;;  %2983 = vmatprep.subr.mxu1 %v5330_v37 }
 0x4b7   :  { %v1712_v26 = vsel %vm205_vm6, %v1703_v21, %v1705_v58  ;;  %2984 = vmatpush1.msra.mxu1 %v5367_v48  ;;  %v3024_v48 = vld [vmem:[%s5597_s0 + $0x4] sm:$0xff] }
 0x4b8   :  { %2911 = vmatpush1.msra.mxu0 %v1712_v26  ;;  %3053 = vmatmul.mubr.msk.f32.vlgmr.msra.gmra.mxu1 %vm1378_vm12, %v2816_v63  ;;  %v3028_v7 = vcombine.high %v3024_v48, %v3024_v48 }
 0x4b9   :  { %2912 = vmatprep.subr.mxu0 %v5370_v12  ;;  %v2877_v43 = vpop.permute.xlu0 %2876 }
 0x4ba   :  { %2913 = vmatpush1.msra.mxu0 %v5341_v32 }
 0x4bb   :  { %3052 = vmatmul.mubr.msk.f32.vlgmr.msra.gmra.mxu0 %vm1378_vm12, %v2816_v63 }
 0x578   :  { %v3019_v11 = vpop.f32.mrf.mxu1 }
 0x579   :  { %v3020_v37 = vadd.f32 %v3019_v11, %v2877_v43 }
 0x57a   :  { %v3021_v46 = vpop.f32.mrf.mxu1 }
 0x57b   :  { %v3022_v31 = vadd.f32 %v3021_v46, %v2877_v43  ;;  %v2948_v1 = vpop.f32.mrf.mxu0  ;;  %v3034_v32 = vadd.f32 %v3025_v29, %v3020_v37 }
 0x57c   :  { %v2949_v12 = vadd.f32 %v2948_v1, %v2877_v43 }
 0x57d   :  { %v3035_v5 = vadd.f32 %v3029_v2, %v3022_v31  ;;  %v2950_v61 = vpop.f32.mrf.mxu0 }
 0x57e   :  { %v2951_v49 = vadd.f32 %v2950_v61, %v2877_v43  ;;  %v3032_v36 = vadd.f32 %v3024_v48, %v2949_v12 }
 0x57f   :  { %v3041_v42 = vcombine.low %v3034_v32, %v3035_v5 }
 0x580   :  { %v3033_v14 = vadd.f32 %v3028_v7, %v2951_v49 }
 0x581   :  { %3045 = vst [vmem:[%s5603_s6 + $0x8] sm:$0xff] %v3041_v42 }
 0x582   :  { %v3040_v60 = vcombine.low %v3032_v36, %v3033_v14 }
 0x584   :  { %3044 = vst [vmem:[%s5603_s6] sm:$0xff] %v3040_v60 }

</bundles_post_ra>
